<compile_context>
chip_gen: v7x
topology: tpu7x:2x2x1
jax: 0.10.0
libtpu: 0.0.40
codegen_flags: <defaults>
</compile_context>

<pallas_src>
import math
import numpy as np
import jax
import jax.numpy as jnp
from jax import lax
from jax.experimental import pallas as pl
from jax.experimental.pallas import tpu as pltpu


def _round_up(x, m):
    return (x + m - 1) // m * m


def _cdiv(a, b):
    return (a + b - 1) // b


def _device_kind():
    try:
        return jax.devices()[0].device_kind.lower()
    except Exception:
        return ""


def _num_tensorcores():
    # v7x has 2 TensorCores per chip; split point tiles across them.
    return 2 if "v7" in _device_kind() else 1


def _vmem_cap_bytes():
    # v7x: 64 MiB physical per TC -> leave headroom. v5e/v6e: 128 MiB physical.
    return (48 << 20) if "v7" in _device_kind() else (100 << 20)


def _make_kernel(W, H, D, num_rots, rpad, tp, tc, n_ct):
    rot_chunks = rpad // 8
    check_rot_pad = (rpad != num_rots)

    def kernel(cos_sm, sin_sm,                    # SMEM scalar-prefetch tables
               prow_ref, wrow_ref, cosb_ref, sinb_ref,   # VMEM inputs
               out_ref):                          # (n_ct, 8, tc) resident accumulator
        # Zero the resident accumulator on the first point tile of this core.
        @pl.when(pl.program_id(1) == 0)
        def _():
            out_ref[...] = jnp.zeros_like(out_ref)

        prow = prow_ref[...]                      # (8, tp): pre-scaled geometry rows
        bxs = prow[0:1, :]                        # (px - cx) / res
        bys = prow[1:2, :]                        # ((py - cy) - offy) / res
        bzs = prow[2:3, :]                        # (pz - cz) / res
        oxs = prow[3:4, :]                        # offx / res
        ozs = prow[4:5, :]                        # offz / res
        vld = prow[5:6, :] > 0.5                  # validity (0 for padded points)

        gy = jnp.floor(bys + 0.5).astype(jnp.int32)          # (1, tp)
        y_ok = (gy >= 0) & (gy < H) & vld                     # (1, tp)

        # Loop-invariant MXU LHS (weight-stationary); bf16 for native MXU.
        w_base = wrow_ref[...].astype(jnp.bfloat16)           # (8, tp)

        # Hoisted iotas (never rebuilt inside the rotation loop).
        cell_iota = lax.broadcasted_iota(jnp.int32, (tc, 1), 0)   # sublane-only
        sub8 = lax.broadcasted_iota(jnp.int32, (8, 1), 0)

        def chunk_body(c, carry):
            r0 = pl.multiple_of(c * 8, 8)
            cos_b = cosb_ref[pl.ds(r0, 8), :]                 # (8, tp) pre-broadcast
            sin_b = sinb_ref[pl.ds(r0, 8), :]
            gx = jnp.floor(bxs - (cos_b * oxs + sin_b * ozs) + 0.5).astype(jnp.int32)
            gz = jnp.floor(bzs - (cos_b * ozs - sin_b * oxs) + 0.5).astype(jnp.int32)
            ok = (gx >= 0) & (gx < W) & (gz >= 0) & (gz < D) & y_ok
            if check_rot_pad:
                ok = ok & ((r0 + sub8) < num_rots)
            flat8 = jnp.where(ok, (gx * H + gy) * D + gz, -1)  # (8, tp) in registers

            # Unrolled static loop over the 8 rotations of this chunk.
            for rr in range(8):
                r = r0 + rr
                flat_row = flat8[rr:rr + 1, :]                 # (1, tp) static slice
                cos_r = cos_sm[r]
                sin_r = sin_sm[r]
                factor = jnp.where(sub8 == 1, cos_r,
                                   jnp.where(sub8 == 2, sin_r, 0.0))   # (8, 1)

                def tile_update(jt, base, flat_row=flat_row, factor=factor):
                    # one-hot from hoisted sublane iota vs shifted flat row.
                    onehot_t = (cell_iota == (flat_row - base)).astype(jnp.bfloat16)
                    contrib = lax.dot_general(
                        w_base, onehot_t, (((1,), (1,)), ((), ())),
                        preferred_element_type=jnp.float32)            # (8, tc)
                    # rows 1-2 of w_base are zero; fill rot channels by
                    # post-scaling the obj row of the result.
                    out_ref[jt] = out_ref[jt] + contrib + factor * contrib[0:1, :]

                if n_ct == 1:
                    tile_update(0, 0)
                else:
                    hi = jnp.max(flat_row)
                    lo = jnp.min(jnp.where(flat_row >= 0, flat_row,
                                           jnp.int32(2 ** 30)))
                    if n_ct <= 16:
                        for jt in range(n_ct):
                            base = jt * tc

                            @pl.when((hi >= base) & (lo < base + tc))
                            def _(jt=jt, base=base):
                                tile_update(jt, base)
                    else:
                        def cell_body(jt, c2):
                            tile_update(jt, jt * tc)
                            return c2

                        jt_lo = jnp.maximum(lo // tc, 0)
                        jt_hi = jnp.minimum(hi // tc, n_ct - 1)
                        lax.fori_loop(jt_lo, jt_hi + 1, cell_body, 0)
            return carry

        lax.fori_loop(0, rot_chunks, chunk_body, 0)

    return kernel


def hough_voting(points, xyz, scale, obj, *, res=0.03, num_rots=120,
                 point_tile=None, cell_tile=512):
    points = jnp.asarray(points, jnp.float32)
    xyz = jnp.asarray(xyz, jnp.float32)
    scale = jnp.asarray(scale, jnp.float32)
    obj = jnp.asarray(obj, jnp.float32).reshape(-1)

    n = points.shape[0]
    res = float(res)
    num_rots = int(num_rots)
    inv_res = 1.0 / res

    # Grid extents are data dependent -> computed host-side from concrete input.
    # TODO(synk): blocks jitting the wrapper with traced `points` (integration
    # constraint inherited from hv_cuda semantics).
    pts_np = np.asarray(points)
    corner_np = pts_np.min(axis=0)
    dims = np.floor((pts_np.max(axis=0) - corner_np) / res).astype(np.int64) + 1
    W, H, D = int(dims[0]), int(dims[1]), int(dims[2])
    G = W * H * D

    # Sort points by their own voxel index so each point tile's votes are
    # spatially clustered -> tight per-rotation cell-tile skip windows.
    gpt = np.floor((pts_np - corner_np) * inv_res + 0.5).astype(np.int64)
    order = np.argsort((gpt[:, 0] * H + gpt[:, 1]) * D + gpt[:, 2], kind="stable")
    order_j = jnp.asarray(order)
    points, xyz, scale, obj = points[order_j], xyz[order_j], scale[order_j], obj[order_j]

    tc = int(min(_round_up(int(cell_tile), 256), _round_up(G, 256)))   # lane-dense cell tile
    gpad = _round_up(G, tc)
    n_ct = gpad // tc

    if point_tile is None:
        tp = int(max(128, min(512, _round_up(n, 128))))
    else:
        tp = int(_round_up(int(point_tile), 128))

    n_cores = _num_tensorcores()
    p_half = _cdiv(_cdiv(n, tp), n_cores)          # point tiles per core
    npad = n_cores * p_half * tp
    pad_n = npad - n

    rpad = _round_up(num_rots, 8)

    # Per-point geometry rows (features on sublanes, points on lanes),
    # pre-scaled by 1/res and corner-relative; zero padding is flagged invalid.
    corner = jnp.asarray(corner_np, jnp.float32)
    pts_rel = (points - corner) * inv_res
    off_s = xyz * scale * inv_res
    zeros_n = jnp.zeros((n,), jnp.float32)
    prow = jnp.stack([
        pts_rel[:, 0],
        pts_rel[:, 1] - off_s[:, 1],
        pts_rel[:, 2],
        off_s[:, 0],
        off_s[:, 2],
        jnp.ones((n,), jnp.float32),               # validity flag
        zeros_n, zeros_n], axis=0)                 # (8, N)
    prow = jnp.pad(prow, ((0, 0), (0, pad_n)))

    # Weight rows: [obj, 0, 0, obj*sx, obj*sy, obj*sz, 0, 0]; rows 1-2 stay
    # zero (rot channels post-scaled in-kernel). Padded points get zero weight.
    wrow = jnp.stack([
        obj, zeros_n, zeros_n,
        obj * scale[:, 0], obj * scale[:, 1], obj * scale[:, 2],
        zeros_n, zeros_n], axis=0)                 # (8, N)
    wrow = jnp.pad(wrow, ((0, 0), (0, pad_n)))

    thetas = 2.0 * math.pi * np.arange(num_rots, dtype=np.float64) / num_rots
    cos_np = np.cos(thetas).astype(np.float32)
    sin_np = np.sin(thetas).astype(np.float32)
    cosb_np = np.zeros((rpad, tp), np.float32)
    sinb_np = np.zeros((rpad, tp), np.float32)
    cosb_np[:num_rots, :] = cos_np[:, None]        # lane-broadcast trig slabs
    sinb_np[:num_rots, :] = sin_np[:, None]
    cosb = jnp.asarray(cosb_np)
    sinb = jnp.asarray(sinb_np)
    cos_tab = jnp.asarray(cos_np)                  # SMEM scalar tables
    sin_tab = jnp.asarray(sin_np)

    kernel = _make_kernel(W, H, D, num_rots, rpad, tp, tc, n_ct)

    # Generation-aware VMEM budget.
    acc_bytes = n_ct * 8 * tc * 4                              # resident accumulator
    in_bytes = 2 * (2 * 8 * tp * 4) + 2 * (2 * rpad * tp * 4)  # double-buffered inputs
    need = 2 * acc_bytes + in_bytes + tc * tp * 2 + (8 << 20)
    cap = _vmem_cap_bytes()
    if need > cap:
        # TODO(synk): cell-tiled fallback for grids whose resident accumulator
        # exceeds per-core VMEM.
        raise NotImplementedError(
            f"vote grid needs ~{need >> 20} MiB VMEM (> {cap >> 20} MiB cap); "
            "cell-tiled fallback not implemented")
    vmem_limit = int(min(cap, max(32 << 20, need)))

    out = pl.pallas_call(
        kernel,
        out_shape=jax.ShapeDtypeStruct((n_cores, n_ct, 8, tc), jnp.float32),
        grid_spec=pltpu.PrefetchScalarGridSpec(
            num_scalar_prefetch=2,
            grid=(n_cores, p_half),
            in_specs=[
                pl.BlockSpec((8, tp), lambda core, p, co, si: (0, core * p_half + p)),
                pl.BlockSpec((8, tp), lambda core, p, co, si: (0, core * p_half + p)),
                pl.BlockSpec((rpad, tp), lambda core, p, co, si: (0, 0)),
                pl.BlockSpec((rpad, tp), lambda core, p, co, si: (0, 0)),
            ],
            out_specs=pl.BlockSpec((None, n_ct, 8, tc),
                                   lambda core, p, co, si: (core, 0, 0, 0)),
        ),
        compiler_params=pltpu.CompilerParams(
            dimension_semantics=("parallel", "arbitrary"),
            vmem_limit_bytes=vmem_limit),
    )(cos_tab, sin_tab, prow, wrow, cosb, sinb)

    flat_out = jnp.transpose(out.sum(axis=0), (1, 0, 2)).reshape(8, gpad)[:, :G]
    grid_obj = flat_out[0].reshape(W, H, D)
    grid_rot = jnp.transpose(flat_out[1:3]).reshape(W, H, D, 2)
    grid_scale = jnp.transpose(flat_out[3:6]).reshape(W, H, D, 3)
    return grid_obj, grid_rot, grid_scale


class HoughVoting:
    """JAX/Pallas equivalent of the PyTorch HoughVoting module (forward only)."""

    def __init__(self, res=0.03, num_rots=120):
        self.res = float(res)
        self.num_rots = int(num_rots)

    def __call__(self, points, xyz, scale, obj):
        return hough_voting(points, xyz, scale, obj,
                            res=self.res, num_rots=self.num_rots)


if __name__ == "__main__":
    key = jax.random.PRNGKey(0)
    k1, k2, k3, k4 = jax.random.split(key, 4)
    N = 256
    points = jax.random.uniform(k1, (N, 3), jnp.float32)                 # unit cube
    xyz = jax.random.uniform(k2, (N, 3), jnp.float32, -0.2, 0.2)         # canonical offsets
    scale = jax.random.uniform(k3, (N, 3), jnp.float32, 0.5, 1.5)        # per-point scale
    obj = jax.random.uniform(k4, (N,), jnp.float32)                      # objectness

    hv = HoughVoting(res=0.125, num_rots=120)
    grid_obj, grid_rot, grid_scale = hv(points, xyz, scale, obj)
    jax.block_until_ready((grid_obj, grid_rot, grid_scale))
    assert grid_obj.ndim == 3 and grid_rot.shape == grid_obj.shape + (2,) \
        and grid_scale.shape == grid_obj.shape + (3,)
    print("KERNEL_OK")
</pallas_src>

<mosaic_0001>
module attributes {stable_mosaic.version = 11 : i64} {
  func.func @kernel(%arg0: i32, %arg1: i32, %arg2: memref<120xf32, #tpu.memory_space<smem>>, %arg3: memref<120xf32, #tpu.memory_space<smem>>, %arg4: memref<8x256xf32, #tpu.memory_space<vmem>>, %arg5: memref<8x256xf32, #tpu.memory_space<vmem>>, %arg6: memref<120x256xf32, #tpu.memory_space<vmem>>, %arg7: memref<120x256xf32, #tpu.memory_space<vmem>>, %arg8: memref<1x1x8x512xf32, #tpu.memory_space<vmem>>) attributes {dimension_semantics = [#tpu.dimension_semantics<parallel>, #tpu.dimension_semantics<arbitrary>], iteration_bounds = array<i64: 1, 1>, scalar_prefetch = 2 : i64, scratch_operands = 0 : i64, tpu.core_type = #tpu.core_type<tc>, window_params = [{transform_indices = @transform_0, window_bounds = array<i64: 8, 256>}, {transform_indices = @transform_1, window_bounds = array<i64: 8, 256>}, {pipeline_mode = #tpu.pipeline_mode<synchronous>, transform_indices = @transform_2, window_bounds = array<i64: 120, 256>}, {pipeline_mode = #tpu.pipeline_mode<synchronous>, transform_indices = @transform_3, window_bounds = array<i64: 120, 256>}, {transform_indices = @transform_4, window_bounds = array<i64: 1, 1, 8, 512>}]} {
    %c0_i32 = arith.constant 0 : i32
    %0 = arith.cmpi eq, %arg1, %c0_i32 : i32
    %1 = arith.extui %0 : i1 to i32
    %c0_i32_0 = arith.constant 0 : i32
    %2 = arith.cmpi ne, %1, %c0_i32_0 : i32
    scf.if %2 {
      %cst_8 = arith.constant 0.000000e+00 : f32
      %27 = vector.broadcast %cst_8 : f32 to vector<1x8x512xf32>
      %c0_9 = arith.constant 0 : index
      %c0_10 = arith.constant 0 : index
      %c0_11 = arith.constant 0 : index
      %c0_12 = arith.constant 0 : index
      %28 = vector.load %arg8[%c0_9, %c0_10, %c0_11, %c0_12] : memref<1x1x8x512xf32, #tpu.memory_space<vmem>>, vector<1x1x8x512xf32>
      %29 = vector.shape_cast %28 : vector<1x1x8x512xf32> to vector<1x8x512xf32>
      %30 = vector.shape_cast %27 : vector<1x8x512xf32> to vector<1x1x8x512xf32>
      tpu.vector_store %arg8[%c0_9, %c0_10, %c0_11, %c0_12], %30 {strides = array<i32>} : memref<1x1x8x512xf32, #tpu.memory_space<vmem>>, vector<1x1x8x512xf32>,
    } else {
    }
    %c0 = arith.constant 0 : index
    %c0_1 = arith.constant 0 : index
    %3 = vector.load %arg4[%c0, %c0_1] : memref<8x256xf32, #tpu.memory_space<vmem>>, vector<8x256xf32>
    %4 = vector.extract_strided_slice %3 {offsets = [0, 0], sizes = [1, 256], strides = [1, 1]} : vector<8x256xf32> to vector<1x256xf32>
    %5 = vector.extract_strided_slice %3 {offsets = [1, 0], sizes = [1, 256], strides = [1, 1]} : vector<8x256xf32> to vector<1x256xf32>
    %6 = vector.extract_strided_slice %3 {offsets = [2, 0], sizes = [1, 256], strides = [1, 1]} : vector<8x256xf32> to vector<1x256xf32>
    %7 = vector.extract_strided_slice %3 {offsets = [3, 0], sizes = [1, 256], strides = [1, 1]} : vector<8x256xf32> to vector<1x256xf32>
    %8 = vector.extract_strided_slice %3 {offsets = [4, 0], sizes = [1, 256], strides = [1, 1]} : vector<8x256xf32> to vector<1x256xf32>
    %9 = vector.extract_strided_slice %3 {offsets = [5, 0], sizes = [1, 256], strides = [1, 1]} : vector<8x256xf32> to vector<1x256xf32>
    %cst = arith.constant 5.000000e-01 : f32
    %10 = vector.broadcast %cst : f32 to vector<1x256xf32>
    %11 = arith.cmpf ogt, %9, %10 : vector<1x256xf32>
    %cst_2 = arith.constant 5.000000e-01 : f32
    %12 = vector.broadcast %cst_2 : f32 to vector<1x256xf32>
    %13 = arith.addf %5, %12 : vector<1x256xf32>
    %14 = math.floor %13 : vector<1x256xf32>
    %15 = arith.fptosi %14 : vector<1x256xf32> to vector<1x256xi32>
    %c0_i32_3 = arith.constant 0 : i32
    %16 = vector.broadcast %c0_i32_3 : i32 to vector<1x256xi32>
    %17 = arith.cmpi sge, %15, %16 : vector<1x256xi32>
    %c8_i32 = arith.constant 8 : i32
    %18 = vector.broadcast %c8_i32 : i32 to vector<1x256xi32>
    %19 = arith.cmpi slt, %15, %18 : vector<1x256xi32>
    %20 = arith.andi %17, %19 : vector<1x256xi1>
    %21 = arith.andi %20, %11 : vector<1x256xi1>
    %c0_4 = arith.constant 0 : index
    %c0_5 = arith.constant 0 : index
    %22 = vector.load %arg5[%c0_4, %c0_5] : memref<8x256xf32, #tpu.memory_space<vmem>>, vector<8x256xf32>
    %23 = arith.truncf %22 : vector<8x256xf32> to vector<8x256xbf16>
    %24 = tpu.iota {dimensions = array<i32: 0>} : vector<512x1xi32>
    %25 = tpu.iota {dimensions = array<i32: 0>} : vector<8x1xi32>
    %c0_i32_6 = arith.constant 0 : i32
    %c15_i32 = arith.constant 15 : i32
    %26 = arith.addi %c0_i32_6, %c15_i32 : i32
    %c1_i32 = arith.constant 1 : i32
    scf.for %arg9 = %c0_i32_6 to %26 step %c1_i32  : i32 {
      %c8_i32_8 = arith.constant 8 : i32
      %27 = arith.muli %arg9, %c8_i32_8 : i32
      %28 = tpu.assume_multiple %27, 8 : i32
      %29 = arith.index_cast %28 : i32 to index
      %c0_9 = arith.constant 0 : index
      %30 = vector.load %arg6[%29, %c0_9] : memref<120x256xf32, #tpu.memory_space<vmem>>, vector<8x256xf32>
      %31 = arith.index_cast %28 : i32 to index
      %c0_10 = arith.constant 0 : index
      %32 = vector.load %arg7[%31, %c0_10] : memref<120x256xf32, #tpu.memory_space<vmem>>, vector<8x256xf32>
      %33 = vector.broadcast %7 : vector<1x256xf32> to vector<8x256xf32>
      %34 = arith.mulf %30, %33 : vector<8x256xf32>
      %35 = vector.broadcast %8 : vector<1x256xf32> to vector<8x256xf32>
      %36 = arith.mulf %32, %35 : vector<8x256xf32>
      %37 = arith.addf %34, %36 : vector<8x256xf32>
      %38 = vector.broadcast %4 : vector<1x256xf32> to vector<8x256xf32>
      %39 = arith.subf %38, %37 : vector<8x256xf32>
      %cst_11 = arith.constant 5.000000e-01 : f32
      %40 = vector.broadcast %cst_11 : f32 to vector<8x256xf32>
      %41 = arith.addf %39, %40 : vector<8x256xf32>
      %42 = math.floor %41 : vector<8x256xf32>
      %43 = arith.fptosi %42 : vector<8x256xf32> to vector<8x256xi32>
      %44 = vector.broadcast %8 : vector<1x256xf32> to vector<8x256xf32>
      %45 = arith.mulf %30, %44 : vector<8x256xf32>
      %46 = vector.broadcast %7 : vector<1x256xf32> to vector<8x256xf32>
      %47 = arith.mulf %32, %46 : vector<8x256xf32>
      %48 = arith.subf %45, %47 : vector<8x256xf32>
      %49 = vector.broadcast %6 : vector<1x256xf32> to vector<8x256xf32>
      %50 = arith.subf %49, %48 : vector<8x256xf32>
      %cst_12 = arith.constant 5.000000e-01 : f32
      %51 = vector.broadcast %cst_12 : f32 to vector<8x256xf32>
      %52 = arith.addf %50, %51 : vector<8x256xf32>
      %53 = math.floor %52 : vector<8x256xf32>
      %54 = arith.fptosi %53 : vector<8x256xf32> to vector<8x256xi32>
      %c0_i32_13 = arith.constant 0 : i32
      %55 = vector.broadcast %c0_i32_13 : i32 to vector<8x256xi32>
      %56 = arith.cmpi sge, %43, %55 : vector<8x256xi32>
      %c8_i32_14 = arith.constant 8 : i32
      %57 = vector.broadcast %c8_i32_14 : i32 to vector<8x256xi32>
      %58 = arith.cmpi slt, %43, %57 : vector<8x256xi32>
      %59 = arith.andi %56, %58 : vector<8x256xi1>
      %c0_i32_15 = arith.constant 0 : i32
      %60 = vector.broadcast %c0_i32_15 : i32 to vector<8x256xi32>
      %61 = arith.cmpi sge, %54, %60 : vector<8x256xi32>
      %62 = arith.andi %59, %61 : vector<8x256xi1>
      %c8_i32_16 = arith.constant 8 : i32
      %63 = vector.broadcast %c8_i32_16 : i32 to vector<8x256xi32>
      %64 = arith.cmpi slt, %54, %63 : vector<8x256xi32>
      %65 = arith.andi %62, %64 : vector<8x256xi1>
      %66 = vector.broadcast %21 : vector<1x256xi1> to vector<8x256xi1>
      %67 = arith.andi %65, %66 : vector<8x256xi1>
      %c8_i32_17 = arith.constant 8 : i32
      %68 = vector.broadcast %c8_i32_17 : i32 to vector<8x256xi32>
      %69 = arith.muli %43, %68 : vector<8x256xi32>
      %70 = vector.broadcast %15 : vector<1x256xi32> to vector<8x256xi32>
      %71 = arith.addi %69, %70 : vector<8x256xi32>
      %c8_i32_18 = arith.constant 8 : i32
      %72 = vector.broadcast %c8_i32_18 : i32 to vector<8x256xi32>
      %73 = arith.muli %71, %72 : vector<8x256xi32>
      %74 = arith.addi %73, %54 : vector<8x256xi32>
      %c-1_i32 = arith.constant -1 : i32
      %75 = vector.broadcast %c-1_i32 : i32 to vector<8x256xi32>
      %76 = arith.select %67, %74, %75 : vector<8x256xi1>, vector<8x256xi32>
      %c0_i32_19 = arith.constant 0 : i32
      %77 = arith.addi %28, %c0_i32_19 : i32
      %78 = vector.extract_strided_slice %76 {offsets = [0, 0], sizes = [1, 256], strides = [1, 1]} : vector<8x256xi32> to vector<1x256xi32>
      %79 = arith.index_cast %77 : i32 to index
      %80 = memref.load %arg2[%79] : memref<120xf32, #tpu.memory_space<smem>>
      %81 = arith.index_cast %77 : i32 to index
      %82 = memref.load %arg3[%81] : memref<120xf32, #tpu.memory_space<smem>>
      %c1_i32_20 = arith.constant 1 : i32
      %83 = vector.broadcast %c1_i32_20 : i32 to vector<8x1xi32>
      %84 = arith.cmpi eq, %25, %83 : vector<8x1xi32>
      %c2_i32 = arith.constant 2 : i32
      %85 = vector.broadcast %c2_i32 : i32 to vector<8x1xi32>
      %86 = arith.cmpi eq, %25, %85 : vector<8x1xi32>
      %cst_21 = arith.constant 0.000000e+00 : f32
      %87 = vector.broadcast %82 : f32 to vector<8x1xf32>
      %88 = vector.broadcast %cst_21 : f32 to vector<8x1xf32>
      %89 = arith.select %86, %87, %88 : vector<8x1xi1>, vector<8x1xf32>
      %90 = vector.broadcast %80 : f32 to vector<8x1xf32>
      %91 = arith.select %84, %90, %89 : vector<8x1xi1>, vector<8x1xf32>
      %c0_i32_22 = arith.constant 0 : i32
      %92 = vector.broadcast %c0_i32_22 : i32 to vector<1x256xi32>
      %93 = arith.subi %78, %92 : vector<1x256xi32>
      %94 = vector.broadcast %24 : vector<512x1xi32> to vector<512x256xi32>
      %95 = vector.broadcast %93 : vector<1x256xi32> to vector<512x256xi32>
      %96 = arith.cmpi eq, %94, %95 : vector<512x256xi32>
      %97 = arith.extui %96 : vector<512x256xi1> to vector<512x256xi32>
      %98 = arith.sitofp %97 : vector<512x256xi32> to vector<512x256xf32>
      %99 = arith.truncf %98 : vector<512x256xf32> to vector<512x256xbf16>
      %cst_23 = arith.constant dense<0.000000e+00> : vector<8x512xf32>
      %100 = tpu.matmul %23, %99, %cst_23 {dimension_numbers = #tpu.dot_dimension_numbers<[1], [1], [0], [0], [0, 0, 1, 0], [], []>} : vector<8x256xbf16>, vector<512x256xbf16>, vector<8x512xf32> -> vector<8x512xf32>
      %c0_24 = arith.constant 0 : index
      %c0_25 = arith.constant 0 : index
      %c0_26 = arith.constant 0 : index
      %c0_27 = arith.constant 0 : index
      %101 = vector.load %arg8[%c0_24, %c0_25, %c0_26, %c0_27] : memref<1x1x8x512xf32, #tpu.memory_space<vmem>>, vector<1x1x8x512xf32>
      %102 = vector.shape_cast %101 : vector<1x1x8x512xf32> to vector<8x512xf32>
      %103 = arith.addf %102, %100 : vector<8x512xf32>
      %104 = vector.extract_strided_slice %100 {offsets = [0, 0], sizes = [1, 512], strides = [1, 1]} : vector<8x512xf32> to vector<1x512xf32>
      %105 = vector.broadcast %91 : vector<8x1xf32> to vector<8x512xf32>
      %106 = vector.broadcast %104 : vector<1x512xf32> to vector<8x512xf32>
      %107 = arith.mulf %105, %106 : vector<8x512xf32>
      %108 = arith.addf %103, %107 : vector<8x512xf32>
      %c0_28 = arith.constant 0 : index
      %c0_29 = arith.constant 0 : index
      %c0_30 = arith.constant 0 : index
      %c0_31 = arith.constant 0 : index
      %109 = vector.load %arg8[%c0_28, %c0_29, %c0_30, %c0_31] : memref<1x1x8x512xf32, #tpu.memory_space<vmem>>, vector<1x1x8x512xf32>
      %110 = vector.shape_cast %109 : vector<1x1x8x512xf32> to vector<8x512xf32>
      %111 = vector.shape_cast %108 : vector<8x512xf32> to vector<1x1x8x512xf32>
      tpu.vector_store %arg8[%c0_28, %c0_29, %c0_30, %c0_31], %111 {strides = array<i32>} : memref<1x1x8x512xf32, #tpu.memory_space<vmem>>, vector<1x1x8x512xf32>,
      %c1_i32_32 = arith.constant 1 : i32
      %112 = arith.addi %28, %c1_i32_32 : i32
      %113 = vector.extract_strided_slice %76 {offsets = [1, 0], sizes = [1, 256], strides = [1, 1]} : vector<8x256xi32> to vector<1x256xi32>
      %114 = arith.index_cast %112 : i32 to index
      %115 = memref.load %arg2[%114] : memref<120xf32, #tpu.memory_space<smem>>
      %116 = arith.index_cast %112 : i32 to index
      %117 = memref.load %arg3[%116] : memref<120xf32, #tpu.memory_space<smem>>
      %c1_i32_33 = arith.constant 1 : i32
      %118 = vector.broadcast %c1_i32_33 : i32 to vector<8x1xi32>
      %119 = arith.cmpi eq, %25, %118 : vector<8x1xi32>
      %c2_i32_34 = arith.constant 2 : i32
      %120 = vector.broadcast %c2_i32_34 : i32 to vector<8x1xi32>
      %121 = arith.cmpi eq, %25, %120 : vector<8x1xi32>
      %cst_35 = arith.constant 0.000000e+00 : f32
      %122 = vector.broadcast %117 : f32 to vector<8x1xf32>
      %123 = vector.broadcast %cst_35 : f32 to vector<8x1xf32>
      %124 = arith.select %121, %122, %123 : vector<8x1xi1>, vector<8x1xf32>
      %125 = vector.broadcast %115 : f32 to vector<8x1xf32>
      %126 = arith.select %119, %125, %124 : vector<8x1xi1>, vector<8x1xf32>
      %c0_i32_36 = arith.constant 0 : i32
      %127 = vector.broadcast %c0_i32_36 : i32 to vector<1x256xi32>
      %128 = arith.subi %113, %127 : vector<1x256xi32>
      %129 = vector.broadcast %24 : vector<512x1xi32> to vector<512x256xi32>
      %130 = vector.broadcast %128 : vector<1x256xi32> to vector<512x256xi32>
      %131 = arith.cmpi eq, %129, %130 : vector<512x256xi32>
      %132 = arith.extui %131 : vector<512x256xi1> to vector<512x256xi32>
      %133 = arith.sitofp %132 : vector<512x256xi32> to vector<512x256xf32>
      %134 = arith.truncf %133 : vector<512x256xf32> to vector<512x256xbf16>
      %cst_37 = arith.constant dense<0.000000e+00> : vector<8x512xf32>
      %135 = tpu.matmul %23, %134, %cst_37 {dimension_numbers = #tpu.dot_dimension_numbers<[1], [1], [0], [0], [0, 0, 1, 0], [], []>} : vector<8x256xbf16>, vector<512x256xbf16>, vector<8x512xf32> -> vector<8x512xf32>
      %c0_38 = arith.constant 0 : index
      %c0_39 = arith.constant 0 : index
      %c0_40 = arith.constant 0 : index
      %c0_41 = arith.constant 0 : index
      %136 = vector.load %arg8[%c0_38, %c0_39, %c0_40, %c0_41] : memref<1x1x8x512xf32, #tpu.memory_space<vmem>>, vector<1x1x8x512xf32>
      %137 = vector.shape_cast %136 : vector<1x1x8x512xf32> to vector<8x512xf32>
      %138 = arith.addf %137, %135 : vector<8x512xf32>
      %139 = vector.extract_strided_slice %135 {offsets = [0, 0], sizes = [1, 512], strides = [1, 1]} : vector<8x512xf32> to vector<1x512xf32>
      %140 = vector.broadcast %126 : vector<8x1xf32> to vector<8x512xf32>
      %141 = vector.broadcast %139 : vector<1x512xf32> to vector<8x512xf32>
      %142 = arith.mulf %140, %141 : vector<8x512xf32>
      %143 = arith.addf %138, %142 : vector<8x512xf32>
      %c0_42 = arith.constant 0 : index
      %c0_43 = arith.constant 0 : index
      %c0_44 = arith.constant 0 : index
      %c0_45 = arith.constant 0 : index
      %144 = vector.load %arg8[%c0_42, %c0_43, %c0_44, %c0_45] : memref<1x1x8x512xf32, #tpu.memory_space<vmem>>, vector<1x1x8x512xf32>
      %145 = vector.shape_cast %144 : vector<1x1x8x512xf32> to vector<8x512xf32>
      %146 = vector.shape_cast %143 : vector<8x512xf32> to vector<1x1x8x512xf32>
      tpu.vector_store %arg8[%c0_42, %c0_43, %c0_44, %c0_45], %146 {strides = array<i32>} : memref<1x1x8x512xf32, #tpu.memory_space<vmem>>, vector<1x1x8x512xf32>,
      %c2_i32_46 = arith.constant 2 : i32
      %147 = arith.addi %28, %c2_i32_46 : i32
      %148 = vector.extract_strided_slice %76 {offsets = [2, 0], sizes = [1, 256], strides = [1, 1]} : vector<8x256xi32> to vector<1x256xi32>
      %149 = arith.index_cast %147 : i32 to index
      %150 = memref.load %arg2[%149] : memref<120xf32, #tpu.memory_space<smem>>
      %151 = arith.index_cast %147 : i32 to index
      %152 = memref.load %arg3[%151] : memref<120xf32, #tpu.memory_space<smem>>
      %c1_i32_47 = arith.constant 1 : i32
      %153 = vector.broadcast %c1_i32_47 : i32 to vector<8x1xi32>
      %154 = arith.cmpi eq, %25, %153 : vector<8x1xi32>
      %c2_i32_48 = arith.constant 2 : i32
      %155 = vector.broadcast %c2_i32_48 : i32 to vector<8x1xi32>
      %156 = arith.cmpi eq, %25, %155 : vector<8x1xi32>
      %cst_49 = arith.constant 0.000000e+00 : f32
      %157 = vector.broadcast %152 : f32 to vector<8x1xf32>
      %158 = vector.broadcast %cst_49 : f32 to vector<8x1xf32>
      %159 = arith.select %156, %157, %158 : vector<8x1xi1>, vector<8x1xf32>
      %160 = vector.broadcast %150 : f32 to vector<8x1xf32>
      %161 = arith.select %154, %160, %159 : vector<8x1xi1>, vector<8x1xf32>
      %c0_i32_50 = arith.constant 0 : i32
      %162 = vector.broadcast %c0_i32_50 : i32 to vector<1x256xi32>
      %163 = arith.subi %148, %162 : vector<1x256xi32>
      %164 = vector.broadcast %24 : vector<512x1xi32> to vector<512x256xi32>
      %165 = vector.broadcast %163 : vector<1x256xi32> to vector<512x256xi32>
      %166 = arith.cmpi eq, %164, %165 : vector<512x256xi32>
      %167 = arith.extui %166 : vector<512x256xi1> to vector<512x256xi32>
      %168 = arith.sitofp %167 : vector<512x256xi32> to vector<512x256xf32>
      %169 = arith.truncf %168 : vector<512x256xf32> to vector<512x256xbf16>
      %cst_51 = arith.constant dense<0.000000e+00> : vector<8x512xf32>
      %170 = tpu.matmul %23, %169, %cst_51 {dimension_numbers = #tpu.dot_dimension_numbers<[1], [1], [0], [0], [0, 0, 1, 0], [], []>} : vector<8x256xbf16>, vector<512x256xbf16>, vector<8x512xf32> -> vector<8x512xf32>
      %c0_52 = arith.constant 0 : index
      %c0_53 = arith.constant 0 : index
      %c0_54 = arith.constant 0 : index
      %c0_55 = arith.constant 0 : index
      %171 = vector.load %arg8[%c0_52, %c0_53, %c0_54, %c0_55] : memref<1x1x8x512xf32, #tpu.memory_space<vmem>>, vector<1x1x8x512xf32>
      %172 = vector.shape_cast %171 : vector<1x1x8x512xf32> to vector<8x512xf32>
      %173 = arith.addf %172, %170 : vector<8x512xf32>
      %174 = vector.extract_strided_slice %170 {offsets = [0, 0], sizes = [1, 512], strides = [1, 1]} : vector<8x512xf32> to vector<1x512xf32>
      %175 = vector.broadcast %161 : vector<8x1xf32> to vector<8x512xf32>
      %176 = vector.broadcast %174 : vector<1x512xf32> to vector<8x512xf32>
      %177 = arith.mulf %175, %176 : vector<8x512xf32>
      %178 = arith.addf %173, %177 : vector<8x512xf32>
      %c0_56 = arith.constant 0 : index
      %c0_57 = arith.constant 0 : index
      %c0_58 = arith.constant 0 : index
      %c0_59 = arith.constant 0 : index
      %179 = vector.load %arg8[%c0_56, %c0_57, %c0_58, %c0_59] : memref<1x1x8x512xf32, #tpu.memory_space<vmem>>, vector<1x1x8x512xf32>
      %180 = vector.shape_cast %179 : vector<1x1x8x512xf32> to vector<8x512xf32>
      %181 = vector.shape_cast %178 : vector<8x512xf32> to vector<1x1x8x512xf32>
      tpu.vector_store %arg8[%c0_56, %c0_57, %c0_58, %c0_59], %181 {strides = array<i32>} : memref<1x1x8x512xf32, #tpu.memory_space<vmem>>, vector<1x1x8x512xf32>,
      %c3_i32 = arith.constant 3 : i32
      %182 = arith.addi %28, %c3_i32 : i32
      %183 = vector.extract_strided_slice %76 {offsets = [3, 0], sizes = [1, 256], strides = [1, 1]} : vector<8x256xi32> to vector<1x256xi32>
      %184 = arith.index_cast %182 : i32 to index
      %185 = memref.load %arg2[%184] : memref<120xf32, #tpu.memory_space<smem>>
      %186 = arith.index_cast %182 : i32 to index
      %187 = memref.load %arg3[%186] : memref<120xf32, #tpu.memory_space<smem>>
      %c1_i32_60 = arith.constant 1 : i32
      %188 = vector.broadcast %c1_i32_60 : i32 to vector<8x1xi32>
      %189 = arith.cmpi eq, %25, %188 : vector<8x1xi32>
      %c2_i32_61 = arith.constant 2 : i32
      %190 = vector.broadcast %c2_i32_61 : i32 to vector<8x1xi32>
      %191 = arith.cmpi eq, %25, %190 : vector<8x1xi32>
      %cst_62 = arith.constant 0.000000e+00 : f32
      %192 = vector.broadcast %187 : f32 to vector<8x1xf32>
      %193 = vector.broadcast %cst_62 : f32 to vector<8x1xf32>
      %194 = arith.select %191, %192, %193 : vector<8x1xi1>, vector<8x1xf32>
      %195 = vector.broadcast %185 : f32 to vector<8x1xf32>
      %196 = arith.select %189, %195, %194 : vector<8x1xi1>, vector<8x1xf32>
      %c0_i32_63 = arith.constant 0 : i32
      %197 = vector.broadcast %c0_i32_63 : i32 to vector<1x256xi32>
      %198 = arith.subi %183, %197 : vector<1x256xi32>
      %199 = vector.broadcast %24 : vector<512x1xi32> to vector<512x256xi32>
      %200 = vector.broadcast %198 : vector<1x256xi32> to vector<512x256xi32>
      %201 = arith.cmpi eq, %199, %200 : vector<512x256xi32>
      %202 = arith.extui %201 : vector<512x256xi1> to vector<512x256xi32>
      %203 = arith.sitofp %202 : vector<512x256xi32> to vector<512x256xf32>
      %204 = arith.truncf %203 : vector<512x256xf32> to vector<512x256xbf16>
      %cst_64 = arith.constant dense<0.000000e+00> : vector<8x512xf32>
      %205 = tpu.matmul %23, %204, %cst_64 {dimension_numbers = #tpu.dot_dimension_numbers<[1], [1], [0], [0], [0, 0, 1, 0], [], []>} : vector<8x256xbf16>, vector<512x256xbf16>, vector<8x512xf32> -> vector<8x512xf32>
      %c0_65 = arith.constant 0 : index
      %c0_66 = arith.constant 0 : index
      %c0_67 = arith.constant 0 : index
      %c0_68 = arith.constant 0 : index
      %206 = vector.load %arg8[%c0_65, %c0_66, %c0_67, %c0_68] : memref<1x1x8x512xf32, #tpu.memory_space<vmem>>, vector<1x1x8x512xf32>
      %207 = vector.shape_cast %206 : vector<1x1x8x512xf32> to vector<8x512xf32>
      %208 = arith.addf %207, %205 : vector<8x512xf32>
      %209 = vector.extract_strided_slice %205 {offsets = [0, 0], sizes = [1, 512], strides = [1, 1]} : vector<8x512xf32> to vector<1x512xf32>
      %210 = vector.broadcast %196 : vector<8x1xf32> to vector<8x512xf32>
      %211 = vector.broadcast %209 : vector<1x512xf32> to vector<8x512xf32>
      %212 = arith.mulf %210, %211 : vector<8x512xf32>
      %213 = arith.addf %208, %212 : vector<8x512xf32>
      %c0_69 = arith.constant 0 : index
      %c0_70 = arith.constant 0 : index
      %c0_71 = arith.constant 0 : index
      %c0_72 = arith.constant 0 : index
      %214 = vector.load %arg8[%c0_69, %c0_70, %c0_71, %c0_72] : memref<1x1x8x512xf32, #tpu.memory_space<vmem>>, vector<1x1x8x512xf32>
      %215 = vector.shape_cast %214 : vector<1x1x8x512xf32> to vector<8x512xf32>
      %216 = vector.shape_cast %213 : vector<8x512xf32> to vector<1x1x8x512xf32>
      tpu.vector_store %arg8[%c0_69, %c0_70, %c0_71, %c0_72], %216 {strides = array<i32>} : memref<1x1x8x512xf32, #tpu.memory_space<vmem>>, vector<1x1x8x512xf32>,
      %c4_i32 = arith.constant 4 : i32
      %217 = arith.addi %28, %c4_i32 : i32
      %218 = vector.extract_strided_slice %76 {offsets = [4, 0], sizes = [1, 256], strides = [1, 1]} : vector<8x256xi32> to vector<1x256xi32>
      %219 = arith.index_cast %217 : i32 to index
      %220 = memref.load %arg2[%219] : memref<120xf32, #tpu.memory_space<smem>>
      %221 = arith.index_cast %217 : i32 to index
      %222 = memref.load %arg3[%221] : memref<120xf32, #tpu.memory_space<smem>>
      %c1_i32_73 = arith.constant 1 : i32
      %223 = vector.broadcast %c1_i32_73 : i32 to vector<8x1xi32>
      %224 = arith.cmpi eq, %25, %223 : vector<8x1xi32>
      %c2_i32_74 = arith.constant 2 : i32
      %225 = vector.broadcast %c2_i32_74 : i32 to vector<8x1xi32>
      %226 = arith.cmpi eq, %25, %225 : vector<8x1xi32>
      %cst_75 = arith.constant 0.000000e+00 : f32
      %227 = vector.broadcast %222 : f32 to vector<8x1xf32>
      %228 = vector.broadcast %cst_75 : f32 to vector<8x1xf32>
      %229 = arith.select %226, %227, %228 : vector<8x1xi1>, vector<8x1xf32>
      %230 = vector.broadcast %220 : f32 to vector<8x1xf32>
      %231 = arith.select %224, %230, %229 : vector<8x1xi1>, vector<8x1xf32>
      %c0_i32_76 = arith.constant 0 : i32
      %232 = vector.broadcast %c0_i32_76 : i32 to vector<1x256xi32>
      %233 = arith.subi %218, %232 : vector<1x256xi32>
      %234 = vector.broadcast %24 : vector<512x1xi32> to vector<512x256xi32>
      %235 = vector.broadcast %233 : vector<1x256xi32> to vector<512x256xi32>
      %236 = arith.cmpi eq, %234, %235 : vector<512x256xi32>
      %237 = arith.extui %236 : vector<512x256xi1> to vector<512x256xi32>
      %238 = arith.sitofp %237 : vector<512x256xi32> to vector<512x256xf32>
      %239 = arith.truncf %238 : vector<512x256xf32> to vector<512x256xbf16>
      %cst_77 = arith.constant dense<0.000000e+00> : vector<8x512xf32>
      %240 = tpu.matmul %23, %239, %cst_77 {dimension_numbers = #tpu.dot_dimension_numbers<[1], [1], [0], [0], [0, 0, 1, 0], [], []>} : vector<8x256xbf16>, vector<512x256xbf16>, vector<8x512xf32> -> vector<8x512xf32>
      %c0_78 = arith.constant 0 : index
      %c0_79 = arith.constant 0 : index
      %c0_80 = arith.constant 0 : index
      %c0_81 = arith.constant 0 : index
      %241 = vector.load %arg8[%c0_78, %c0_79, %c0_80, %c0_81] : memref<1x1x8x512xf32, #tpu.memory_space<vmem>>, vector<1x1x8x512xf32>
      %242 = vector.shape_cast %241 : vector<1x1x8x512xf32> to vector<8x512xf32>
      %243 = arith.addf %242, %240 : vector<8x512xf32>
      %244 = vector.extract_strided_slice %240 {offsets = [0, 0], sizes = [1, 512], strides = [1, 1]} : vector<8x512xf32> to vector<1x512xf32>
      %245 = vector.broadcast %231 : vector<8x1xf32> to vector<8x512xf32>
      %246 = vector.broadcast %244 : vector<1x512xf32> to vector<8x512xf32>
      %247 = arith.mulf %245, %246 : vector<8x512xf32>
      %248 = arith.addf %243, %247 : vector<8x512xf32>
      %c0_82 = arith.constant 0 : index
      %c0_83 = arith.constant 0 : index
      %c0_84 = arith.constant 0 : index
      %c0_85 = arith.constant 0 : index
      %249 = vector.load %arg8[%c0_82, %c0_83, %c0_84, %c0_85] : memref<1x1x8x512xf32, #tpu.memory_space<vmem>>, vector<1x1x8x512xf32>
      %250 = vector.shape_cast %249 : vector<1x1x8x512xf32> to vector<8x512xf32>
      %251 = vector.shape_cast %248 : vector<8x512xf32> to vector<1x1x8x512xf32>
      tpu.vector_store %arg8[%c0_82, %c0_83, %c0_84, %c0_85], %251 {strides = array<i32>} : memref<1x1x8x512xf32, #tpu.memory_space<vmem>>, vector<1x1x8x512xf32>,
      %c5_i32 = arith.constant 5 : i32
      %252 = arith.addi %28, %c5_i32 : i32
      %253 = vector.extract_strided_slice %76 {offsets = [5, 0], sizes = [1, 256], strides = [1, 1]} : vector<8x256xi32> to vector<1x256xi32>
      %254 = arith.index_cast %252 : i32 to index
      %255 = memref.load %arg2[%254] : memref<120xf32, #tpu.memory_space<smem>>
      %256 = arith.index_cast %252 : i32 to index
      %257 = memref.load %arg3[%256] : memref<120xf32, #tpu.memory_space<smem>>
      %c1_i32_86 = arith.constant 1 : i32
      %258 = vector.broadcast %c1_i32_86 : i32 to vector<8x1xi32>
      %259 = arith.cmpi eq, %25, %258 : vector<8x1xi32>
      %c2_i32_87 = arith.constant 2 : i32
      %260 = vector.broadcast %c2_i32_87 : i32 to vector<8x1xi32>
      %261 = arith.cmpi eq, %25, %260 : vector<8x1xi32>
      %cst_88 = arith.constant 0.000000e+00 : f32
      %262 = vector.broadcast %257 : f32 to vector<8x1xf32>
      %263 = vector.broadcast %cst_88 : f32 to vector<8x1xf32>
      %264 = arith.select %261, %262, %263 : vector<8x1xi1>, vector<8x1xf32>
      %265 = vector.broadcast %255 : f32 to vector<8x1xf32>
      %266 = arith.select %259, %265, %264 : vector<8x1xi1>, vector<8x1xf32>
      %c0_i32_89 = arith.constant 0 : i32
      %267 = vector.broadcast %c0_i32_89 : i32 to vector<1x256xi32>
      %268 = arith.subi %253, %267 : vector<1x256xi32>
      %269 = vector.broadcast %24 : vector<512x1xi32> to vector<512x256xi32>
      %270 = vector.broadcast %268 : vector<1x256xi32> to vector<512x256xi32>
      %271 = arith.cmpi eq, %269, %270 : vector<512x256xi32>
      %272 = arith.extui %271 : vector<512x256xi1> to vector<512x256xi32>
      %273 = arith.sitofp %272 : vector<512x256xi32> to vector<512x256xf32>
      %274 = arith.truncf %273 : vector<512x256xf32> to vector<512x256xbf16>
      %cst_90 = arith.constant dense<0.000000e+00> : vector<8x512xf32>
      %275 = tpu.matmul %23, %274, %cst_90 {dimension_numbers = #tpu.dot_dimension_numbers<[1], [1], [0], [0], [0, 0, 1, 0], [], []>} : vector<8x256xbf16>, vector<512x256xbf16>, vector<8x512xf32> -> vector<8x512xf32>
      %c0_91 = arith.constant 0 : index
      %c0_92 = arith.constant 0 : index
      %c0_93 = arith.constant 0 : index
      %c0_94 = arith.constant 0 : index
      %276 = vector.load %arg8[%c0_91, %c0_92, %c0_93, %c0_94] : memref<1x1x8x512xf32, #tpu.memory_space<vmem>>, vector<1x1x8x512xf32>
      %277 = vector.shape_cast %276 : vector<1x1x8x512xf32> to vector<8x512xf32>
      %278 = arith.addf %277, %275 : vector<8x512xf32>
      %279 = vector.extract_strided_slice %275 {offsets = [0, 0], sizes = [1, 512], strides = [1, 1]} : vector<8x512xf32> to vector<1x512xf32>
      %280 = vector.broadcast %266 : vector<8x1xf32> to vector<8x512xf32>
      %281 = vector.broadcast %279 : vector<1x512xf32> to vector<8x512xf32>
      %282 = arith.mulf %280, %281 : vector<8x512xf32>
      %283 = arith.addf %278, %282 : vector<8x512xf32>
      %c0_95 = arith.constant 0 : index
      %c0_96 = arith.constant 0 : index
      %c0_97 = arith.constant 0 : index
      %c0_98 = arith.constant 0 : index
      %284 = vector.load %arg8[%c0_95, %c0_96, %c0_97, %c0_98] : memref<1x1x8x512xf32, #tpu.memory_space<vmem>>, vector<1x1x8x512xf32>
      %285 = vector.shape_cast %284 : vector<1x1x8x512xf32> to vector<8x512xf32>
      %286 = vector.shape_cast %283 : vector<8x512xf32> to vector<1x1x8x512xf32>
      tpu.vector_store %arg8[%c0_95, %c0_96, %c0_97, %c0_98], %286 {strides = array<i32>} : memref<1x1x8x512xf32, #tpu.memory_space<vmem>>, vector<1x1x8x512xf32>,
      %c6_i32 = arith.constant 6 : i32
      %287 = arith.addi %28, %c6_i32 : i32
      %288 = vector.extract_strided_slice %76 {offsets = [6, 0], sizes = [1, 256], strides = [1, 1]} : vector<8x256xi32> to vector<1x256xi32>
      %289 = arith.index_cast %287 : i32 to index
      %290 = memref.load %arg2[%289] : memref<120xf32, #tpu.memory_space<smem>>
      %291 = arith.index_cast %287 : i32 to index
      %292 = memref.load %arg3[%291] : memref<120xf32, #tpu.memory_space<smem>>
      %c1_i32_99 = arith.constant 1 : i32
      %293 = vector.broadcast %c1_i32_99 : i32 to vector<8x1xi32>
      %294 = arith.cmpi eq, %25, %293 : vector<8x1xi32>
      %c2_i32_100 = arith.constant 2 : i32
      %295 = vector.broadcast %c2_i32_100 : i32 to vector<8x1xi32>
      %296 = arith.cmpi eq, %25, %295 : vector<8x1xi32>
      %cst_101 = arith.constant 0.000000e+00 : f32
      %297 = vector.broadcast %292 : f32 to vector<8x1xf32>
      %298 = vector.broadcast %cst_101 : f32 to vector<8x1xf32>
      %299 = arith.select %296, %297, %298 : vector<8x1xi1>, vector<8x1xf32>
      %300 = vector.broadcast %290 : f32 to vector<8x1xf32>
      %301 = arith.select %294, %300, %299 : vector<8x1xi1>, vector<8x1xf32>
      %c0_i32_102 = arith.constant 0 : i32
      %302 = vector.broadcast %c0_i32_102 : i32 to vector<1x256xi32>
      %303 = arith.subi %288, %302 : vector<1x256xi32>
      %304 = vector.broadcast %24 : vector<512x1xi32> to vector<512x256xi32>
      %305 = vector.broadcast %303 : vector<1x256xi32> to vector<512x256xi32>
      %306 = arith.cmpi eq, %304, %305 : vector<512x256xi32>
      %307 = arith.extui %306 : vector<512x256xi1> to vector<512x256xi32>
      %308 = arith.sitofp %307 : vector<512x256xi32> to vector<512x256xf32>
      %309 = arith.truncf %308 : vector<512x256xf32> to vector<512x256xbf16>
      %cst_103 = arith.constant dense<0.000000e+00> : vector<8x512xf32>
      %310 = tpu.matmul %23, %309, %cst_103 {dimension_numbers = #tpu.dot_dimension_numbers<[1], [1], [0], [0], [0, 0, 1, 0], [], []>} : vector<8x256xbf16>, vector<512x256xbf16>, vector<8x512xf32> -> vector<8x512xf32>
      %c0_104 = arith.constant 0 : index
      %c0_105 = arith.constant 0 : index
      %c0_106 = arith.constant 0 : index
      %c0_107 = arith.constant 0 : index
      %311 = vector.load %arg8[%c0_104, %c0_105, %c0_106, %c0_107] : memref<1x1x8x512xf32, #tpu.memory_space<vmem>>, vector<1x1x8x512xf32>
      %312 = vector.shape_cast %311 : vector<1x1x8x512xf32> to vector<8x512xf32>
      %313 = arith.addf %312, %310 : vector<8x512xf32>
      %314 = vector.extract_strided_slice %310 {offsets = [0, 0], sizes = [1, 512], strides = [1, 1]} : vector<8x512xf32> to vector<1x512xf32>
      %315 = vector.broadcast %301 : vector<8x1xf32> to vector<8x512xf32>
      %316 = vector.broadcast %314 : vector<1x512xf32> to vector<8x512xf32>
      %317 = arith.mulf %315, %316 : vector<8x512xf32>
      %318 = arith.addf %313, %317 : vector<8x512xf32>
      %c0_108 = arith.constant 0 : index
      %c0_109 = arith.constant 0 : index
      %c0_110 = arith.constant 0 : index
      %c0_111 = arith.constant 0 : index
      %319 = vector.load %arg8[%c0_108, %c0_109, %c0_110, %c0_111] : memref<1x1x8x512xf32, #tpu.memory_space<vmem>>, vector<1x1x8x512xf32>
      %320 = vector.shape_cast %319 : vector<1x1x8x512xf32> to vector<8x512xf32>
      %321 = vector.shape_cast %318 : vector<8x512xf32> to vector<1x1x8x512xf32>
      tpu.vector_store %arg8[%c0_108, %c0_109, %c0_110, %c0_111], %321 {strides = array<i32>} : memref<1x1x8x512xf32, #tpu.memory_space<vmem>>, vector<1x1x8x512xf32>,
      %c7_i32 = arith.constant 7 : i32
      %322 = arith.addi %28, %c7_i32 : i32
      %323 = vector.extract_strided_slice %76 {offsets = [7, 0], sizes = [1, 256], strides = [1, 1]} : vector<8x256xi32> to vector<1x256xi32>
      %324 = arith.index_cast %322 : i32 to index
      %325 = memref.load %arg2[%324] : memref<120xf32, #tpu.memory_space<smem>>
      %326 = arith.index_cast %322 : i32 to index
      %327 = memref.load %arg3[%326] : memref<120xf32, #tpu.memory_space<smem>>
      %c1_i32_112 = arith.constant 1 : i32
      %328 = vector.broadcast %c1_i32_112 : i32 to vector<8x1xi32>
      %329 = arith.cmpi eq, %25, %328 : vector<8x1xi32>
      %c2_i32_113 = arith.constant 2 : i32
      %330 = vector.broadcast %c2_i32_113 : i32 to vector<8x1xi32>
      %331 = arith.cmpi eq, %25, %330 : vector<8x1xi32>
      %cst_114 = arith.constant 0.000000e+00 : f32
      %332 = vector.broadcast %327 : f32 to vector<8x1xf32>
      %333 = vector.broadcast %cst_114 : f32 to vector<8x1xf32>
      %334 = arith.select %331, %332, %333 : vector<8x1xi1>, vector<8x1xf32>
      %335 = vector.broadcast %325 : f32 to vector<8x1xf32>
      %336 = arith.select %329, %335, %334 : vector<8x1xi1>, vector<8x1xf32>
      %c0_i32_115 = arith.constant 0 : i32
      %337 = vector.broadcast %c0_i32_115 : i32 to vector<1x256xi32>
      %338 = arith.subi %323, %337 : vector<1x256xi32>
      %339 = vector.broadcast %24 : vector<512x1xi32> to vector<512x256xi32>
      %340 = vector.broadcast %338 : vector<1x256xi32> to vector<512x256xi32>
      %341 = arith.cmpi eq, %339, %340 : vector<512x256xi32>
      %342 = arith.extui %341 : vector<512x256xi1> to vector<512x256xi32>
      %343 = arith.sitofp %342 : vector<512x256xi32> to vector<512x256xf32>
      %344 = arith.truncf %343 : vector<512x256xf32> to vector<512x256xbf16>
      %cst_116 = arith.constant dense<0.000000e+00> : vector<8x512xf32>
      %345 = tpu.matmul %23, %344, %cst_116 {dimension_numbers = #tpu.dot_dimension_numbers<[1], [1], [0], [0], [0, 0, 1, 0], [], []>} : vector<8x256xbf16>, vector<512x256xbf16>, vector<8x512xf32> -> vector<8x512xf32>
      %c0_117 = arith.constant 0 : index
      %c0_118 = arith.constant 0 : index
      %c0_119 = arith.constant 0 : index
      %c0_120 = arith.constant 0 : index
      %346 = vector.load %arg8[%c0_117, %c0_118, %c0_119, %c0_120] : memref<1x1x8x512xf32, #tpu.memory_space<vmem>>, vector<1x1x8x512xf32>
      %347 = vector.shape_cast %346 : vector<1x1x8x512xf32> to vector<8x512xf32>
      %348 = arith.addf %347, %345 : vector<8x512xf32>
      %349 = vector.extract_strided_slice %345 {offsets = [0, 0], sizes = [1, 512], strides = [1, 1]} : vector<8x512xf32> to vector<1x512xf32>
      %350 = vector.broadcast %336 : vector<8x1xf32> to vector<8x512xf32>
      %351 = vector.broadcast %349 : vector<1x512xf32> to vector<8x512xf32>
      %352 = arith.mulf %350, %351 : vector<8x512xf32>
      %353 = arith.addf %348, %352 : vector<8x512xf32>
      %c0_121 = arith.constant 0 : index
      %c0_122 = arith.constant 0 : index
      %c0_123 = arith.constant 0 : index
      %c0_124 = arith.constant 0 : index
      %354 = vector.load %arg8[%c0_121, %c0_122, %c0_123, %c0_124] : memref<1x1x8x512xf32, #tpu.memory_space<vmem>>, vector<1x1x8x512xf32>
      %355 = vector.shape_cast %354 : vector<1x1x8x512xf32> to vector<8x512xf32>
      %356 = vector.shape_cast %353 : vector<8x512xf32> to vector<1x1x8x512xf32>
      tpu.vector_store %arg8[%c0_121, %c0_122, %c0_123, %c0_124], %356 {strides = array<i32>} : memref<1x1x8x512xf32, #tpu.memory_space<vmem>>, vector<1x1x8x512xf32>,
    }
    %c15_i32_7 = arith.constant 15 : i32
    return
  }
  func.func @transform_0(%arg0: i32, %arg1: i32, %arg2: memref<120xf32, #tpu.memory_space<smem>>, %arg3: memref<120xf32, #tpu.memory_space<smem>>) -> (i32, i32) {
    %c1_i32 = arith.constant 1 : i32
    %0 = arith.muli %arg0, %c1_i32 : i32
    %1 = arith.addi %0, %arg1 : i32
    %c0_i32 = arith.constant 0 : i32
    %c0_i32_0 = arith.constant 0 : i32
    return %c0_i32, %1 : i32, i32
  }
  func.func @transform_1(%arg0: i32, %arg1: i32, %arg2: memref<120xf32, #tpu.memory_space<smem>>, %arg3: memref<120xf32, #tpu.memory_space<smem>>) -> (i32, i32) {
    %c1_i32 = arith.constant 1 : i32
    %0 = arith.muli %arg0, %c1_i32 : i32
    %1 = arith.addi %0, %arg1 : i32
    %c0_i32 = arith.constant 0 : i32
    %c0_i32_0 = arith.constant 0 : i32
    return %c0_i32, %1 : i32, i32
  }
  func.func @transform_2(%arg0: i32, %arg1: i32, %arg2: memref<120xf32, #tpu.memory_space<smem>>, %arg3: memref<120xf32, #tpu.memory_space<smem>>) -> (i32, i32) {
    %c0_i32 = arith.constant 0 : i32
    %c0_i32_0 = arith.constant 0 : i32
    %c0_i32_1 = arith.constant 0 : i32
    return %c0_i32, %c0_i32_0 : i32, i32
  }
  func.func @transform_3(%arg0: i32, %arg1: i32, %arg2: memref<120xf32, #tpu.memory_space<smem>>, %arg3: memref<120xf32, #tpu.memory_space<smem>>) -> (i32, i32) {
    %c0_i32 = arith.constant 0 : i32
    %c0_i32_0 = arith.constant 0 : i32
    %c0_i32_1 = arith.constant 0 : i32
    return %c0_i32, %c0_i32_0 : i32, i32
  }
  func.func @transform_4(%arg0: i32, %arg1: i32, %arg2: memref<120xf32, #tpu.memory_space<smem>>, %arg3: memref<120xf32, #tpu.memory_space<smem>>) -> (i32, i32, i32, i32) {
    %c0_i32 = arith.constant 0 : i32
    %c0_i32_0 = arith.constant 0 : i32
    %c0_i32_1 = arith.constant 0 : i32
    %c0_i32_2 = arith.constant 0 : i32
    return %arg0, %c0_i32, %c0_i32_0, %c0_i32_1 : i32, i32, i32, i32
  }
}

</mosaic_0001>

<bundles_post_ra>
// kernel: tpu_custom_call.1
= control target key start
LH: loop header
LB: loop body
LE: loop exit
PB: predicated region body
PF: predicated region fallthrough
CT: control target
= control target key end

     0   :  { %s10636_s0 = inlined_call_operand.hbm [shape: f32[120], index: 0, kind: input, shape index: {}]   ;;  %s10637_s2 = inlined_call_operand.hbm [shape: f32[8,256], index: 2, kind: input, shape index: {}]   ;;  %s10638_s3 = inlined_call_operand.hbm [shape: f32[8,256], index: 3, kind: input, shape index: {}]   ;;  %s10639_s4 = inlined_call_operand.hbm [shape: f32[120,256], index: 4, kind: input, shape index: {}]   ;;  %s10640_s5 = inlined_call_operand.hbm [shape: f32[120,256], index: 5, kind: input, shape index: {}]   ;;  %s10641_s6 = inlined_call_operand.hbm [shape: f32[1,1,8,512], index: 6, kind: output, shape index: {}]   ;;  %s10642_s1 = inlined_call_operand.vmem [shape: f32[120], index: 1, kind: input, shape index: {}]  }
   0x1   :  { %s7078_s23 = scalar_lea.hbm %s10636_s0, 16 }
   0x2   :  { %p7079_p0 = scmp.ne.s32.totalorder %s10636_s0, %s7078_s23  ;;  %p7082_p1 = scmp.lt.u32.totalorder %s7078_s23, %s10636_s0 }
   0x4   :  { %p7084_p2 = pnand %p7082_p1, %p7079_p0 }
   0x6   :  { %7087 = shalt.err (!%p7084_p2)  }
   0x7   :  { %s7228_s28 = smov [#allocation3]   ;;  %s13_s9 = sshll.u32 %s10642_s1, 4  ;;  %s14_s9 = int_to_ptr.vmem [resolvable:$true] %s13_s9 }
   0x8   :  { %12 = dma.hbm_to_smem %s10636_s0, 16, %s7228_s28, [#allocation2] }
   0x9   :  { %s7088_s10 = scalar_lea.vmem %s14_s9, 16  ;;  %p7093_p4 = scmp.lt.s32.totalorder %s14_s9, %s14_s9 }
   0xa   :  { %p7089_p3 = scmp.ne.s32.totalorder %s14_s9, %s7088_s10  ;;  %p7094_p5 = scmp.lt.s32.totalorder %s7088_s10, %s7088_s10 }
   0xc   :  { %p7095_p6 = por %p7094_p5, %p7093_p4 }
   0xe   :  { %p7096_p7 = pnand %p7095_p6, %p7089_p3 }
  0x10   :  { %7099 = shalt.err (!%p7096_p7)  }
  0x11   :  { %s7229_s11 = smov [#allocation4]  }
  0x12   :  { %16 = dma.vmem_to_smem %s14_s9, 16, %s7229_s11, [#allocation2] }
  0x13   :  { %7214 = dma.done.wait [#allocation2], 32 }
  0x14   :  { %7215 = vsyncadd [#allocation2], 4294967264 }
  0x15   :  { %18 = sfence }
  0x16   :  { %19 = vsyncpa [#allocation6], 0 }
  0x17   :  { %20 = vsyncpa [#allocation9], 0 }
  0x18   :  { %21 = vsyncpa [#allocation12], 0 }
  0x19   :  { %22 = vsyncpa [#allocation7], 0  ;;  %s7230_s0 = smov [#allocation8]   ;;  %s7231_s1 = smov [#allocation5]  }
  0x1a   :  { %s47_s12 = sshll.u32 %s7230_s0, 4  ;;  %s33_s13 = sshll.u32 %s7231_s1, 4  ;;  %s48_s12 = int_to_ptr.vmem [resolvable:$true] %s47_s12  ;;  %s34_s13 = int_to_ptr.vmem [resolvable:$true] %s33_s13 }
  0x1b   :  { %s7100_s16 = scalar_lea.hbm %s10638_s3, 256 }
  0x1c   :  { %p7101_p8 = scmp.ne.s32.totalorder %s10638_s3, %s7100_s16  ;;  %p7104_p9 = scmp.lt.u32.totalorder %s7100_s16, %s10638_s3 }
  0x1e   :  { %p7106_p10 = pnand %p7104_p9, %p7101_p8 }
  0x20   :  { %7109 = shalt.err (!%p7106_p10)
}
  0x21   :  { %s7110_s21 = scalar_lea.vmem %s48_s12, 256  ;;  %p7115_p12 = scmp.lt.s32.totalorder %s48_s12, %s48_s12 }
  0x22   :  { %p7111_p11 = scmp.ne.s32.totalorder %s48_s12, %s7110_s21  ;;  %p7116_p13 = scmp.lt.s32.totalorder %s7110_s21, %s7110_s21 }
  0x24   :  { %p7117_p0 = por %p7116_p13, %p7115_p12 }
  0x26   :  { %p7118_p1 = pnand %p7117_p0, %p7111_p11 }
  0x28   :  { %7121 = shalt.err (!%p7118_p1)
}
  0x29   :  { %50 = dma.hbm_to_vmem [thread:$0]  %s10638_s3, 256, %s48_s12, [#allocation9]  }
  0x2a   :  { %s7122_s26 = scalar_lea.hbm %s10637_s2, 256 }
  0x2b   :  { %p7123_p2 = scmp.ne.s32.totalorder %s10637_s2, %s7122_s26  ;;  %p7126_p3 = scmp.lt.u32.totalorder %s7122_s26, %s10637_s2 }
  0x2d   :  { %p7128_p4 = pnand %p7126_p3, %p7123_p2 }
  0x2f   :  { %7131 = shalt.err (!%p7128_p4)
}
  0x30   :  { %s7132_s7 = scalar_lea.vmem %s34_s13, 256  ;;  %p7137_p6 = scmp.lt.s32.totalorder %s34_s13, %s34_s13 }
  0x31   :  { %p7133_p5 = scmp.ne.s32.totalorder %s34_s13, %s7132_s7  ;;  %p7138_p7 = scmp.lt.s32.totalorder %s7132_s7, %s7132_s7 }
  0x33   :  { %p7139_p8 = por %p7138_p7, %p7137_p6 }
  0x35   :  { %p7140_p9 = pnand %p7139_p8, %p7133_p5 }
  0x37   :  { %7143 = shalt.err (!%p7140_p9)
}
  0x38   :  { %36 = dma.hbm_to_vmem [thread:$0]  %s10637_s2, 256, %s34_s13, [#allocation6]  }
  0x39   :  { %s7232_s9 = smov [#allocation10]   ;;  %s7144_s12 = scalar_lea.hbm %s10639_s4, 3840 }
  0x3a   :  { %s56_s10 = sshll.u32 %s7232_s9, 4  ;;  %p7145_p10 = scmp.ne.s32.totalorder %s10639_s4, %s7144_s12  ;;  %s57_s10 = int_to_ptr.vmem [resolvable:$true] %s56_s10 }
  0x3b   :  { %p7148_p11 = scmp.lt.u32.totalorder %s7144_s12, %s10639_s4 }
  0x3d   :  { %p7150_p12 = pnand %p7148_p11, %p7145_p10 }
  0x3f   :  { %7153 = shalt.err (!%p7150_p12)
}
  0x40   :  { %s7154_s17 = scalar_lea.vmem %s57_s10, 3840  ;;  %p7159_p0 = scmp.lt.s32.totalorder %s57_s10, %s57_s10 }
  0x41   :  { %p7155_p13 = scmp.ne.s32.totalorder %s57_s10, %s7154_s17  ;;  %p7160_p1 = scmp.lt.s32.totalorder %s7154_s17, %s7154_s17 }
  0x43   :  { %p7161_p2 = por %p7160_p1, %p7159_p0 }
  0x45   :  { %p7162_p3 = pnand %p7161_p2, %p7155_p13 }
  0x47   :  { %7165 = shalt.err (!%p7162_p3)
}
  0x48   :  { %s7233_s2 = smov 256   ;;  %s7234_s13 = smov 16  }
  0x49   :  { %62 = dma.hbm_to_vmem [thread:$0]  %s10639_s4, 3840, %s57_s10, [#allocation9], %s7233_s2, %s7233_s2, %s7234_s13  }
  0x4a   :  { %s7235_s20 = smov [#allocation11]   ;;  %s7166_s24 = scalar_lea.hbm %s10640_s5, 3840 }
  0x4b   :  { %s68_s21 = sshll.u32 %s7235_s20, 4  ;;  %p7167_p4 = scmp.ne.s32.totalorder %s10640_s5, %s7166_s24  ;;  %s69_s21 = int_to_ptr.vmem [resolvable:$true] %s68_s21 }
  0x4c   :  { %p7170_p5 = scmp.lt.u32.totalorder %s7166_s24, %s10640_s5 }
  0x4e   :  { %p7172_p6 = pnand %p7170_p5, %p7167_p4 }
  0x50   :  { %7175 = shalt.err (!%p7172_p6)
}
  0x51   :  { %s7176_s29 = scalar_lea.vmem %s69_s21, 3840  ;;  %p7181_p8 = scmp.lt.s32.totalorder %s69_s21, %s69_s21 }
  0x52   :  { %p7177_p7 = scmp.ne.s32.totalorder %s69_s21, %s7176_s29  ;;  %p7182_p9 = scmp.lt.s32.totalorder %s7176_s29, %s7176_s29 }
  0x54   :  { %p7183_p10 = por %p7182_p9, %p7181_p8 }
  0x56   :  { %p7184_p11 = pnand %p7183_p10, %p7177_p7 }
  0x58   :  { %7187 = shalt.err (!%p7184_p11)
}
  0x59   :  { %74 = dma.hbm_to_vmem [thread:$0]  %s10640_s5, 3840, %s69_s21, [#allocation12], %s7233_s2, %s7233_s2, %s7234_s13  }
  0x5a   :  { %7216 = dma.done.wait [#allocation6], 256  }
  0x5b   :  { %7217 = vsyncadd [#allocation6], 4294967040 }
  0x5c   :  { %7218 = dma.done.wait [#allocation9], 4096  }
  0x5d   :  { %7219 = vsyncadd [#allocation9], 4294963200 }
  0x5e   :  { %7220 = dma.done.wait [#allocation12], 3840  }
  0x5f   :  { %7221 = vsyncadd [#allocation12], 4294963456  ;;  %v127_v0 = vlaneseq  ;;  %v7236_v1 = vmov 0.0   ;;  %v7377_v15 = vld [vmem:[#allocation5] sm:$0xff]  ;;  %v7379_v16 = vld [vmem:[#allocation5 + $0x8] sm:$0xff]  ;;  %v7237_v24 = vmov 0  }
  0x60   :  { %95 = vst [vmem:[#allocation13] sm:$0xff] %v7236_v1  ;;  %96 = vst [vmem:[#allocation13 + $0x8] sm:$0xff] %v7236_v1  ;;  %v123_v17 = vld [vmem:[#allocation8] sm:$0xff]  ;;  %vm101_vm0 = vcmp.gt.f32.partialorder %v7377_v15, 0.5  ;;  %vm102_vm1 = vcmp.gt.f32.partialorder %v7379_v16, 0.5  ;;  %v103_v21 = vadd.f32 0.5, %v7377_v15 }
  0x61   :  { %97 = vst [vmem:[#allocation13 + $0x10] sm:$0xff] %v7236_v1  ;;  %98 = vst [vmem:[#allocation13 + $0x18] sm:$0xff] %v7236_v1  ;;  %v7339_v2 = vshrl.u32 %v127_v0, 7  ;;  %v104_v22 = vadd.f32 0.5, %v7379_v16  ;;  %v124_v23 = vld [vmem:[#allocation8 + $0x8] sm:$0xff]  ;;  %v115_v25 = vsel %vm101_vm0, 1, %v7237_v24  ;;  %v7394_v27 = vpack.c.bf16 %v123_v17, %v123_v17 }
  0x62   :  { %10884 = vst [vmem:[#allocation32_spill] sm:$0xff] %v7377_v15  ;;  %10885 = vst [vmem:[#allocation33_spill] sm:$0xff] %v7379_v16  ;;  %v116_v26 = vsel %vm102_vm1, 1, %v7237_v24  ;;  %v7396_v28 = vpack.c.bf16 %v124_v23, %v124_v23  ;;  %v105_v29 = vfloor.f32 %v103_v21  ;;  %v117_v31 = vrot.slane %v115_v25, 4  ;;  %s7574_s5 = smov 0  }
  0x63   :  { %10871 = vst [vmem:[#allocation19_spill] sm:$0xff] %v7339_v2  ;;  %v7342_v3 = vadd.s32 8, %v7339_v2  ;;  %v7345_v4 = vadd.s32 16, %v7339_v2  ;;  %v7348_v5 = vadd.s32 24, %v7339_v2  ;;  %v7351_v6 = vadd.s32 32, %v7339_v2  ;;  %10889 = vst [vmem:[#allocation37_spill] sm:$0xff] %v7394_v27 }
  0x64   :  { %v7354_v7 = vadd.s32 40, %v7339_v2  ;;  %v7357_v8 = vadd.s32 48, %v7339_v2  ;;  %v7360_v9 = vadd.s32 56, %v7339_v2  ;;  %v7363_v10 = vadd.s32 64, %v7339_v2  ;;  %10890 = vst [vmem:[#allocation38_spill] sm:$0xff] %v7396_v28 }
  0x65   :  { %10872 = vst [vmem:[#allocation20_spill] sm:$0xff] %v7342_v3  ;;  %10873 = vst [vmem:[#allocation21_spill] sm:$0xff] %v7345_v4  ;;  %v7366_v11 = vadd.s32 72, %v7339_v2  ;;  %v7369_v12 = vadd.s32 80, %v7339_v2  ;;  %v7372_v13 = vadd.s32 88, %v7339_v2  ;;  %v7375_v14 = vadd.s32 96, %v7339_v2 }
  0x66   :  { %10874 = vst [vmem:[#allocation22_spill] sm:$0xff] %v7348_v5  ;;  %10875 = vst [vmem:[#allocation23_spill] sm:$0xff] %v7351_v6  ;;  %v7382_v18 = vadd.s32 104, %v7339_v2  ;;  %v7385_v19 = vadd.s32 112, %v7339_v2  ;;  %v7388_v20 = vadd.s32 120, %v7339_v2  ;;  %v106_v30 = vfloor.f32 %v104_v22 }
  0x67   :  { %10876 = vst [vmem:[#allocation24_spill] sm:$0xff] %v7354_v7  ;;  %10877 = vst [vmem:[#allocation25_spill] sm:$0xff] %v7357_v8  ;;  %v118_v32 = vrot.slane %v116_v26, 4  ;;  %v7399_v33 = vadd.s32 128, %v7339_v2  ;;  %v7402_v34 = vadd.s32 136, %v7339_v2  ;;  %v7405_v35 = vadd.s32 144, %v7339_v2 }
  0x68   :  { %10878 = vst [vmem:[#allocation26_spill] sm:$0xff] %v7360_v9  ;;  %10879 = vst [vmem:[#allocation27_spill] sm:$0xff] %v7363_v10  ;;  %v7408_v36 = vadd.s32 152, %v7339_v2  ;;  %v7045_v37 = vtrunc.f32 %v105_v29  ;;  %v7047_v38 = vtrunc.f32 %v106_v30  ;;  %vm7410_vm2 = vcmp.ne.s32.totalorder %v117_v31, 0 }
  0x69   :  { %10880 = vst [vmem:[#allocation28_spill] sm:$0xff] %v7366_v11  ;;  %10881 = vst [vmem:[#allocation29_spill] sm:$0xff] %v7369_v12  ;;  %v10895_v39 = vmov 0  ;;  %vm7414_vm3 = vcmp.ne.s32.totalorder %v118_v32, 0  ;;  %v10898_v40 = vmov 0  ;;  %v7419_v41 = vadd.s32 160, %v7339_v2 }
  0x6a   :  { %10882 = vst [vmem:[#allocation30_spill] sm:$0xff] %v7372_v13  ;;  %10883 = vst [vmem:[#allocation31_spill] sm:$0xff] %v7375_v14  ;;  %v10896_v39 = vsel %vm7410_vm2, 4294967295, %v10895_v39  ;;  %v10899_v40 = vsel %vm7414_vm3, 4294967295, %v10898_v40  ;;  %v7422_v42 = vadd.s32 168, %v7339_v2  ;;  %v7425_v43 = vadd.s32 176, %v7339_v2 }
  0x6b   :  { %10886 = vst [vmem:[#allocation34_spill] sm:$0xff] %v7382_v18  ;;  %10887 = vst [vmem:[#allocation35_spill] sm:$0xff] %v7385_v19  ;;  %v7428_v44 = vadd.s32 184, %v7339_v2  ;;  %v7430_v45 = vcvt.f32.s32 %v7045_v37  ;;  %v7432_v46 = vcvt.f32.s32 %v7047_v38  ;;  %v7435_v47 = vadd.s32 192, %v7339_v2 }
  0x6c   :  { %10888 = vst [vmem:[#allocation36_spill] sm:$0xff] %v7388_v20  ;;  %10891 = vst [vmem:[#allocation39_spill] sm:$0xff] %v7399_v33  ;;  %v7438_v48 = vadd.s32 200, %v7339_v2  ;;  %v7441_v49 = vadd.s32 208, %v7339_v2  ;;  %v7444_v50 = vadd.s32 216, %v7339_v2  ;;  %v7447_v51 = vadd.s32 224, %v7339_v2 }
  0x6d   :  { %10892 = vst [vmem:[#allocation40_spill] sm:$0xff] %v7402_v34  ;;  %10893 = vst [vmem:[#allocation41_spill] sm:$0xff] %v7405_v35  ;;  %v7450_v52 = vadd.s32 232, %v7339_v2  ;;  %vm109_vm4 = vcmp.ge.s32.totalorder %v7430_v45, 0  ;;  %vm110_vm5 = vcmp.ge.s32.totalorder %v7432_v46, 0  ;;  %vm111_vm6 = vcmp.lt.s32.totalorder %v7430_v45, 8 }
  0x6e   :  { %10894 = vst [vmem:[#allocation42_spill] sm:$0xff] %v7408_v36  ;;  %10897 = vst [vmem:[#allocation43_spill] sm:$0xff] %v10896_v39  ;;  %vm112_vm7 = vcmp.lt.s32.totalorder %v7432_v46, 8  ;;  %v10913_v53 = vmov 0  ;;  %v7461_v54 = vadd.s32 240, %v7339_v2  ;;  %v7464_v55 = vadd.s32 248, %v7339_v2 }
  0x6f   :  { %10900 = vst [vmem:[#allocation44_spill] sm:$0xff] %v10899_v40  ;;  %10901 = vst [vmem:[#allocation45_spill] sm:$0xff] %v7419_v41  ;;  %v7467_v56 = vadd.s32 256, %v7339_v2  ;;  %v7470_v57 = vadd.s32 264, %v7339_v2  ;;  %v10918_v58 = vmov 0  ;;  %v7477_v59 = vadd.s32 272, %v7339_v2 }
  0x70   :  { %10902 = vst [vmem:[#allocation46_spill] sm:$0xff] %v7422_v42  ;;  %10903 = vst [vmem:[#allocation47_spill] sm:$0xff] %v7425_v43  ;;  %v7480_v60 = vadd.s32 280, %v7339_v2  ;;  %v7483_v61 = vadd.s32 288, %v7339_v2  ;;  %v7486_v62 = vadd.s32 296, %v7339_v2  ;;  %v7493_v63 = vadd.s32 304, %v7339_v2 }
  0x71   :  { %10904 = vst [vmem:[#allocation48_spill] sm:$0xff] %v7428_v44  ;;  %10905 = vst [vmem:[#allocation49_spill] sm:$0xff] %v7430_v45  ;;  %v7496_v0 = vadd.s32 312, %v7339_v2  ;;  %v7499_v1 = vadd.s32 320, %v7339_v2  ;;  %v7502_v17 = vadd.s32 328, %v7339_v2  ;;  %v7509_v21 = vadd.s32 336, %v7339_v2 }
  0x72   :  { %10906 = vst [vmem:[#allocation50_spill] sm:$0xff] %v7432_v46  ;;  %10907 = vst [vmem:[#allocation51_spill] sm:$0xff] %v7435_v47  ;;  %v7512_v22 = vadd.s32 344, %v7339_v2  ;;  %v7515_v23 = vadd.s32 352, %v7339_v2  ;;  %v7518_v24 = vadd.s32 360, %v7339_v2  ;;  %v7521_v25 = vadd.s32 368, %v7339_v2 }
  0x73   :  { %10908 = vst [vmem:[#allocation52_spill] sm:$0xff] %v7438_v48  ;;  %10909 = vst [vmem:[#allocation53_spill] sm:$0xff] %v7441_v49  ;;  %v7524_v26 = vadd.s32 376, %v7339_v2  ;;  %v7527_v29 = vadd.s32 384, %v7339_v2  ;;  %v7530_v30 = vadd.s32 392, %v7339_v2  ;;  %v7533_v31 = vadd.s32 400, %v7339_v2 }
  0x74   :  { %10910 = vst [vmem:[#allocation54_spill] sm:$0xff] %v7444_v50  ;;  %10911 = vst [vmem:[#allocation55_spill] sm:$0xff] %v7447_v51  ;;  %v7536_v32 = vadd.s32 408, %v7339_v2  ;;  %v7539_v37 = vadd.s32 416, %v7339_v2  ;;  %v7542_v38 = vadd.s32 424, %v7339_v2  ;;  %v7545_v27 = vadd.s32 432, %v7339_v2 }
  0x75   :  { %10912 = vst [vmem:[#allocation56_spill] sm:$0xff] %v7450_v52  ;;  %vm7456_vm8 = vmand %vm109_vm4, %vm111_vm6  ;;  %v7554_v52 = vadd.s32 456, %v7339_v2  ;;  %v7557_v51 = vadd.s32 464, %v7339_v2  ;;  %v7560_v50 = vadd.s32 472, %v7339_v2  ;;  %v7563_v49 = vadd.s32 480, %v7339_v2 }
  0x76   :  { %v10914_v53 = vsel %vm7456_vm8, 4294967295, %v10913_v53  ;;  %10916 = vst [vmem:[#allocation58_spill] sm:$0xff] %v7461_v54  ;;  %10917 = vst [vmem:[#allocation59_spill] sm:$0xff] %v7464_v55  ;;  %v7548_v55 = vadd.s32 440, %v7339_v2  ;;  %v7551_v54 = vadd.s32 448, %v7339_v2  ;;  %v7566_v48 = vadd.s32 488, %v7339_v2 }
  0x77   :  { %10915 = vst [vmem:[#allocation57_spill] sm:$0xff] %v10914_v53  ;;  %vm7472_vm9 = vmand %vm110_vm5, %vm112_vm7  ;;  %v7569_v47 = vadd.s32 496, %v7339_v2 }
  0x78   :  { %v10919_v58 = vsel %vm7472_vm9, 4294967295, %v10918_v58  ;;  %10921 = vst [vmem:[#allocation61_spill] sm:$0xff] %v7496_v0  ;;  %10922 = vst [vmem:[#allocation62_spill] sm:$0xff] %v7499_v1 }
  0x79   :  { %10920 = vst [vmem:[#allocation60_spill] sm:$0xff] %v10919_v58  ;;  %10923 = vst [vmem:[#allocation63_spill] sm:$0xff] %v7502_v17 }
  0x7a   :  { %10924 = vst [vmem:[#allocation64_spill] sm:$0xff] %v7509_v21  ;;  %10925 = vst [vmem:[#allocation65_spill] sm:$0xff] %v7512_v22 }
  0x7b   :  { %10926 = vst [vmem:[#allocation66_spill] sm:$0xff] %v7515_v23  ;;  %10927 = vst [vmem:[#allocation67_spill] sm:$0xff] %v7518_v24 }
  0x7c   :  { %10928 = vst [vmem:[#allocation68_spill] sm:$0xff] %v7521_v25  ;;  %10929 = vst [vmem:[#allocation69_spill] sm:$0xff] %v7524_v26 }
  0x7d   :  { %10930 = vst [vmem:[#allocation70_spill] sm:$0xff] %v7527_v29  ;;  %10931 = vst [vmem:[#allocation71_spill] sm:$0xff] %v7530_v30 }
  0x7e   :  { %10932 = vst [vmem:[#allocation72_spill] sm:$0xff] %v7533_v31  ;;  %10933 = vst [vmem:[#allocation73_spill] sm:$0xff] %v7536_v32 }
  0x7f   :  { %10934 = vst [vmem:[#allocation74_spill] sm:$0xff] %v7539_v37  ;;  %10935 = vst [vmem:[#allocation75_spill] sm:$0xff] %v7542_v38 }
  0x80   :  { %10936 = vst [vmem:[#allocation76_spill] sm:$0xff] %v7545_v27  ;;  %10937 = vst [vmem:[#allocation77_spill] sm:$0xff] %v7548_v55 }
  0x81   :  { %10938 = vst [vmem:[#allocation78_spill] sm:$0xff] %v7551_v54  ;;  %10939 = vst [vmem:[#allocation79_spill] sm:$0xff] %v7554_v52  ;;  %v7572_v54 = vadd.s32 504, %v7339_v2 }
  0x82   :  { %10940 = vst [vmem:[#allocation80_spill] sm:$0xff] %v7557_v51  ;;  %10941 = vst [vmem:[#allocation81_spill] sm:$0xff] %v7560_v50 }
  0x83   :  { %10942 = vst [vmem:[#allocation82_spill] sm:$0xff] %v7563_v49  ;;  %10943 = vst [vmem:[#allocation83_spill] sm:$0xff] %v7566_v48 }
  0x84   :  { %10944 = vst [vmem:[#allocation84_spill] sm:$0xff] %v7569_v47  ;;  %10945 = vst [vmem:[#allocation85_spill] sm:$0xff] %v7572_v54 }
  0x85 LB: > { %v10946_v2 = vld [vmem:[#allocation19_spill] sm:$0xff]  ;;  %v10947_v9 = vld [vmem:[#allocation26_spill] sm:$0xff]  ;;  %v10948_v8 = vld [vmem:[#allocation25_spill] sm:$0xff]  ;;  %s7588_s7 = sshll.u32 %s7226_s5, 3  ;;  %s197_s5 = sadd.s32 1, %s7226_s5   ;;  %s7226_s5 = sphi %s7574_s5, %s197_s5  }
  0x86   : > { %v10949_v7 = vld [vmem:[#allocation24_spill] sm:$0xff]  ;;  %v10950_v6 = vld [vmem:[#allocation23_spill] sm:$0xff]  ;;  %v10951_v5 = vld [vmem:[#allocation22_spill] sm:$0xff]  ;;  %v7580_v50 = vsub.s32 3, %v10946_v2  ;;  %v7583_v49 = vsub.s32 4, %v10946_v2  ;;  %v7591_v54 = vsub.s32 0, %v10946_v2 }
  0x87   : > { %v10952_v4 = vld [vmem:[#allocation21_spill] sm:$0xff]  ;;  %v10953_v3 = vld [vmem:[#allocation20_spill] sm:$0xff]  ;;  %v10955_v10 = vld [vmem:[#allocation27_spill] sm:$0xff]  ;;  %v7594_v47 = vsub.s32 2, %v10946_v2  ;;  %s199_s3 = sshra.s32 %s7588_s7, 3  ;;  %s8834_s11 = sld [smem:[#allocation4 + %s7588_s7]] }
  0x88   : > { %v10954_v0 = vld [vmem:[#allocation61_spill] sm:$0xff]  ;;  %v10956_v11 = vld [vmem:[#allocation28_spill] sm:$0xff]  ;;  %v10957_v1 = vld [vmem:[#allocation62_spill] sm:$0xff]  ;;  %10966 = vst [vmem:[#allocation86_spill] sm:$0xff] %v7580_v50  ;;  %s7043_s8 = sshll.u32 %s199_s3, 4  ;;  %s316_s0 = sld [smem:[#allocation3 + %s7588_s7]] }
  0x89   : > { %v10958_v17 = vld [vmem:[#allocation63_spill] sm:$0xff]  ;;  %v10959_v12 = vld [vmem:[#allocation29_spill] sm:$0xff]  ;;  %v10960_v13 = vld [vmem:[#allocation30_spill] sm:$0xff]  ;;  %10967 = vst [vmem:[#allocation87_spill] sm:$0xff] %v7583_v49  ;;  %s203_s9 = scalar_lea.vmem [#allocation10], %s7043_s8  ;;  %s207_s10 = scalar_lea.vmem [#allocation11], %s7043_s8 }
  0x8a   : > { %v10961_v21 = vld [vmem:[#allocation64_spill] sm:$0xff]  ;;  %v10962_v22 = vld [vmem:[#allocation65_spill] sm:$0xff]  ;;  %v10965_v28 = vld [vmem:[#allocation38_spill] sm:$0xff]  ;;  %10968 = vst [vmem:[#allocation88_spill] sm:$0xff] %v7591_v54  ;;  %s898_s12 = sadd.s32 1, %s7588_s7  ;;  %s1479_s15 = sadd.s32 2, %s7588_s7 }
  0x8b   : > { %v10963_v15 = vld [vmem:[#allocation32_spill] sm:$0xff]  ;;  %v10964_v16 = vld [vmem:[#allocation33_spill] sm:$0xff]  ;;  %812 = vmatprep.mubr.bf16.mxu0 %v10965_v28  ;;  %853 = vmatprep.mubr.bf16.mxu1 %v10965_v28  ;;  %10969 = vst [vmem:[#allocation89_spill] sm:$0xff] %v7594_v47  ;;  %v204_v38 = vld [vmem:[%s203_s9] sm:$0xff]  ;;  %s8865_s1 = sld [smem:[#allocation4 + %s898_s12]]  ;;  %s2060_s2 = sadd.s32 3, %s7588_s7 }
  0x8c   : > { %v217_v48 = vrot.slane %v10964_v16, %v7580_v50  ;;  %v227_v51 = vrot.slane %v10964_v16, %v7583_v49  ;;  %v213_v28 = vrot.slane %v10963_v15, %v7580_v50  ;;  %v223_v52 = vrot.slane %v10963_v15, %v7583_v49  ;;  %v205_v55 = vld [vmem:[%s203_s9 + $0x8] sm:$0xff]  ;;  %v208_v31 = vld [vmem:[%s207_s10] sm:$0xff]  ;;  %v10978_v46 = vld [vmem:[#allocation50_spill] sm:$0xff]  ;;  %s8882_s14 = sld [smem:[#allocation3 + %s898_s12]]  ;;  %s2641_s19 = sadd.s32 4, %s7588_s7 }
  0x8d   : > { %v209_v27 = vld [vmem:[%s207_s10 + $0x8] sm:$0xff]  ;;  %v239_v44 = vrot.slane %v10964_v16, %v7591_v54  ;;  %v261_v43 = vrot.slane %v10964_v16, %v7594_v47  ;;  %v235_v37 = vrot.slane %v10963_v15, %v7591_v54  ;;  %v257_v50 = vrot.slane %v10963_v15, %v7594_v47  ;;  %v10975_v39 = vld [vmem:[#allocation43_spill] sm:$0xff]  ;;  %v10979_v45 = vld [vmem:[#allocation49_spill] sm:$0xff]  ;;  %s1481_s16 = sld [smem:[#allocation4 + %s1479_s15]]  ;;  %s3222_s22 = sadd.s32 5, %s7588_s7 }
  0x8e   : > { %v219_v42 = vmul.f32 %v217_v48, %v205_v55  ;;  %v229_v41 = vmul.f32 %v227_v51, %v209_v27  ;;  %v249_v49 = vmul.f32 %v227_v51, %v205_v55  ;;  %v251_v32 = vmul.f32 %v217_v48, %v209_v27  ;;  %v10971_v40 = vld [vmem:[#allocation44_spill] sm:$0xff]  ;;  %v11004_v55 = vld [vmem:[#allocation47_spill] sm:$0xff]  ;;  %v11015_v53 = vld [vmem:[#allocation81_spill] sm:$0xff]  ;;  %s1480_s17 = sld [smem:[#allocation3 + %s1479_s15]]  ;;  %s3803_s25 = sadd.s32 6, %s7588_s7 }
  0x8f   : > { %v218_v36 = vmul.f32 %v213_v28, %v204_v38  ;;  %v228_v35 = vmul.f32 %v223_v52, %v208_v31  ;;  %v248_v30 = vmul.f32 %v223_v52, %v204_v38  ;;  %v250_v29 = vmul.f32 %v213_v28, %v208_v31  ;;  %v11016_v58 = vld [vmem:[#allocation55_spill] sm:$0xff]  ;;  %s2062_s13 = sld [smem:[#allocation4 + %s2060_s2]]  ;;  %s4384_s28 = sadd.s32 7, %s7588_s7 }
  0x90   : > { %v231_v34 = vadd.f32 %v229_v41, %v219_v42  ;;  %v253_v33 = vsub.f32 %v249_v49, %v251_v32  ;;  %v7238_v27 = vmov 0   ;;  %vm10972_vm3 = vnez %v10971_v40  ;;  %v11012_v40 = vld [vmem:[#allocation53_spill] sm:$0xff]  ;;  %s2061_s18 = sld [smem:[#allocation3 + %s2060_s2]]  ;;  %p194_p12 = scmp.ge.s32.totalorder %s197_s5, 15  }
  0x91   : > { %v230_v26 = vadd.f32 %v228_v35, %v218_v36  ;;  %v252_v16 = vsub.f32 %v248_v30, %v250_v29  ;;  %vm10973_vm11 = vmand %vm7472_vm9, %vm10972_vm3  ;;  %v7619_v35 = vsub.s32 1, %v10946_v2  ;;  %vm10976_vm2 = vnez %v10975_v39  ;;  %v11011_v39 = vld [vmem:[#allocation79_spill] sm:$0xff]  ;;  %s2643_s20 = sld [smem:[#allocation4 + %s2641_s19]]  ;;  %s7240_s30 = smov (%p194_p12), [#allocation13]  }
  0x92   : > { %v241_v25 = vsub.f32 %v239_v44, %v231_v34  ;;  %v263_v20 = vsub.f32 %v261_v43, %v253_v33  ;;  %v285_v28 = vsel %vm10973_vm11, 1, %v7238_v27  ;;  %vm10977_vm10 = vmand %vm7456_vm8, %vm10976_vm2  ;;  %s2642_s21 = sld [smem:[#allocation3 + %s2641_s19]]  ;;  %s4971_s7 = sshll.u32 (%p194_p12), %s7240_s30, 4  ;;  %s4972_s7 = int_to_ptr.vmem [resolvable:$true] %s4971_s7 }
  0x93   : > { %v240_v19 = vsub.f32 %v235_v37, %v230_v26  ;;  %v262_v24 = vsub.f32 %v257_v50, %v252_v16  ;;  %v284_v43 = vsel %vm10977_vm10, 1, %v7238_v27  ;;  %v307_v44 = vrot.slane %v10978_v46, %v7619_v35  ;;  %v10984_v27 = vld [vmem:[#allocation31_spill] sm:$0xff]  ;;  %v11014_v46 = vld [vmem:[#allocation80_spill] sm:$0xff]  ;;  %s3224_s23 = sld [smem:[#allocation4 + %s3222_s22]]  ;;  %s7188_s3 = scalar_lea.vmem (%p194_p12), %s4972_s7, 512 }
  0x94   : > { %v243_v23 = vadd.f32 0.5, %v241_v25  ;;  %v265_v18 = vadd.f32 0.5, %v263_v20  ;;  %v293_v20 = vrot.slane %v285_v28, %v7619_v35  ;;  %v289_v50 = vrot.slane %v284_v43, %v7619_v35  ;;  %v10985_v28 = vld [vmem:[#allocation34_spill] sm:$0xff]  ;;  %v10995_v43 = vld [vmem:[#allocation71_spill] sm:$0xff]  ;;  %s3223_s24 = sld [smem:[#allocation3 + %s3222_s22]]  ;;  %p7189_p13 = scmp.ne.s32.totalorder (%p194_p12), %s4972_s7, %s7188_s3 }
  0x95   : > { %v242_v15 = vadd.f32 0.5, %v240_v19  ;;  %v264_v47 = vadd.f32 0.5, %v262_v24  ;;  %s3805_s26 = sld [smem:[#allocation4 + %s3803_s25]]  ;;  %p7193_p0 = scmp.lt.s32.totalorder (%p194_p12), %s4972_s7, %s4972_s7 }
  0x96   : > { %v245_v14 = vfloor.f32 %v243_v23  ;;  %v267_v51 = vfloor.f32 %v265_v18  ;;  %vm7631_vm1 = vcmp.eq.s32.totalorder %v293_v20, 1  ;;  %vm294_vm2 = vcmp.eq.s32.totalorder %v289_v50, 1  ;;  %v10990_v20 = vld [vmem:[#allocation68_spill] sm:$0xff]  ;;  %v11002_v50 = vld [vmem:[#allocation74_spill] sm:$0xff]  ;;  %s3804_s27 = sld [smem:[#allocation3 + %s3803_s25]]  ;;  %p7194_p1 = scmp.lt.s32.totalorder (%p194_p12), %s7188_s3, %s7188_s3 }
  0x97   : > { %v244_v34 = vfloor.f32 %v242_v15  ;;  %v266_v33 = vfloor.f32 %v264_v47  ;;  %v11000_v47 = vld [vmem:[#allocation45_spill] sm:$0xff]  ;;  %s4386_s29 = sld [smem:[#allocation4 + %s4384_s28]] }
  0x98   : > { %v7051_v36 = vtrunc.f32 %v245_v14  ;;  %v7055_v16 = vtrunc.f32 %v267_v51  ;;  %v303_v14 = vrot.slane %v10979_v45, %v7619_v35  ;;  %v10712_v51 = vmov 1.0|1.0   ;;  %v11013_v45 = vld [vmem:[#allocation54_spill] sm:$0xff]  ;;  %s4385_s4 = sld [smem:[#allocation3 + %s4384_s28]]  ;;  %p7195_p2 = por (%p194_p12), %p7194_p1, %p7193_p0 }
  0x99   : > { %v7049_v19 = vtrunc.f32 %v244_v34  ;;  %v7053_v41 = vtrunc.f32 %v266_v33  ;;  %v10986_v34 = vld [vmem:[#allocation66_spill] sm:$0xff]  ;;  %v10987_v33 = vld [vmem:[#allocation67_spill] sm:$0xff] }
  0x9a   : > { %v7052_v42 = vcvt.f32.s32 %v7051_v36  ;;  %v7056_v18 = vcvt.f32.s32 %v7055_v16  ;;  %v10988_v36 = vld [vmem:[#allocation35_spill] sm:$0xff]  ;;  %v10989_v16 = vld [vmem:[#allocation36_spill] sm:$0xff]  ;;  %p7196_p3 = pnand (%p194_p12), %p7195_p2, %p7189_p13 }
  0x9b   : > { %v7050_v48 = vcvt.f32.s32 %v7049_v19  ;;  %v7054_v15 = vcvt.f32.s32 %v7053_v41  ;;  %v10991_v19 = vld [vmem:[#allocation69_spill] sm:$0xff]  ;;  %v10992_v41 = vld [vmem:[#allocation39_spill] sm:$0xff] }
  0x9c   : > { %vm271_vm12 = vcmp.ge.s32.totalorder %v7052_v42, 0  ;;  %vm273_vm13 = vcmp.lt.s32.totalorder %v7052_v42, 8  ;;  %vm277_vm14 = vcmp.ge.s32.totalorder %v7056_v18, 0  ;;  %vm281_vm15 = vcmp.lt.s32.totalorder %v7056_v18, 8 }
  0x9d   : > { %vm275_vm0 = vmand %vm271_vm12, %vm273_vm13  ;;  %v299_v49 = vmul.u32 8, %v7052_v42  ;;  %vm270_vm5 = vcmp.ge.s32.totalorder %v7050_v48, 0  ;;  %vm272_vm6 = vcmp.lt.s32.totalorder %v7050_v48, 8  ;;  %v298_v52 = vmul.u32 8, %v7050_v48  ;;  %v10993_v42 = vld [vmem:[#allocation40_spill] sm:$0xff]  ;;  %v10997_v48 = vld [vmem:[#allocation42_spill] sm:$0xff] }
  0x9e   : > { %vm279_vm4 = vmand %vm275_vm0, %vm277_vm14  ;;  %vm276_vm10 = vcmp.ge.s32.totalorder %v7054_v15, 0  ;;  %vm280_vm13 = vcmp.lt.s32.totalorder %v7054_v15, 8 }
  0x9f   : > { %vm7636_vm7 = vmand %vm279_vm4, %vm281_vm15  ;;  %v309_v23 = vadd.s32 %v307_v44, %v299_v49  ;;  %v308_v24 = vadd.s32 %v303_v14, %v298_v52  ;;  %v10996_v44 = vld [vmem:[#allocation41_spill] sm:$0xff]  ;;  %v11001_v49 = vld [vmem:[#allocation46_spill] sm:$0xff] }
  0xa0   : > { %vm297_vm12 = vmand %vm7636_vm7, %vm7631_vm1  ;;  %v10999_v14 = vld [vmem:[#allocation73_spill] sm:$0xff]  ;;  %v11003_v52 = vld [vmem:[#allocation75_spill] sm:$0xff] }
  0xa1   : > { %v311_v25 = vmul.u32 8, %v309_v23  ;;  %vm274_vm11 = vmand %vm270_vm5, %vm272_vm6  ;;  %v310_v26 = vmul.u32 8, %v308_v24  ;;  %v11005_v23 = vld [vmem:[#allocation48_spill] sm:$0xff] }
  0xa2   : > { %vm278_vm14 = vmand %vm274_vm11, %vm276_vm10  ;;  %v11006_v24 = vld [vmem:[#allocation76_spill] sm:$0xff] }
  0xa3   : > { %v313_v29 = vadd.s32 %v7056_v18, %v311_v25  ;;  %vm282_vm0 = vmand %vm278_vm14, %vm280_vm13  ;;  %v312_v30 = vadd.s32 %v7054_v15, %v310_v26  ;;  %v10994_v18 = vld [vmem:[#allocation70_spill] sm:$0xff]  ;;  %v10998_v15 = vld [vmem:[#allocation72_spill] sm:$0xff] }
  0xa4   : > { %vm296_vm15 = vmand %vm282_vm0, %vm294_vm2  ;;  %v11007_v25 = vld [vmem:[#allocation77_spill] sm:$0xff]  ;;  %v11008_v26 = vld [vmem:[#allocation51_spill] sm:$0xff] }
  0xa5   : > { %v7644_v31 = vsel %vm297_vm12, %v313_v29, 4294967295  ;;  %v7650_v37 = vsel %vm296_vm15, %v312_v30, 4294967295  ;;  %v11009_v29 = vld [vmem:[#allocation52_spill] sm:$0xff]  ;;  %v11010_v30 = vld [vmem:[#allocation78_spill] sm:$0xff] }
  0xa6   : > { %v7648_v32 = vrot.slane %v7644_v31, %v7591_v54  ;;  %v7654_v38 = vrot.slane %v7650_v37, %v7591_v54  ;;  %v11017_v54 = vld [vmem:[#allocation56_spill] sm:$0xff] }
  0xa8   : > { %vm333_vm10 = vcmp.eq.s32.totalorder %v10946_v2, %v7648_v32  ;;  %vm335_vm11 = vcmp.eq.s32.totalorder %v10953_v3, %v7648_v32  ;;  %vm397_vm2 = vcmp.eq.s32.totalorder %v7467_v56, %v7648_v32  ;;  %vm399_vm1 = vcmp.eq.s32.totalorder %v7470_v57, %v7648_v32 }
  0xa9   : > { %vm5123_vm4 = vmpackc.low %vm335_vm11, %vm333_vm10  ;;  %vm332_vm5 = vcmp.eq.s32.totalorder %v10946_v2, %v7654_v38  ;;  %vm334_vm6 = vcmp.eq.s32.totalorder %v10953_v3, %v7654_v38  ;;  %vm396_vm7 = vcmp.eq.s32.totalorder %v7467_v56, %v7654_v38  ;;  %vm398_vm12 = vcmp.eq.s32.totalorder %v7470_v57, %v7654_v38 }
  0xaa   : > { %5124 = vmatprep.subr.msk.bf16.mxu0 %vm5123_vm4, %v10712_v51  ;;  %vm5187_vm13 = vmpackc.low %vm399_vm1, %vm397_vm2  ;;  %vm337_vm14 = vcmp.eq.s32.totalorder %v10952_v4, %v7648_v32  ;;  %vm339_vm0 = vcmp.eq.s32.totalorder %v10951_v5, %v7648_v32  ;;  %vm401_vm10 = vcmp.eq.s32.totalorder %v7477_v59, %v7648_v32  ;;  %vm403_vm11 = vcmp.eq.s32.totalorder %v7480_v60, %v7648_v32 }
  0xab   : > { %5188 = vmatprep.subr.msk.bf16.mxu1 %vm5187_vm13, %v10712_v51  ;;  %vm5125_vm15 = vmpackc.low %vm334_vm6, %vm332_vm5  ;;  %vm336_vm1 = vcmp.eq.s32.totalorder %v10952_v4, %v7654_v38  ;;  %vm338_vm4 = vcmp.eq.s32.totalorder %v10951_v5, %v7654_v38  ;;  %vm400_vm6 = vcmp.eq.s32.totalorder %v7477_v59, %v7654_v38  ;;  %vm402_vm13 = vcmp.eq.s32.totalorder %v7480_v60, %v7654_v38 }
  0xac   : > { %5126 = vmatpush1.bf16.xpose.msk.msra.mxu0 %vm5125_vm15, %v10712_v51  ;;  %vm5189_vm3 = vmpackc.low %vm398_vm12, %vm396_vm7  ;;  %vm343_vm7 = vcmp.eq.s32.totalorder %v10949_v7, %v7648_v32 }
  0xad   : > { %5190 = vmatpush1.bf16.xpose.msk.msra.mxu1 %vm5189_vm3, %v10712_v51  ;;  %vm5127_vm2 = vmpackc.low %vm339_vm0, %vm337_vm14  ;;  %vm341_vm3 = vcmp.eq.s32.totalorder %v10950_v6, %v7648_v32  ;;  %vm405_vm14 = vcmp.eq.s32.totalorder %v7483_v61, %v7648_v32  ;;  %vm407_vm0 = vcmp.eq.s32.totalorder %v7486_v62, %v7648_v32 }
  0xae   : > { %5128 = vmatprep.subr.msk.bf16.mxu0 %vm5127_vm2, %v10712_v51  ;;  %vm5191_vm5 = vmpackc.low %vm403_vm11, %vm401_vm10  ;;  %vm340_vm2 = vcmp.eq.s32.totalorder %v10950_v6, %v7654_v38 }
  0xaf   : > { %5192 = vmatprep.subr.msk.bf16.mxu1 %vm5191_vm5, %v10712_v51  ;;  %vm5129_vm12 = vmpackc.low %vm338_vm4, %vm336_vm1  ;;  %vm342_vm1 = vcmp.eq.s32.totalorder %v10949_v7, %v7654_v38  ;;  %vm404_vm4 = vcmp.eq.s32.totalorder %v7483_v61, %v7654_v38  ;;  %vm406_vm5 = vcmp.eq.s32.totalorder %v7486_v62, %v7654_v38 }
  0xb0   : > { %vm5193_vm15 = vmpackc.low %vm402_vm13, %vm400_vm6  ;;  %vm345_vm6 = vcmp.eq.s32.totalorder %v10948_v8, %v7648_v32  ;;  %vm347_vm13 = vcmp.eq.s32.totalorder %v10947_v9, %v7648_v32 }
  0xb1   : > { %vm5131_vm10 = vmpackc.low %vm343_vm7, %vm341_vm3  ;;  %vm409_vm7 = vcmp.eq.s32.totalorder %v7493_v63, %v7648_v32 }
  0xb2   : > { %vm5195_vm11 = vmpackc.low %vm407_vm0, %vm405_vm14 }
  0xb3   : > { %vm5133_vm3 = vmpackc.low %vm342_vm1, %vm340_vm2  ;;  %vm408_vm2 = vcmp.eq.s32.totalorder %v7493_v63, %v7654_v38  ;;  %vm410_vm1 = vcmp.eq.s32.totalorder %v10954_v0, %v7654_v38 }
  0xb4   : > { %5130 = vmatpush1.bf16.xpose.msk.msra.mxu0 %vm5129_vm12, %v10712_v51  ;;  %vm411_vm12 = vcmp.eq.s32.totalorder %v10954_v0, %v7648_v32  ;;  %vm5197_vm14 = vmpackc.low %vm406_vm5, %vm404_vm4  ;;  %vm349_vm4 = vcmp.eq.s32.totalorder %v10955_v10, %v7648_v32  ;;  %vm351_vm5 = vcmp.eq.s32.totalorder %v10956_v11, %v7648_v32 }
  0xb5   : > { %5194 = vmatpush1.bf16.xpose.msk.msra.mxu1 %vm5193_vm15, %v10712_v51  ;;  %5132 = vmatprep.subr.msk.bf16.mxu0 %vm5131_vm10, %v10712_v51  ;;  %vm5135_vm0 = vmpackc.low %vm347_vm13, %vm345_vm6  ;;  %vm344_vm10 = vcmp.eq.s32.totalorder %v10948_v8, %v7654_v38  ;;  %vm413_vm13 = vcmp.eq.s32.totalorder %v10957_v1, %v7648_v32 }
  0xb6   : > { %5196 = vmatprep.subr.msk.bf16.mxu1 %vm5195_vm11, %v10712_v51  ;;  %vm5199_vm15 = vmpackc.low %vm411_vm12, %vm409_vm7  ;;  %vm346_vm11 = vcmp.eq.s32.totalorder %v10947_v9, %v7654_v38 }
  0xb7   : > { %vm5137_vm6 = vmpackc.low %vm346_vm11, %vm344_vm10  ;;  %vm412_vm10 = vcmp.eq.s32.totalorder %v10957_v1, %v7654_v38  ;;  %vm414_vm11 = vcmp.eq.s32.totalorder %v10958_v17, %v7654_v38 }
  0xb8   : > { %vm5201_vm7 = vmpackc.low %vm410_vm1, %vm408_vm2  ;;  %vm353_vm2 = vcmp.eq.s32.totalorder %v10959_v12, %v7648_v32  ;;  %vm355_vm1 = vcmp.eq.s32.totalorder %v10960_v13, %v7648_v32 }
  0xb9   : > { %vm5139_vm12 = vmpackc.low %vm351_vm5, %vm349_vm4  ;;  %vm417_vm5 = vcmp.eq.s32.totalorder %v10961_v21, %v7648_v32 }
  0xbc   : > { %5134 = vmatpush1.bf16.xpose.msk.msra.mxu0 %vm5133_vm3, %v10712_v51  ;;  %vm415_vm3 = vcmp.eq.s32.totalorder %v10958_v17, %v7648_v32 }
  0xbd   : > { %5198 = vmatpush1.bf16.xpose.msk.msra.mxu1 %vm5197_vm14, %v10712_v51  ;;  %5136 = vmatprep.subr.msk.bf16.mxu0 %vm5135_vm0, %v10712_v51  ;;  %vm5203_vm14 = vmpackc.low %vm415_vm3, %vm413_vm13  ;;  %vm348_vm0 = vcmp.eq.s32.totalorder %v10955_v10, %v7654_v38 }
  0xbe   : > { %5200 = vmatprep.subr.msk.bf16.mxu1 %vm5199_vm15, %v10712_v51  ;;  %vm350_vm15 = vcmp.eq.s32.totalorder %v10956_v11, %v7654_v38  ;;  %vm5205_vm13 = vmpackc.low %vm414_vm11, %vm412_vm10  ;;  %vm357_vm10 = vcmp.eq.s32.totalorder %v10984_v27, %v7648_v32  ;;  %vm359_vm11 = vcmp.eq.s32.totalorder %v10985_v28, %v7648_v32 }
  0xbf   : > { %vm5141_vm4 = vmpackc.low %vm350_vm15, %vm348_vm0  ;;  %vm416_vm0 = vcmp.eq.s32.totalorder %v10961_v21, %v7654_v38  ;;  %vm418_vm15 = vcmp.eq.s32.totalorder %v10962_v22, %v7654_v38 }
  0xc0   : > { %vm5143_vm3 = vmpackc.low %vm355_vm1, %vm353_vm2  ;;  %vm421_vm1 = vcmp.eq.s32.totalorder %v10986_v34, %v7648_v32 }
  0xc4   : > { %5138 = vmatpush1.bf16.xpose.msk.msra.mxu0 %vm5137_vm6, %v10712_v51  ;;  %vm419_vm6 = vcmp.eq.s32.totalorder %v10962_v22, %v7648_v32 }
  0xc5   : > { %5202 = vmatpush1.bf16.xpose.msk.msra.mxu1 %vm5201_vm7, %v10712_v51  ;;  %5140 = vmatprep.subr.msk.bf16.mxu0 %vm5139_vm12, %v10712_v51  ;;  %vm5207_vm7 = vmpackc.low %vm419_vm6, %vm417_vm5  ;;  %vm352_vm12 = vcmp.eq.s32.totalorder %v10959_v12, %v7654_v38 }
  0xc6   : > { %5204 = vmatprep.subr.msk.bf16.mxu1 %vm5203_vm14, %v10712_v51  ;;  %vm354_vm14 = vcmp.eq.s32.totalorder %v10960_v13, %v7654_v38  ;;  %vm5209_vm5 = vmpackc.low %vm418_vm15, %vm416_vm0  ;;  %vm361_vm0 = vcmp.eq.s32.totalorder %v10988_v36, %v7648_v32  ;;  %vm363_vm15 = vcmp.eq.s32.totalorder %v10989_v16, %v7648_v32 }
  0xc7   : > { %vm5145_vm2 = vmpackc.low %vm354_vm14, %vm352_vm12  ;;  %vm420_vm12 = vcmp.eq.s32.totalorder %v10986_v34, %v7654_v38  ;;  %vm422_vm14 = vcmp.eq.s32.totalorder %v10987_v33, %v7654_v38 }
  0xc8   : > { %vm5147_vm6 = vmpackc.low %vm359_vm11, %vm357_vm10  ;;  %vm425_vm11 = vcmp.eq.s32.totalorder %v10990_v20, %v7648_v32 }
  0xcc   : > { %5142 = vmatpush1.bf16.xpose.msk.msra.mxu0 %vm5141_vm4, %v10712_v51  ;;  %vm423_vm4 = vcmp.eq.s32.totalorder %v10987_v33, %v7648_v32 }
  0xcd   : > { %5206 = vmatpush1.bf16.xpose.msk.msra.mxu1 %vm5205_vm13, %v10712_v51  ;;  %5144 = vmatprep.subr.msk.bf16.mxu0 %vm5143_vm3, %v10712_v51  ;;  %vm5211_vm13 = vmpackc.low %vm423_vm4, %vm421_vm1  ;;  %vm356_vm3 = vcmp.eq.s32.totalorder %v10984_v27, %v7654_v38 }
  0xce   : > { %5208 = vmatprep.subr.msk.bf16.mxu1 %vm5207_vm7, %v10712_v51  ;;  %vm358_vm7 = vcmp.eq.s32.totalorder %v10985_v28, %v7654_v38  ;;  %vm5213_vm1 = vmpackc.low %vm422_vm14, %vm420_vm12  ;;  %vm365_vm12 = vcmp.eq.s32.totalorder %v10992_v41, %v7648_v32  ;;  %vm367_vm14 = vcmp.eq.s32.totalorder %v10993_v42, %v7648_v32 }
  0xcf   : > { %vm5149_vm10 = vmpackc.low %vm358_vm7, %vm356_vm3  ;;  %vm424_vm3 = vcmp.eq.s32.totalorder %v10990_v20, %v7654_v38  ;;  %vm426_vm7 = vcmp.eq.s32.totalorder %v10991_v19, %v7654_v38 }
  0xd0   : > { %vm5151_vm4 = vmpackc.low %vm363_vm15, %vm361_vm0  ;;  %vm429_vm15 = vcmp.eq.s32.totalorder %v10994_v18, %v7648_v32 }
  0xd4   : > { %5146 = vmatpush1.bf16.xpose.msk.msra.mxu0 %vm5145_vm2, %v10712_v51  ;;  %vm427_vm2 = vcmp.eq.s32.totalorder %v10991_v19, %v7648_v32 }
  0xd5   : > { %5210 = vmatpush1.bf16.xpose.msk.msra.mxu1 %vm5209_vm5, %v10712_v51  ;;  %5148 = vmatprep.subr.msk.bf16.mxu0 %vm5147_vm6, %v10712_v51  ;;  %vm5215_vm5 = vmpackc.low %vm427_vm2, %vm425_vm11  ;;  %vm360_vm6 = vcmp.eq.s32.totalorder %v10988_v36, %v7654_v38 }
  0xd6   : > { %5212 = vmatprep.subr.msk.bf16.mxu1 %vm5211_vm13, %v10712_v51  ;;  %vm362_vm13 = vcmp.eq.s32.totalorder %v10989_v16, %v7654_v38  ;;  %vm5217_vm11 = vmpackc.low %vm426_vm7, %vm424_vm3  ;;  %vm369_vm3 = vcmp.eq.s32.totalorder %v10996_v44, %v7648_v32  ;;  %vm371_vm7 = vcmp.eq.s32.totalorder %v10997_v48, %v7648_v32 }
  0xd7   : > { %vm5153_vm0 = vmpackc.low %vm362_vm13, %vm360_vm6  ;;  %vm428_vm6 = vcmp.eq.s32.totalorder %v10994_v18, %v7654_v38  ;;  %vm430_vm13 = vcmp.eq.s32.totalorder %v10995_v43, %v7654_v38 }
  0xd8   : > { %vm5155_vm2 = vmpackc.low %vm367_vm14, %vm365_vm12  ;;  %vm433_vm14 = vcmp.eq.s32.totalorder %v10998_v15, %v7648_v32 }
  0xdc   : > { %5150 = vmatpush1.bf16.xpose.msk.msra.mxu0 %vm5149_vm10, %v10712_v51  ;;  %vm431_vm10 = vcmp.eq.s32.totalorder %v10995_v43, %v7648_v32 }
  0xdd   : > { %5214 = vmatpush1.bf16.xpose.msk.msra.mxu1 %vm5213_vm1, %v10712_v51  ;;  %5152 = vmatprep.subr.msk.bf16.mxu0 %vm5151_vm4, %v10712_v51  ;;  %vm5219_vm1 = vmpackc.low %vm431_vm10, %vm429_vm15  ;;  %vm364_vm4 = vcmp.eq.s32.totalorder %v10992_v41, %v7654_v38 }
  0xde   : > { %5216 = vmatprep.subr.msk.bf16.mxu1 %vm5215_vm5, %v10712_v51  ;;  %vm366_vm5 = vcmp.eq.s32.totalorder %v10993_v42, %v7654_v38  ;;  %vm5221_vm15 = vmpackc.low %vm430_vm13, %vm428_vm6  ;;  %vm373_vm6 = vcmp.eq.s32.totalorder %v11000_v47, %v7648_v32  ;;  %vm375_vm13 = vcmp.eq.s32.totalorder %v11001_v49, %v7648_v32 }
  0xdf   : > { %vm5157_vm12 = vmpackc.low %vm366_vm5, %vm364_vm4  ;;  %vm432_vm4 = vcmp.eq.s32.totalorder %v10998_v15, %v7654_v38  ;;  %vm434_vm5 = vcmp.eq.s32.totalorder %v10999_v14, %v7654_v38 }
  0xe0   : > { %vm5159_vm10 = vmpackc.low %vm371_vm7, %vm369_vm3  ;;  %vm437_vm7 = vcmp.eq.s32.totalorder %v11002_v50, %v7648_v32 }
  0xe4   : > { %5154 = vmatpush1.bf16.xpose.msk.msra.mxu0 %vm5153_vm0, %v10712_v51  ;;  %vm435_vm0 = vcmp.eq.s32.totalorder %v10999_v14, %v7648_v32 }
  0xe5   : > { %5218 = vmatpush1.bf16.xpose.msk.msra.mxu1 %vm5217_vm11, %v10712_v51  ;;  %5156 = vmatprep.subr.msk.bf16.mxu0 %vm5155_vm2, %v10712_v51  ;;  %vm5223_vm11 = vmpackc.low %vm435_vm0, %vm433_vm14  ;;  %vm368_vm2 = vcmp.eq.s32.totalorder %v10996_v44, %v7654_v38 }
  0xe6   : > { %5220 = vmatprep.subr.msk.bf16.mxu1 %vm5219_vm1, %v10712_v51  ;;  %vm370_vm1 = vcmp.eq.s32.totalorder %v10997_v48, %v7654_v38  ;;  %vm5225_vm14 = vmpackc.low %vm434_vm5, %vm432_vm4  ;;  %vm377_vm4 = vcmp.eq.s32.totalorder %v11004_v55, %v7648_v32  ;;  %vm379_vm5 = vcmp.eq.s32.totalorder %v11005_v23, %v7648_v32 }
  0xe7   : > { %vm5161_vm3 = vmpackc.low %vm370_vm1, %vm368_vm2  ;;  %vm436_vm2 = vcmp.eq.s32.totalorder %v11002_v50, %v7654_v38  ;;  %vm438_vm1 = vcmp.eq.s32.totalorder %v11003_v52, %v7654_v38 }
  0xe8   : > { %vm5163_vm0 = vmpackc.low %vm375_vm13, %vm373_vm6  ;;  %vm441_vm13 = vcmp.eq.s32.totalorder %v11006_v24, %v7648_v32 }
  0xec   : > { %5158 = vmatpush1.bf16.xpose.msk.msra.mxu0 %vm5157_vm12, %v10712_v51  ;;  %vm439_vm12 = vcmp.eq.s32.totalorder %v11003_v52, %v7648_v32 }
  0xed   : > { %5222 = vmatpush1.bf16.xpose.msk.msra.mxu1 %vm5221_vm15, %v10712_v51  ;;  %5160 = vmatprep.subr.msk.bf16.mxu0 %vm5159_vm10, %v10712_v51  ;;  %vm5227_vm15 = vmpackc.low %vm439_vm12, %vm437_vm7  ;;  %vm372_vm10 = vcmp.eq.s32.totalorder %v11000_v47, %v7654_v38 }
  0xee   : > { %5224 = vmatprep.subr.msk.bf16.mxu1 %vm5223_vm11, %v10712_v51  ;;  %vm374_vm11 = vcmp.eq.s32.totalorder %v11001_v49, %v7654_v38  ;;  %vm5229_vm7 = vmpackc.low %vm438_vm1, %vm436_vm2  ;;  %vm381_vm2 = vcmp.eq.s32.totalorder %v11008_v26, %v7648_v32  ;;  %vm383_vm1 = vcmp.eq.s32.totalorder %v11009_v29, %v7648_v32 }
  0xef   : > { %vm5165_vm6 = vmpackc.low %vm374_vm11, %vm372_vm10  ;;  %vm440_vm10 = vcmp.eq.s32.totalorder %v11006_v24, %v7654_v38  ;;  %vm442_vm11 = vcmp.eq.s32.totalorder %v11007_v25, %v7654_v38 }
  0xf0   : > { %vm5167_vm12 = vmpackc.low %vm379_vm5, %vm377_vm4  ;;  %vm445_vm5 = vcmp.eq.s32.totalorder %v11010_v30, %v7648_v32 }
  0xf4   : > { %5162 = vmatpush1.bf16.xpose.msk.msra.mxu0 %vm5161_vm3, %v10712_v51  ;;  %vm443_vm3 = vcmp.eq.s32.totalorder %v11007_v25, %v7648_v32 }
  0xf5   : > { %5226 = vmatpush1.bf16.xpose.msk.msra.mxu1 %vm5225_vm14, %v10712_v51  ;;  %5164 = vmatprep.subr.msk.bf16.mxu0 %vm5163_vm0, %v10712_v51  ;;  %vm5231_vm14 = vmpackc.low %vm443_vm3, %vm441_vm13  ;;  %vm376_vm0 = vcmp.eq.s32.totalorder %v11004_v55, %v7654_v38 }
  0xf6   : > { %5228 = vmatprep.subr.msk.bf16.mxu1 %vm5227_vm15, %v10712_v51  ;;  %vm378_vm15 = vcmp.eq.s32.totalorder %v11005_v23, %v7654_v38  ;;  %vm5233_vm13 = vmpackc.low %vm442_vm11, %vm440_vm10  ;;  %vm385_vm10 = vcmp.eq.s32.totalorder %v11012_v40, %v7648_v32  ;;  %vm387_vm11 = vcmp.eq.s32.totalorder %v11013_v45, %v7648_v32 }
  0xf7   : > { %vm5169_vm4 = vmpackc.low %vm378_vm15, %vm376_vm0  ;;  %vm444_vm0 = vcmp.eq.s32.totalorder %v11010_v30, %v7654_v38  ;;  %vm446_vm15 = vcmp.eq.s32.totalorder %v11011_v39, %v7654_v38 }
  0xf8   : > { %vm5171_vm3 = vmpackc.low %vm383_vm1, %vm381_vm2  ;;  %vm449_vm1 = vcmp.eq.s32.totalorder %v11014_v46, %v7648_v32 }
  0xfc   : > { %5166 = vmatpush1.bf16.xpose.msk.msra.mxu0 %vm5165_vm6, %v10712_v51  ;;  %vm447_vm6 = vcmp.eq.s32.totalorder %v11011_v39, %v7648_v32 }
  0xfd   : > { %5230 = vmatpush1.bf16.xpose.msk.msra.mxu1 %vm5229_vm7, %v10712_v51  ;;  %5168 = vmatprep.subr.msk.bf16.mxu0 %vm5167_vm12, %v10712_v51  ;;  %vm5235_vm7 = vmpackc.low %vm447_vm6, %vm445_vm5  ;;  %vm380_vm12 = vcmp.eq.s32.totalorder %v11008_v26, %v7654_v38 }
  0xfe   : > { %5232 = vmatprep.subr.msk.bf16.mxu1 %vm5231_vm14, %v10712_v51  ;;  %vm382_vm14 = vcmp.eq.s32.totalorder %v11009_v29, %v7654_v38  ;;  %vm5237_vm5 = vmpackc.low %vm446_vm15, %vm444_vm0  ;;  %vm389_vm0 = vcmp.eq.s32.totalorder %v11016_v58, %v7648_v32  ;;  %vm391_vm15 = vcmp.eq.s32.totalorder %v11017_v54, %v7648_v32 }
  0xff   : > { %vm5173_vm2 = vmpackc.low %vm382_vm14, %vm380_vm12  ;;  %vm448_vm12 = vcmp.eq.s32.totalorder %v11014_v46, %v7654_v38  ;;  %vm450_vm14 = vcmp.eq.s32.totalorder %v11015_v53, %v7654_v38  ;;  %v11021_v46 = vld [vmem:[#allocation59_spill] sm:$0xff] }
 0x100   : > { %vm5175_vm6 = vmpackc.low %vm387_vm11, %vm385_vm10 }
 0x104   : > { %5170 = vmatpush1.bf16.xpose.msk.msra.mxu0 %vm5169_vm4, %v10712_v51  ;;  %vm451_vm4 = vcmp.eq.s32.totalorder %v11015_v53, %v7648_v32  ;;  %v11020_v53 = vld [vmem:[#allocation58_spill] sm:$0xff] }
 0x105   : > { %5234 = vmatpush1.bf16.xpose.msk.msra.mxu1 %vm5233_vm13, %v10712_v51  ;;  %5172 = vmatprep.subr.msk.bf16.mxu0 %vm5171_vm3, %v10712_v51  ;;  %vm5239_vm13 = vmpackc.low %vm451_vm4, %vm449_vm1  ;;  %vm384_vm3 = vcmp.eq.s32.totalorder %v11012_v40, %v7654_v38  ;;  %v11018_v40 = vld [vmem:[#allocation82_spill] sm:$0xff] }
 0x106   : > { %5236 = vmatprep.subr.msk.bf16.mxu1 %vm5235_vm7, %v10712_v51  ;;  %vm386_vm7 = vcmp.eq.s32.totalorder %v11013_v45, %v7654_v38  ;;  %vm453_vm11 = vcmp.eq.s32.totalorder %v11018_v40, %v7648_v32  ;;  %v11019_v45 = vld [vmem:[#allocation83_spill] sm:$0xff]  ;;  %vm5241_vm1 = vmpackc.low %vm450_vm14, %vm448_vm12  ;;  %vm393_vm12 = vcmp.eq.s32.totalorder %v11020_v53, %v7648_v32  ;;  %vm395_vm14 = vcmp.eq.s32.totalorder %v11021_v46, %v7648_v32 }
 0x107   : > { %vm5177_vm10 = vmpackc.low %vm386_vm7, %vm384_vm3  ;;  %vm452_vm3 = vcmp.eq.s32.totalorder %v11018_v40, %v7654_v38  ;;  %vm454_vm7 = vcmp.eq.s32.totalorder %v11019_v45, %v7654_v38 }
 0x108   : > { %vm5179_vm4 = vmpackc.low %vm391_vm15, %vm389_vm0 }
 0x10c   : > { %5174 = vmatpush1.bf16.xpose.msk.msra.mxu0 %vm5173_vm2, %v10712_v51  ;;  %vm455_vm2 = vcmp.eq.s32.totalorder %v11019_v45, %v7648_v32  ;;  %v11024_v45 = vmov 1.0|1.0  }
 0x10d   : > { %5238 = vmatpush1.bf16.xpose.msk.msra.mxu1 %vm5237_vm5, %v10712_v51  ;;  %5176 = vmatprep.subr.msk.bf16.mxu0 %vm5175_vm6, %v10712_v51  ;;  %vm5243_vm5 = vmpackc.low %vm455_vm2, %vm453_vm11  ;;  %vm388_vm6 = vcmp.eq.s32.totalorder %v11016_v58, %v7654_v38  ;;  %v11022_v58 = vld [vmem:[#allocation84_spill] sm:$0xff] }
 0x10e   : > { %5240 = vmatprep.subr.msk.bf16.mxu1 %vm5239_vm13, %v10712_v51  ;;  %vm390_vm13 = vcmp.eq.s32.totalorder %v11017_v54, %v7654_v38  ;;  %vm457_vm15 = vcmp.eq.s32.totalorder %v11022_v58, %v7648_v32  ;;  %v11023_v54 = vld [vmem:[#allocation85_spill] sm:$0xff]  ;;  %vm5245_vm11 = vmpackc.low %vm454_vm7, %vm452_vm3 }
 0x10f   : > { %vm5181_vm0 = vmpackc.low %vm390_vm13, %vm388_vm6  ;;  %vm456_vm6 = vcmp.eq.s32.totalorder %v11022_v58, %v7654_v38  ;;  %vm458_vm13 = vcmp.eq.s32.totalorder %v11023_v54, %v7654_v38 }
 0x110   : > { %vm5183_vm2 = vmpackc.low %vm395_vm14, %vm393_vm12 }
 0x114   : > { %5178 = vmatpush1.bf16.xpose.msk.msra.mxu0 %vm5177_vm10, %v10712_v51  ;;  %vm459_vm10 = vcmp.eq.s32.totalorder %v11023_v54, %v7648_v32  ;;  %v7988_v32 = vrot.slane %v7650_v37, %v7619_v35 }
 0x115   : > { %5242 = vmatpush1.bf16.xpose.msk.msra.mxu1 %vm5241_vm1, %v10712_v51  ;;  %5180 = vmatprep.subr.msk.bf16.mxu0 %vm5179_vm4, %v10712_v51  ;;  %vm5247_vm1 = vmpackc.low %vm459_vm10, %vm457_vm15  ;;  %vm392_vm4 = vcmp.eq.s32.totalorder %v11020_v53, %v7654_v38 }
 0x116   : > { %5244 = vmatprep.subr.msk.bf16.mxu1 %vm5243_vm5, %v10712_v51  ;;  %v7964_v51 = vrot.slane %v7644_v31, %v7619_v35  ;;  %vm394_vm5 = vcmp.eq.s32.totalorder %v11021_v46, %v7654_v38  ;;  %vm5249_vm15 = vmpackc.low %vm458_vm13, %vm456_vm6  ;;  %v11025_v35 = vld [vmem:[#allocation37_spill] sm:$0xff]  ;;  %v11026_v38 = vld [vmem:[#allocation38_spill] sm:$0xff] }
 0x117   : > { %vm5185_vm12 = vmpackc.low %vm394_vm5, %vm392_vm4  ;;  %vm977_vm4 = vcmp.eq.s32.totalorder %v7467_v56, %v7988_v32  ;;  %vm979_vm5 = vcmp.eq.s32.totalorder %v7470_v57, %v7988_v32 }
 0x118   : > { %vm914_vm3 = vcmp.eq.s32.totalorder %v10946_v2, %v7964_v51  ;;  %vm916_vm7 = vcmp.eq.s32.totalorder %v10953_v3, %v7964_v51  ;;  %vm978_vm14 = vcmp.eq.s32.totalorder %v7467_v56, %v7964_v51  ;;  %vm918_vm6 = vcmp.eq.s32.totalorder %v10952_v4, %v7964_v51 }
 0x119   : > { %vm5379_vm10 = vmpackc.low %vm916_vm7, %vm914_vm3  ;;  %vm920_vm13 = vcmp.eq.s32.totalorder %v10951_v5, %v7964_v51  ;;  %vm982_vm7 = vcmp.eq.s32.totalorder %v7477_v59, %v7964_v51 }
 0x11c   : > { %5182 = vmatpush1.bf16.xpose.msk.msra.mxu0 %vm5181_vm0, %v11024_v45  ;;  %vm980_vm0 = vcmp.eq.s32.totalorder %v7470_v57, %v7964_v51 }
 0x11d   : > { %5246 = vmatpush1.bf16.xpose.msk.msra.mxu1 %vm5245_vm11, %v11024_v45  ;;  %5184 = vmatprep.subr.msk.bf16.mxu0 %vm5183_vm2, %v11024_v45  ;;  %vm5443_vm11 = vmpackc.low %vm980_vm0, %vm978_vm14  ;;  %vm913_vm2 = vcmp.eq.s32.totalorder %v10946_v2, %v7988_v32 }
 0x11e   : > { %5248 = vmatprep.subr.msk.bf16.mxu1 %vm5247_vm1, %v11024_v45  ;;  %vm915_vm1 = vcmp.eq.s32.totalorder %v10953_v3, %v7988_v32  ;;  %vm5445_vm14 = vmpackc.low %vm979_vm5, %vm977_vm4  ;;  %vm922_vm4 = vcmp.eq.s32.totalorder %v10950_v6, %v7964_v51  ;;  %vm924_vm5 = vcmp.eq.s32.totalorder %v10949_v7, %v7964_v51 }
 0x11f   : > { %vm5381_vm3 = vmpackc.low %vm915_vm1, %vm913_vm2  ;;  %vm981_vm2 = vcmp.eq.s32.totalorder %v7477_v59, %v7988_v32  ;;  %vm983_vm1 = vcmp.eq.s32.totalorder %v7480_v60, %v7988_v32 }
 0x120   : > { %vm5383_vm0 = vmpackc.low %vm920_vm13, %vm918_vm6  ;;  %vm986_vm13 = vcmp.eq.s32.totalorder %v7483_v61, %v7964_v51 }
 0x124   : > { %5186 = vmatpush1.bf16.xpose.msk.msra.mxu0 %vm5185_vm12, %v11024_v45  ;;  %vm984_vm12 = vcmp.eq.s32.totalorder %v7480_v60, %v7964_v51 }
 0x125   : > { %5250 = vmatpush1.bf16.xpose.msk.msra.mxu1 %vm5249_vm15, %v11024_v45  ;;  %5380 = vmatprep.subr.msk.bf16.mxu0 %vm5379_vm10, %v11024_v45  ;;  %vm5447_vm15 = vmpackc.low %vm984_vm12, %vm982_vm7  ;;  %vm917_vm10 = vcmp.eq.s32.totalorder %v10952_v4, %v7988_v32 }
 0x126   : > { %5444 = vmatprep.subr.msk.bf16.mxu1 %vm5443_vm11, %v11024_v45  ;;  %vm919_vm11 = vcmp.eq.s32.totalorder %v10951_v5, %v7988_v32  ;;  %vm5449_vm7 = vmpackc.low %vm983_vm1, %vm981_vm2  ;;  %vm926_vm2 = vcmp.eq.s32.totalorder %v10948_v8, %v7964_v51  ;;  %vm928_vm1 = vcmp.eq.s32.totalorder %v10947_v9, %v7964_v51 }
 0x127   : > { %vm5385_vm6 = vmpackc.low %vm919_vm11, %vm917_vm10  ;;  %vm985_vm10 = vcmp.eq.s32.totalorder %v7483_v61, %v7988_v32  ;;  %vm987_vm11 = vcmp.eq.s32.totalorder %v7486_v62, %v7988_v32 }
 0x128   : > { %vm5387_vm12 = vmpackc.low %vm924_vm5, %vm922_vm4  ;;  %vm990_vm5 = vcmp.eq.s32.totalorder %v7493_v63, %v7964_v51 }
 0x12b   : > { %813 = vmatmul.mubr.bf16.vlgmr.msra.gmra.mrb[0].mxu0 %v11025_v35 }
 0x12c   : > { %854 = vmatmul.mubr.bf16.vlgmr.msra.gmra.mrb[0].mxu1 %v11025_v35  ;;  %5382 = vmatpush1.bf16.xpose.msk.msra.mxu0 %vm5381_vm3, %v11024_v45  ;;  %vm988_vm3 = vcmp.eq.s32.totalorder %v7486_v62, %v7964_v51 }
 0x12d   : > { %5446 = vmatpush1.bf16.xpose.msk.msra.mxu1 %vm5445_vm14, %v11024_v45  ;;  %5384 = vmatprep.subr.msk.bf16.mxu0 %vm5383_vm0, %v11024_v45  ;;  %vm5451_vm14 = vmpackc.low %vm988_vm3, %vm986_vm13  ;;  %vm921_vm0 = vcmp.eq.s32.totalorder %v10950_v6, %v7988_v32 }
 0x12e   : > { %5448 = vmatprep.subr.msk.bf16.mxu1 %vm5447_vm15, %v11024_v45  ;;  %1393 = vmatprep.mubr.bf16.mxu0 %v11026_v38  ;;  %vm923_vm15 = vcmp.eq.s32.totalorder %v10949_v7, %v7988_v32  ;;  %vm5453_vm13 = vmpackc.low %vm987_vm11, %vm985_vm10  ;;  %vm930_vm10 = vcmp.eq.s32.totalorder %v10955_v10, %v7964_v51  ;;  %vm932_vm11 = vcmp.eq.s32.totalorder %v10956_v11, %v7964_v51 }
 0x12f   : > { %1434 = vmatprep.mubr.bf16.mxu1 %v11026_v38  ;;  %vm5389_vm4 = vmpackc.low %vm923_vm15, %vm921_vm0  ;;  %vm989_vm0 = vcmp.eq.s32.totalorder %v7493_v63, %v7988_v32  ;;  %vm991_vm15 = vcmp.eq.s32.totalorder %v10954_v0, %v7988_v32 }
 0x130   : > { %vm5391_vm3 = vmpackc.low %vm928_vm1, %vm926_vm2  ;;  %vm994_vm1 = vcmp.eq.s32.totalorder %v10957_v1, %v7964_v51 }
 0x134   : > { %5386 = vmatpush1.bf16.xpose.msk.msra.mxu0 %vm5385_vm6, %v11024_v45  ;;  %vm992_vm6 = vcmp.eq.s32.totalorder %v10954_v0, %v7964_v51 }
 0x135   : > { %5450 = vmatpush1.bf16.xpose.msk.msra.mxu1 %vm5449_vm7, %v11024_v45  ;;  %5388 = vmatprep.subr.msk.bf16.mxu0 %vm5387_vm12, %v11024_v45  ;;  %vm5455_vm7 = vmpackc.low %vm992_vm6, %vm990_vm5  ;;  %vm925_vm12 = vcmp.eq.s32.totalorder %v10948_v8, %v7988_v32 }
 0x136   : > { %5452 = vmatprep.subr.msk.bf16.mxu1 %vm5451_vm14, %v11024_v45  ;;  %vm927_vm14 = vcmp.eq.s32.totalorder %v10947_v9, %v7988_v32  ;;  %vm5457_vm5 = vmpackc.low %vm991_vm15, %vm989_vm0  ;;  %vm934_vm0 = vcmp.eq.s32.totalorder %v10959_v12, %v7964_v51  ;;  %vm936_vm15 = vcmp.eq.s32.totalorder %v10960_v13, %v7964_v51 }
 0x137   : > { %vm5393_vm2 = vmpackc.low %vm927_vm14, %vm925_vm12  ;;  %vm993_vm12 = vcmp.eq.s32.totalorder %v10957_v1, %v7988_v32  ;;  %vm995_vm14 = vcmp.eq.s32.totalorder %v10958_v17, %v7988_v32 }
 0x138   : > { %vm5395_vm6 = vmpackc.low %vm932_vm11, %vm930_vm10  ;;  %vm998_vm11 = vcmp.eq.s32.totalorder %v10961_v21, %v7964_v51 }
 0x13c   : > { %5390 = vmatpush1.bf16.xpose.msk.msra.mxu0 %vm5389_vm4, %v11024_v45  ;;  %vm996_vm4 = vcmp.eq.s32.totalorder %v10958_v17, %v7964_v51 }
 0x13d   : > { %5454 = vmatpush1.bf16.xpose.msk.msra.mxu1 %vm5453_vm13, %v11024_v45  ;;  %5392 = vmatprep.subr.msk.bf16.mxu0 %vm5391_vm3, %v11024_v45  ;;  %vm5459_vm13 = vmpackc.low %vm996_vm4, %vm994_vm1  ;;  %vm929_vm3 = vcmp.eq.s32.totalorder %v10955_v10, %v7988_v32 }
 0x13e   : > { %5456 = vmatprep.subr.msk.bf16.mxu1 %vm5455_vm7, %v11024_v45  ;;  %vm931_vm7 = vcmp.eq.s32.totalorder %v10956_v11, %v7988_v32  ;;  %vm5461_vm1 = vmpackc.low %vm995_vm14, %vm993_vm12  ;;  %vm938_vm12 = vcmp.eq.s32.totalorder %v10984_v27, %v7964_v51  ;;  %vm940_vm14 = vcmp.eq.s32.totalorder %v10985_v28, %v7964_v51 }
 0x13f   : > { %vm5397_vm10 = vmpackc.low %vm931_vm7, %vm929_vm3  ;;  %vm997_vm3 = vcmp.eq.s32.totalorder %v10961_v21, %v7988_v32  ;;  %vm999_vm7 = vcmp.eq.s32.totalorder %v10962_v22, %v7988_v32 }
 0x140   : > { %vm5399_vm4 = vmpackc.low %vm936_vm15, %vm934_vm0  ;;  %vm1002_vm15 = vcmp.eq.s32.totalorder %v10986_v34, %v7964_v51 }
 0x144   : > { %5394 = vmatpush1.bf16.xpose.msk.msra.mxu0 %vm5393_vm2, %v11024_v45  ;;  %vm1000_vm2 = vcmp.eq.s32.totalorder %v10962_v22, %v7964_v51 }
 0x145   : > { %5458 = vmatpush1.bf16.xpose.msk.msra.mxu1 %vm5457_vm5, %v11024_v45  ;;  %5396 = vmatprep.subr.msk.bf16.mxu0 %vm5395_vm6, %v11024_v45  ;;  %vm5463_vm5 = vmpackc.low %vm1000_vm2, %vm998_vm11  ;;  %vm933_vm6 = vcmp.eq.s32.totalorder %v10959_v12, %v7988_v32 }
 0x146   : > { %5460 = vmatprep.subr.msk.bf16.mxu1 %vm5459_vm13, %v11024_v45  ;;  %vm935_vm13 = vcmp.eq.s32.totalorder %v10960_v13, %v7988_v32  ;;  %vm5465_vm11 = vmpackc.low %vm999_vm7, %vm997_vm3  ;;  %vm942_vm3 = vcmp.eq.s32.totalorder %v10988_v36, %v7964_v51  ;;  %vm944_vm7 = vcmp.eq.s32.totalorder %v10989_v16, %v7964_v51 }
 0x147   : > { %vm5401_vm0 = vmpackc.low %vm935_vm13, %vm933_vm6  ;;  %vm1001_vm6 = vcmp.eq.s32.totalorder %v10986_v34, %v7988_v32  ;;  %vm1003_vm13 = vcmp.eq.s32.totalorder %v10987_v33, %v7988_v32 }
 0x148   : > { %vm5403_vm2 = vmpackc.low %vm940_vm14, %vm938_vm12  ;;  %vm1006_vm14 = vcmp.eq.s32.totalorder %v10990_v20, %v7964_v51 }
 0x14c   : > { %5398 = vmatpush1.bf16.xpose.msk.msra.mxu0 %vm5397_vm10, %v11024_v45  ;;  %vm1004_vm10 = vcmp.eq.s32.totalorder %v10987_v33, %v7964_v51 }
 0x14d   : > { %5462 = vmatpush1.bf16.xpose.msk.msra.mxu1 %vm5461_vm1, %v11024_v45  ;;  %5400 = vmatprep.subr.msk.bf16.mxu0 %vm5399_vm4, %v11024_v45  ;;  %vm5467_vm1 = vmpackc.low %vm1004_vm10, %vm1002_vm15  ;;  %vm937_vm4 = vcmp.eq.s32.totalorder %v10984_v27, %v7988_v32 }
 0x14e   : > { %5464 = vmatprep.subr.msk.bf16.mxu1 %vm5463_vm5, %v11024_v45  ;;  %vm939_vm5 = vcmp.eq.s32.totalorder %v10985_v28, %v7988_v32  ;;  %vm5469_vm15 = vmpackc.low %vm1003_vm13, %vm1001_vm6  ;;  %vm946_vm6 = vcmp.eq.s32.totalorder %v10992_v41, %v7964_v51  ;;  %vm948_vm13 = vcmp.eq.s32.totalorder %v10993_v42, %v7964_v51 }
 0x14f   : > { %vm5405_vm12 = vmpackc.low %vm939_vm5, %vm937_vm4  ;;  %vm1005_vm4 = vcmp.eq.s32.totalorder %v10990_v20, %v7988_v32  ;;  %vm1007_vm5 = vcmp.eq.s32.totalorder %v10991_v19, %v7988_v32 }
 0x150   : > { %vm5407_vm10 = vmpackc.low %vm944_vm7, %vm942_vm3  ;;  %vm1010_vm7 = vcmp.eq.s32.totalorder %v10994_v18, %v7964_v51 }
 0x154   : > { %5402 = vmatpush1.bf16.xpose.msk.msra.mxu0 %vm5401_vm0, %v11024_v45  ;;  %vm1008_vm0 = vcmp.eq.s32.totalorder %v10991_v19, %v7964_v51 }
 0x155   : > { %5466 = vmatpush1.bf16.xpose.msk.msra.mxu1 %vm5465_vm11, %v11024_v45  ;;  %5404 = vmatprep.subr.msk.bf16.mxu0 %vm5403_vm2, %v11024_v45  ;;  %vm5471_vm11 = vmpackc.low %vm1008_vm0, %vm1006_vm14  ;;  %vm941_vm2 = vcmp.eq.s32.totalorder %v10988_v36, %v7988_v32 }
 0x156   : > { %5468 = vmatprep.subr.msk.bf16.mxu1 %vm5467_vm1, %v11024_v45  ;;  %vm943_vm1 = vcmp.eq.s32.totalorder %v10989_v16, %v7988_v32  ;;  %vm5473_vm14 = vmpackc.low %vm1007_vm5, %vm1005_vm4  ;;  %vm950_vm4 = vcmp.eq.s32.totalorder %v10996_v44, %v7964_v51  ;;  %vm952_vm5 = vcmp.eq.s32.totalorder %v10997_v48, %v7964_v51 }
 0x157   : > { %vm5409_vm3 = vmpackc.low %vm943_vm1, %vm941_vm2  ;;  %vm1009_vm2 = vcmp.eq.s32.totalorder %v10994_v18, %v7988_v32  ;;  %vm1011_vm1 = vcmp.eq.s32.totalorder %v10995_v43, %v7988_v32 }
 0x158   : > { %vm5411_vm0 = vmpackc.low %vm948_vm13, %vm946_vm6  ;;  %vm1014_vm13 = vcmp.eq.s32.totalorder %v10998_v15, %v7964_v51 }
 0x15c   : > { %5406 = vmatpush1.bf16.xpose.msk.msra.mxu0 %vm5405_vm12, %v11024_v45  ;;  %vm1012_vm12 = vcmp.eq.s32.totalorder %v10995_v43, %v7964_v51 }
 0x15d   : > { %5470 = vmatpush1.bf16.xpose.msk.msra.mxu1 %vm5469_vm15, %v11024_v45  ;;  %5408 = vmatprep.subr.msk.bf16.mxu0 %vm5407_vm10, %v11024_v45  ;;  %vm5475_vm15 = vmpackc.low %vm1012_vm12, %vm1010_vm7  ;;  %vm945_vm10 = vcmp.eq.s32.totalorder %v10992_v41, %v7988_v32 }
 0x15e   : > { %5472 = vmatprep.subr.msk.bf16.mxu1 %vm5471_vm11, %v11024_v45  ;;  %vm947_vm11 = vcmp.eq.s32.totalorder %v10993_v42, %v7988_v32  ;;  %vm5477_vm7 = vmpackc.low %vm1011_vm1, %vm1009_vm2  ;;  %vm954_vm2 = vcmp.eq.s32.totalorder %v11000_v47, %v7964_v51  ;;  %vm956_vm1 = vcmp.eq.s32.totalorder %v11001_v49, %v7964_v51 }
 0x15f   : > { %vm5413_vm6 = vmpackc.low %vm947_vm11, %vm945_vm10  ;;  %vm1013_vm10 = vcmp.eq.s32.totalorder %v10998_v15, %v7988_v32  ;;  %vm1015_vm11 = vcmp.eq.s32.totalorder %v10999_v14, %v7988_v32 }
 0x160   : > { %vm5415_vm12 = vmpackc.low %vm952_vm5, %vm950_vm4  ;;  %vm1018_vm5 = vcmp.eq.s32.totalorder %v11002_v50, %v7964_v51 }
 0x164   : > { %5410 = vmatpush1.bf16.xpose.msk.msra.mxu0 %vm5409_vm3, %v11024_v45  ;;  %vm1016_vm3 = vcmp.eq.s32.totalorder %v10999_v14, %v7964_v51 }
 0x165   : > { %5474 = vmatpush1.bf16.xpose.msk.msra.mxu1 %vm5473_vm14, %v11024_v45  ;;  %5412 = vmatprep.subr.msk.bf16.mxu0 %vm5411_vm0, %v11024_v45  ;;  %vm5479_vm14 = vmpackc.low %vm1016_vm3, %vm1014_vm13  ;;  %vm949_vm0 = vcmp.eq.s32.totalorder %v10996_v44, %v7988_v32 }
 0x166   : > { %5476 = vmatprep.subr.msk.bf16.mxu1 %vm5475_vm15, %v11024_v45  ;;  %vm951_vm15 = vcmp.eq.s32.totalorder %v10997_v48, %v7988_v32  ;;  %vm5481_vm13 = vmpackc.low %vm1015_vm11, %vm1013_vm10  ;;  %vm958_vm10 = vcmp.eq.s32.totalorder %v11004_v55, %v7964_v51  ;;  %vm960_vm11 = vcmp.eq.s32.totalorder %v11005_v23, %v7964_v51 }
 0x167   : > { %vm5417_vm4 = vmpackc.low %vm951_vm15, %vm949_vm0  ;;  %vm1017_vm0 = vcmp.eq.s32.totalorder %v11002_v50, %v7988_v32  ;;  %vm1019_vm15 = vcmp.eq.s32.totalorder %v11003_v52, %v7988_v32 }
 0x168   : > { %vm5419_vm3 = vmpackc.low %vm956_vm1, %vm954_vm2  ;;  %vm1022_vm1 = vcmp.eq.s32.totalorder %v11006_v24, %v7964_v51 }
 0x16c   : > { %5414 = vmatpush1.bf16.xpose.msk.msra.mxu0 %vm5413_vm6, %v11024_v45  ;;  %vm1020_vm6 = vcmp.eq.s32.totalorder %v11003_v52, %v7964_v51 }
 0x16d   : > { %5478 = vmatpush1.bf16.xpose.msk.msra.mxu1 %vm5477_vm7, %v11024_v45  ;;  %5416 = vmatprep.subr.msk.bf16.mxu0 %vm5415_vm12, %v11024_v45  ;;  %vm5483_vm7 = vmpackc.low %vm1020_vm6, %vm1018_vm5  ;;  %vm953_vm12 = vcmp.eq.s32.totalorder %v11000_v47, %v7988_v32 }
 0x16e   : > { %5480 = vmatprep.subr.msk.bf16.mxu1 %vm5479_vm14, %v11024_v45  ;;  %vm955_vm14 = vcmp.eq.s32.totalorder %v11001_v49, %v7988_v32  ;;  %vm5485_vm5 = vmpackc.low %vm1019_vm15, %vm1017_vm0  ;;  %vm962_vm0 = vcmp.eq.s32.totalorder %v11008_v26, %v7964_v51  ;;  %vm964_vm15 = vcmp.eq.s32.totalorder %v11009_v29, %v7964_v51 }
 0x16f   : > { %vm5421_vm2 = vmpackc.low %vm955_vm14, %vm953_vm12  ;;  %vm1021_vm12 = vcmp.eq.s32.totalorder %v11006_v24, %v7988_v32  ;;  %vm1023_vm14 = vcmp.eq.s32.totalorder %v11007_v25, %v7988_v32  ;;  %v11028_v24 = vld [vmem:[#allocation54_spill] sm:$0xff] }
 0x170   : > { %vm5423_vm6 = vmpackc.low %vm960_vm11, %vm958_vm10  ;;  %vm1026_vm11 = vcmp.eq.s32.totalorder %v11010_v30, %v7964_v51 }
 0x174   : > { %5418 = vmatpush1.bf16.xpose.msk.msra.mxu0 %vm5417_vm4, %v11024_v45  ;;  %vm1024_vm4 = vcmp.eq.s32.totalorder %v11007_v25, %v7964_v51  ;;  %v11027_v25 = vld [vmem:[#allocation53_spill] sm:$0xff] }
 0x175   : > { %5482 = vmatpush1.bf16.xpose.msk.msra.mxu1 %vm5481_vm13, %v11024_v45  ;;  %5420 = vmatprep.subr.msk.bf16.mxu0 %vm5419_vm3, %v11024_v45  ;;  %vm5487_vm13 = vmpackc.low %vm1024_vm4, %vm1022_vm1  ;;  %vm957_vm3 = vcmp.eq.s32.totalorder %v11004_v55, %v7988_v32 }
 0x176   : > { %5484 = vmatprep.subr.msk.bf16.mxu1 %vm5483_vm7, %v11024_v45  ;;  %vm959_vm7 = vcmp.eq.s32.totalorder %v11005_v23, %v7988_v32  ;;  %vm5489_vm1 = vmpackc.low %vm1023_vm14, %vm1021_vm12  ;;  %vm966_vm12 = vcmp.eq.s32.totalorder %v11027_v25, %v7964_v51  ;;  %vm968_vm14 = vcmp.eq.s32.totalorder %v11028_v24, %v7964_v51 }
 0x177   : > { %vm5425_vm10 = vmpackc.low %vm959_vm7, %vm957_vm3  ;;  %vm1025_vm3 = vcmp.eq.s32.totalorder %v11010_v30, %v7988_v32  ;;  %vm1027_vm7 = vcmp.eq.s32.totalorder %v11011_v39, %v7988_v32  ;;  %v11032_v30 = vld [vmem:[#allocation56_spill] sm:$0xff] }
 0x178   : > { %vm5427_vm4 = vmpackc.low %vm964_vm15, %vm962_vm0 }
 0x17c   : > { %5422 = vmatpush1.bf16.xpose.msk.msra.mxu0 %vm5421_vm2, %v11024_v45  ;;  %vm1028_vm2 = vcmp.eq.s32.totalorder %v11011_v39, %v7964_v51  ;;  %v11031_v39 = vld [vmem:[#allocation55_spill] sm:$0xff] }
 0x17d   : > { %5486 = vmatpush1.bf16.xpose.msk.msra.mxu1 %vm5485_vm5, %v11024_v45  ;;  %5424 = vmatprep.subr.msk.bf16.mxu0 %vm5423_vm6, %v11024_v45  ;;  %vm5491_vm5 = vmpackc.low %vm1028_vm2, %vm1026_vm11  ;;  %vm961_vm6 = vcmp.eq.s32.totalorder %v11008_v26, %v7988_v32  ;;  %v11029_v26 = vld [vmem:[#allocation80_spill] sm:$0xff] }
 0x17e   : > { %5488 = vmatprep.subr.msk.bf16.mxu1 %vm5487_vm13, %v11024_v45  ;;  %vm963_vm13 = vcmp.eq.s32.totalorder %v11009_v29, %v7988_v32  ;;  %vm1030_vm15 = vcmp.eq.s32.totalorder %v11029_v26, %v7964_v51  ;;  %v11030_v29 = vld [vmem:[#allocation81_spill] sm:$0xff]  ;;  %vm5493_vm11 = vmpackc.low %vm1027_vm7, %vm1025_vm3  ;;  %vm970_vm3 = vcmp.eq.s32.totalorder %v11031_v39, %v7964_v51  ;;  %vm972_vm7 = vcmp.eq.s32.totalorder %v11032_v30, %v7964_v51 }
 0x17f   : > { %vm5429_vm0 = vmpackc.low %vm963_vm13, %vm961_vm6  ;;  %vm1029_vm6 = vcmp.eq.s32.totalorder %v11029_v26, %v7988_v32  ;;  %vm1031_vm13 = vcmp.eq.s32.totalorder %v11030_v29, %v7988_v32 }
 0x180   : > { %vm5431_vm2 = vmpackc.low %vm968_vm14, %vm966_vm12  ;;  %vm1034_vm14 = vcmp.eq.s32.totalorder %v11018_v40, %v7964_v51 }
 0x184   : > { %5426 = vmatpush1.bf16.xpose.msk.msra.mxu0 %vm5425_vm10, %v11024_v45  ;;  %vm1032_vm10 = vcmp.eq.s32.totalorder %v11030_v29, %v7964_v51 }
 0x185   : > { %5490 = vmatpush1.bf16.xpose.msk.msra.mxu1 %vm5489_vm1, %v11024_v45  ;;  %5428 = vmatprep.subr.msk.bf16.mxu0 %vm5427_vm4, %v11024_v45  ;;  %vm5495_vm1 = vmpackc.low %vm1032_vm10, %vm1030_vm15  ;;  %vm965_vm4 = vcmp.eq.s32.totalorder %v11027_v25, %v7988_v32 }
 0x186   : > { %5492 = vmatprep.subr.msk.bf16.mxu1 %vm5491_vm5, %v11024_v45  ;;  %vm967_vm5 = vcmp.eq.s32.totalorder %v11028_v24, %v7988_v32  ;;  %v11033_v24 = vld [vmem:[#allocation83_spill] sm:$0xff]  ;;  %vm5497_vm15 = vmpackc.low %vm1031_vm13, %vm1029_vm6  ;;  %vm974_vm6 = vcmp.eq.s32.totalorder %v11020_v53, %v7964_v51  ;;  %vm976_vm13 = vcmp.eq.s32.totalorder %v11021_v46, %v7964_v51 }
 0x187   : > { %vm5433_vm12 = vmpackc.low %vm967_vm5, %vm965_vm4  ;;  %vm1033_vm4 = vcmp.eq.s32.totalorder %v11018_v40, %v7988_v32  ;;  %vm1035_vm5 = vcmp.eq.s32.totalorder %v11033_v24, %v7988_v32  ;;  %v11034_v40 = vld [vmem:[#allocation89_spill] sm:$0xff] }
 0x188   : > { %vm5435_vm10 = vmpackc.low %vm972_vm7, %vm970_vm3  ;;  %vm1038_vm7 = vcmp.eq.s32.totalorder %v11022_v58, %v7964_v51 }
 0x18c   : > { %5430 = vmatpush1.bf16.xpose.msk.msra.mxu0 %vm5429_vm0, %v11024_v45  ;;  %vm1036_vm0 = vcmp.eq.s32.totalorder %v11033_v24, %v7964_v51 }
 0x18d   : > { %5494 = vmatpush1.bf16.xpose.msk.msra.mxu1 %vm5493_vm11, %v11024_v45  ;;  %5432 = vmatprep.subr.msk.bf16.mxu0 %vm5431_vm2, %v11024_v45  ;;  %vm5499_vm11 = vmpackc.low %vm1036_vm0, %vm1034_vm14  ;;  %vm969_vm2 = vcmp.eq.s32.totalorder %v11031_v39, %v7988_v32 }
 0x18e   : > { %5496 = vmatprep.subr.msk.bf16.mxu1 %vm5495_vm1, %v11024_v45  ;;  %vm971_vm1 = vcmp.eq.s32.totalorder %v11032_v30, %v7988_v32  ;;  %vm5501_vm14 = vmpackc.low %vm1035_vm5, %vm1033_vm4  ;;  %v8296_v30 = vrot.slane %v7644_v31, %v11034_v40 }
 0x18f   : > { %vm5437_vm3 = vmpackc.low %vm971_vm1, %vm969_vm2  ;;  %vm1037_vm2 = vcmp.eq.s32.totalorder %v11022_v58, %v7988_v32  ;;  %vm1039_vm1 = vcmp.eq.s32.totalorder %v11023_v54, %v7988_v32 }
 0x190   : > { %vm5439_vm0 = vmpackc.low %vm976_vm13, %vm974_vm6  ;;  %vm1495_vm4 = vcmp.eq.s32.totalorder %v10946_v2, %v8296_v30  ;;  %vm1497_vm5 = vcmp.eq.s32.totalorder %v10953_v3, %v8296_v30  ;;  %vm1559_vm13 = vcmp.eq.s32.totalorder %v7467_v56, %v8296_v30 }
 0x194   : > { %5434 = vmatpush1.bf16.xpose.msk.msra.mxu0 %vm5433_vm12, %v11024_v45  ;;  %vm1040_vm12 = vcmp.eq.s32.totalorder %v11023_v54, %v7964_v51  ;;  %v8320_v51 = vrot.slane %v7650_v37, %v11034_v40  ;;  %v11035_v40 = vld [vmem:[#allocation76_spill] sm:$0xff] }
 0x195   : > { %5498 = vmatpush1.bf16.xpose.msk.msra.mxu1 %vm5497_vm15, %v11024_v45  ;;  %5436 = vmatprep.subr.msk.bf16.mxu0 %vm5435_vm10, %v11024_v45  ;;  %vm5503_vm15 = vmpackc.low %vm1040_vm12, %vm1038_vm7  ;;  %vm973_vm10 = vcmp.eq.s32.totalorder %v11020_v53, %v7988_v32 }
 0x196   : > { %5500 = vmatprep.subr.msk.bf16.mxu1 %vm5499_vm11, %v11024_v45  ;;  %vm975_vm11 = vcmp.eq.s32.totalorder %v11021_v46, %v7988_v32  ;;  %vm5505_vm7 = vmpackc.low %vm1039_vm1, %vm1037_vm2  ;;  %vm1499_vm2 = vcmp.eq.s32.totalorder %v10952_v4, %v8296_v30  ;;  %vm1501_vm1 = vcmp.eq.s32.totalorder %v10951_v5, %v8296_v30  ;;  %v11036_v32 = vld [vmem:[#allocation77_spill] sm:$0xff] }
 0x197   : > { %vm5441_vm6 = vmpackc.low %vm975_vm11, %vm973_vm10  ;;  %vm1558_vm10 = vcmp.eq.s32.totalorder %v7467_v56, %v8320_v51  ;;  %vm1560_vm11 = vcmp.eq.s32.totalorder %v7470_v57, %v8320_v51 }
 0x198   : > { %vm5635_vm12 = vmpackc.low %vm1497_vm5, %vm1495_vm4  ;;  %vm1563_vm5 = vcmp.eq.s32.totalorder %v7477_v59, %v8296_v30 }
 0x19c   : > { %5438 = vmatpush1.bf16.xpose.msk.msra.mxu0 %vm5437_vm3, %v11024_v45  ;;  %vm1561_vm3 = vcmp.eq.s32.totalorder %v7470_v57, %v8296_v30 }
 0x19d   : > { %5502 = vmatpush1.bf16.xpose.msk.msra.mxu1 %vm5501_vm14, %v11024_v45  ;;  %5440 = vmatprep.subr.msk.bf16.mxu0 %vm5439_vm0, %v11024_v45  ;;  %vm5699_vm14 = vmpackc.low %vm1561_vm3, %vm1559_vm13  ;;  %vm1494_vm0 = vcmp.eq.s32.totalorder %v10946_v2, %v8320_v51 }
 0x19e   : > { %5504 = vmatprep.subr.msk.bf16.mxu1 %vm5503_vm15, %v11024_v45  ;;  %vm1496_vm15 = vcmp.eq.s32.totalorder %v10953_v3, %v8320_v51  ;;  %vm5701_vm13 = vmpackc.low %vm1560_vm11, %vm1558_vm10  ;;  %vm1503_vm10 = vcmp.eq.s32.totalorder %v10950_v6, %v8296_v30  ;;  %vm1505_vm11 = vcmp.eq.s32.totalorder %v10949_v7, %v8296_v30 }
 0x19f   : > { %vm5637_vm4 = vmpackc.low %vm1496_vm15, %vm1494_vm0  ;;  %vm1562_vm0 = vcmp.eq.s32.totalorder %v7477_v59, %v8320_v51  ;;  %vm1564_vm15 = vcmp.eq.s32.totalorder %v7480_v60, %v8320_v51 }
 0x1a0   : > { %vm5639_vm3 = vmpackc.low %vm1501_vm1, %vm1499_vm2  ;;  %vm1567_vm1 = vcmp.eq.s32.totalorder %v7483_v61, %v8296_v30 }
 0x1a4   : > { %5442 = vmatpush1.bf16.xpose.msk.msra.mxu0 %vm5441_vm6, %v11024_v45  ;;  %vm1565_vm6 = vcmp.eq.s32.totalorder %v7480_v60, %v8296_v30 }
 0x1a5   : > { %5506 = vmatpush1.bf16.xpose.msk.msra.mxu1 %vm5505_vm7, %v11024_v45  ;;  %5636 = vmatprep.subr.msk.bf16.mxu0 %vm5635_vm12, %v11024_v45  ;;  %vm5703_vm7 = vmpackc.low %vm1565_vm6, %vm1563_vm5  ;;  %vm1498_vm12 = vcmp.eq.s32.totalorder %v10952_v4, %v8320_v51 }
 0x1a6   : > { %5700 = vmatprep.subr.msk.bf16.mxu1 %vm5699_vm14, %v11024_v45  ;;  %vm1500_vm14 = vcmp.eq.s32.totalorder %v10951_v5, %v8320_v51  ;;  %vm5705_vm5 = vmpackc.low %vm1564_vm15, %vm1562_vm0  ;;  %vm1507_vm0 = vcmp.eq.s32.totalorder %v10948_v8, %v8296_v30  ;;  %vm1509_vm15 = vcmp.eq.s32.totalorder %v10947_v9, %v8296_v30 }
 0x1a7   : > { %vm5641_vm2 = vmpackc.low %vm1500_vm14, %vm1498_vm12  ;;  %vm1566_vm12 = vcmp.eq.s32.totalorder %v7483_v61, %v8320_v51  ;;  %vm1568_vm14 = vcmp.eq.s32.totalorder %v7486_v62, %v8320_v51 }
 0x1a8   : > { %vm5643_vm6 = vmpackc.low %vm1505_vm11, %vm1503_vm10  ;;  %vm1571_vm11 = vcmp.eq.s32.totalorder %v7493_v63, %v8296_v30 }
 0x1ab   : > { %1394 = vmatmul.mubr.bf16.vlgmr.msra.gmra.mrb[4].mxu0 %v11025_v35 }
 0x1ac   : > { %1435 = vmatmul.mubr.bf16.vlgmr.msra.gmra.mrb[4].mxu1 %v11025_v35  ;;  %5638 = vmatpush1.bf16.xpose.msk.msra.mxu0 %vm5637_vm4, %v11024_v45  ;;  %vm1569_vm4 = vcmp.eq.s32.totalorder %v7486_v62, %v8296_v30 }
 0x1ad   : > { %5702 = vmatpush1.bf16.xpose.msk.msra.mxu1 %vm5701_vm13, %v11024_v45  ;;  %5640 = vmatprep.subr.msk.bf16.mxu0 %vm5639_vm3, %v11024_v45  ;;  %vm5707_vm13 = vmpackc.low %vm1569_vm4, %vm1567_vm1  ;;  %vm1502_vm3 = vcmp.eq.s32.totalorder %v10950_v6, %v8320_v51 }
 0x1ae   : > { %5704 = vmatprep.subr.msk.bf16.mxu1 %vm5703_vm7, %v11024_v45  ;;  %1974 = vmatprep.mubr.bf16.mxu0 %v11026_v38  ;;  %vm1504_vm7 = vcmp.eq.s32.totalorder %v10949_v7, %v8320_v51  ;;  %vm5709_vm1 = vmpackc.low %vm1568_vm14, %vm1566_vm12  ;;  %vm1511_vm12 = vcmp.eq.s32.totalorder %v10955_v10, %v8296_v30  ;;  %vm1513_vm14 = vcmp.eq.s32.totalorder %v10956_v11, %v8296_v30 }
 0x1af   : > { %2015 = vmatprep.mubr.bf16.mxu1 %v11026_v38  ;;  %vm5645_vm10 = vmpackc.low %vm1504_vm7, %vm1502_vm3  ;;  %vm1570_vm3 = vcmp.eq.s32.totalorder %v7493_v63, %v8320_v51  ;;  %vm1572_vm7 = vcmp.eq.s32.totalorder %v10954_v0, %v8320_v51 }
 0x1b0   : > { %vm5647_vm4 = vmpackc.low %vm1509_vm15, %vm1507_vm0  ;;  %vm1575_vm15 = vcmp.eq.s32.totalorder %v10957_v1, %v8296_v30 }
 0x1b4   : > { %5642 = vmatpush1.bf16.xpose.msk.msra.mxu0 %vm5641_vm2, %v11024_v45  ;;  %vm1573_vm2 = vcmp.eq.s32.totalorder %v10954_v0, %v8296_v30 }
 0x1b5   : > { %5706 = vmatpush1.bf16.xpose.msk.msra.mxu1 %vm5705_vm5, %v11024_v45  ;;  %5644 = vmatprep.subr.msk.bf16.mxu0 %vm5643_vm6, %v11024_v45  ;;  %vm5711_vm5 = vmpackc.low %vm1573_vm2, %vm1571_vm11  ;;  %vm1506_vm6 = vcmp.eq.s32.totalorder %v10948_v8, %v8320_v51 }
 0x1b6   : > { %5708 = vmatprep.subr.msk.bf16.mxu1 %vm5707_vm13, %v11024_v45  ;;  %vm1508_vm13 = vcmp.eq.s32.totalorder %v10947_v9, %v8320_v51  ;;  %vm5713_vm11 = vmpackc.low %vm1572_vm7, %vm1570_vm3  ;;  %vm1515_vm3 = vcmp.eq.s32.totalorder %v10959_v12, %v8296_v30  ;;  %vm1517_vm7 = vcmp.eq.s32.totalorder %v10960_v13, %v8296_v30 }
 0x1b7   : > { %vm5649_vm0 = vmpackc.low %vm1508_vm13, %vm1506_vm6  ;;  %vm1574_vm6 = vcmp.eq.s32.totalorder %v10957_v1, %v8320_v51  ;;  %vm1576_vm13 = vcmp.eq.s32.totalorder %v10958_v17, %v8320_v51 }
 0x1b8   : > { %vm5651_vm2 = vmpackc.low %vm1513_vm14, %vm1511_vm12  ;;  %vm1579_vm14 = vcmp.eq.s32.totalorder %v10961_v21, %v8296_v30 }
 0x1bc   : > { %5646 = vmatpush1.bf16.xpose.msk.msra.mxu0 %vm5645_vm10, %v11024_v45  ;;  %vm1577_vm10 = vcmp.eq.s32.totalorder %v10958_v17, %v8296_v30 }
 0x1bd   : > { %5710 = vmatpush1.bf16.xpose.msk.msra.mxu1 %vm5709_vm1, %v11024_v45  ;;  %5648 = vmatprep.subr.msk.bf16.mxu0 %vm5647_vm4, %v11024_v45  ;;  %vm5715_vm1 = vmpackc.low %vm1577_vm10, %vm1575_vm15  ;;  %vm1510_vm4 = vcmp.eq.s32.totalorder %v10955_v10, %v8320_v51 }
 0x1be   : > { %5712 = vmatprep.subr.msk.bf16.mxu1 %vm5711_vm5, %v11024_v45  ;;  %vm1512_vm5 = vcmp.eq.s32.totalorder %v10956_v11, %v8320_v51  ;;  %vm5717_vm15 = vmpackc.low %vm1576_vm13, %vm1574_vm6  ;;  %vm1519_vm6 = vcmp.eq.s32.totalorder %v10984_v27, %v8296_v30  ;;  %vm1521_vm13 = vcmp.eq.s32.totalorder %v10985_v28, %v8296_v30 }
 0x1bf   : > { %vm5653_vm12 = vmpackc.low %vm1512_vm5, %vm1510_vm4  ;;  %vm1578_vm4 = vcmp.eq.s32.totalorder %v10961_v21, %v8320_v51  ;;  %vm1580_vm5 = vcmp.eq.s32.totalorder %v10962_v22, %v8320_v51 }
 0x1c0   : > { %vm5655_vm10 = vmpackc.low %vm1517_vm7, %vm1515_vm3  ;;  %vm1583_vm7 = vcmp.eq.s32.totalorder %v10986_v34, %v8296_v30 }
 0x1c4   : > { %5650 = vmatpush1.bf16.xpose.msk.msra.mxu0 %vm5649_vm0, %v11024_v45  ;;  %vm1581_vm0 = vcmp.eq.s32.totalorder %v10962_v22, %v8296_v30 }
 0x1c5   : > { %5714 = vmatpush1.bf16.xpose.msk.msra.mxu1 %vm5713_vm11, %v11024_v45  ;;  %5652 = vmatprep.subr.msk.bf16.mxu0 %vm5651_vm2, %v11024_v45  ;;  %vm5719_vm11 = vmpackc.low %vm1581_vm0, %vm1579_vm14  ;;  %vm1514_vm2 = vcmp.eq.s32.totalorder %v10959_v12, %v8320_v51 }
 0x1c6   : > { %5716 = vmatprep.subr.msk.bf16.mxu1 %vm5715_vm1, %v11024_v45  ;;  %vm1516_vm1 = vcmp.eq.s32.totalorder %v10960_v13, %v8320_v51  ;;  %vm5721_vm14 = vmpackc.low %vm1580_vm5, %vm1578_vm4  ;;  %vm1523_vm4 = vcmp.eq.s32.totalorder %v10988_v36, %v8296_v30  ;;  %vm1525_vm5 = vcmp.eq.s32.totalorder %v10989_v16, %v8296_v30 }
 0x1c7   : > { %vm5657_vm3 = vmpackc.low %vm1516_vm1, %vm1514_vm2  ;;  %vm1582_vm2 = vcmp.eq.s32.totalorder %v10986_v34, %v8320_v51  ;;  %vm1584_vm1 = vcmp.eq.s32.totalorder %v10987_v33, %v8320_v51 }
 0x1c8   : > { %vm5659_vm0 = vmpackc.low %vm1521_vm13, %vm1519_vm6  ;;  %vm1587_vm13 = vcmp.eq.s32.totalorder %v10990_v20, %v8296_v30 }
 0x1cc   : > { %5654 = vmatpush1.bf16.xpose.msk.msra.mxu0 %vm5653_vm12, %v11024_v45  ;;  %vm1585_vm12 = vcmp.eq.s32.totalorder %v10987_v33, %v8296_v30 }
 0x1cd   : > { %5718 = vmatpush1.bf16.xpose.msk.msra.mxu1 %vm5717_vm15, %v11024_v45  ;;  %5656 = vmatprep.subr.msk.bf16.mxu0 %vm5655_vm10, %v11024_v45  ;;  %vm5723_vm15 = vmpackc.low %vm1585_vm12, %vm1583_vm7  ;;  %vm1518_vm10 = vcmp.eq.s32.totalorder %v10984_v27, %v8320_v51 }
 0x1ce   : > { %5720 = vmatprep.subr.msk.bf16.mxu1 %vm5719_vm11, %v11024_v45  ;;  %vm1520_vm11 = vcmp.eq.s32.totalorder %v10985_v28, %v8320_v51  ;;  %vm5725_vm7 = vmpackc.low %vm1584_vm1, %vm1582_vm2  ;;  %vm1527_vm2 = vcmp.eq.s32.totalorder %v10992_v41, %v8296_v30  ;;  %vm1529_vm1 = vcmp.eq.s32.totalorder %v10993_v42, %v8296_v30 }
 0x1cf   : > { %vm5661_vm6 = vmpackc.low %vm1520_vm11, %vm1518_vm10  ;;  %vm1586_vm10 = vcmp.eq.s32.totalorder %v10990_v20, %v8320_v51  ;;  %vm1588_vm11 = vcmp.eq.s32.totalorder %v10991_v19, %v8320_v51 }
 0x1d0   : > { %vm5663_vm12 = vmpackc.low %vm1525_vm5, %vm1523_vm4  ;;  %vm1591_vm5 = vcmp.eq.s32.totalorder %v10994_v18, %v8296_v30 }
 0x1d4   : > { %5658 = vmatpush1.bf16.xpose.msk.msra.mxu0 %vm5657_vm3, %v11024_v45  ;;  %vm1589_vm3 = vcmp.eq.s32.totalorder %v10991_v19, %v8296_v30 }
 0x1d5   : > { %5722 = vmatpush1.bf16.xpose.msk.msra.mxu1 %vm5721_vm14, %v11024_v45  ;;  %5660 = vmatprep.subr.msk.bf16.mxu0 %vm5659_vm0, %v11024_v45  ;;  %vm5727_vm14 = vmpackc.low %vm1589_vm3, %vm1587_vm13  ;;  %vm1522_vm0 = vcmp.eq.s32.totalorder %v10988_v36, %v8320_v51 }
 0x1d6   : > { %5724 = vmatprep.subr.msk.bf16.mxu1 %vm5723_vm15, %v11024_v45  ;;  %vm1524_vm15 = vcmp.eq.s32.totalorder %v10989_v16, %v8320_v51  ;;  %vm5729_vm13 = vmpackc.low %vm1588_vm11, %vm1586_vm10  ;;  %vm1531_vm10 = vcmp.eq.s32.totalorder %v10996_v44, %v8296_v30  ;;  %vm1533_vm11 = vcmp.eq.s32.totalorder %v10997_v48, %v8296_v30 }
 0x1d7   : > { %vm5665_vm4 = vmpackc.low %vm1524_vm15, %vm1522_vm0  ;;  %vm1590_vm0 = vcmp.eq.s32.totalorder %v10994_v18, %v8320_v51  ;;  %vm1592_vm15 = vcmp.eq.s32.totalorder %v10995_v43, %v8320_v51 }
 0x1d8   : > { %vm5667_vm3 = vmpackc.low %vm1529_vm1, %vm1527_vm2  ;;  %vm1595_vm1 = vcmp.eq.s32.totalorder %v10998_v15, %v8296_v30 }
 0x1dc   : > { %5662 = vmatpush1.bf16.xpose.msk.msra.mxu0 %vm5661_vm6, %v11024_v45  ;;  %vm1593_vm6 = vcmp.eq.s32.totalorder %v10995_v43, %v8296_v30 }
 0x1dd   : > { %5726 = vmatpush1.bf16.xpose.msk.msra.mxu1 %vm5725_vm7, %v11024_v45  ;;  %5664 = vmatprep.subr.msk.bf16.mxu0 %vm5663_vm12, %v11024_v45  ;;  %vm5731_vm7 = vmpackc.low %vm1593_vm6, %vm1591_vm5  ;;  %vm1526_vm12 = vcmp.eq.s32.totalorder %v10992_v41, %v8320_v51 }
 0x1de   : > { %5728 = vmatprep.subr.msk.bf16.mxu1 %vm5727_vm14, %v11024_v45  ;;  %vm1528_vm14 = vcmp.eq.s32.totalorder %v10993_v42, %v8320_v51  ;;  %vm5733_vm5 = vmpackc.low %vm1592_vm15, %vm1590_vm0  ;;  %vm1535_vm0 = vcmp.eq.s32.totalorder %v11000_v47, %v8296_v30  ;;  %vm1537_vm15 = vcmp.eq.s32.totalorder %v11001_v49, %v8296_v30 }
 0x1df   : > { %vm5669_vm2 = vmpackc.low %vm1528_vm14, %vm1526_vm12  ;;  %vm1594_vm12 = vcmp.eq.s32.totalorder %v10998_v15, %v8320_v51  ;;  %vm1596_vm14 = vcmp.eq.s32.totalorder %v10999_v14, %v8320_v51 }
 0x1e0   : > { %vm5671_vm6 = vmpackc.low %vm1533_vm11, %vm1531_vm10  ;;  %vm1599_vm11 = vcmp.eq.s32.totalorder %v11002_v50, %v8296_v30 }
 0x1e4   : > { %5666 = vmatpush1.bf16.xpose.msk.msra.mxu0 %vm5665_vm4, %v11024_v45  ;;  %vm1597_vm4 = vcmp.eq.s32.totalorder %v10999_v14, %v8296_v30  ;;  %v11042_v14 = vld [vmem:[#allocation78_spill] sm:$0xff] }
 0x1e5   : > { %5730 = vmatpush1.bf16.xpose.msk.msra.mxu1 %vm5729_vm13, %v11024_v45  ;;  %5668 = vmatprep.subr.msk.bf16.mxu0 %vm5667_vm3, %v11024_v45  ;;  %vm5735_vm13 = vmpackc.low %vm1597_vm4, %vm1595_vm1  ;;  %vm1530_vm3 = vcmp.eq.s32.totalorder %v10996_v44, %v8320_v51 }
 0x1e6   : > { %5732 = vmatprep.subr.msk.bf16.mxu1 %vm5731_vm7, %v11024_v45  ;;  %vm1532_vm7 = vcmp.eq.s32.totalorder %v10997_v48, %v8320_v51  ;;  %vm5737_vm1 = vmpackc.low %vm1596_vm14, %vm1594_vm12  ;;  %vm1539_vm12 = vcmp.eq.s32.totalorder %v11004_v55, %v8296_v30  ;;  %vm1541_vm14 = vcmp.eq.s32.totalorder %v11005_v23, %v8296_v30 }
 0x1e7   : > { %vm5673_vm10 = vmpackc.low %vm1532_vm7, %vm1530_vm3  ;;  %vm1598_vm3 = vcmp.eq.s32.totalorder %v11002_v50, %v8320_v51  ;;  %vm1600_vm7 = vcmp.eq.s32.totalorder %v11003_v52, %v8320_v51 }
 0x1e8   : > { %vm5675_vm4 = vmpackc.low %vm1537_vm15, %vm1535_vm0  ;;  %vm1603_vm15 = vcmp.eq.s32.totalorder %v11035_v40, %v8296_v30 }
 0x1ec   : > { %5670 = vmatpush1.bf16.xpose.msk.msra.mxu0 %vm5669_vm2, %v11024_v45  ;;  %vm1601_vm2 = vcmp.eq.s32.totalorder %v11003_v52, %v8296_v30 }
 0x1ed   : > { %5734 = vmatpush1.bf16.xpose.msk.msra.mxu1 %vm5733_vm5, %v11024_v45  ;;  %5672 = vmatprep.subr.msk.bf16.mxu0 %vm5671_vm6, %v11024_v45  ;;  %vm5739_vm5 = vmpackc.low %vm1601_vm2, %vm1599_vm11  ;;  %vm1534_vm6 = vcmp.eq.s32.totalorder %v11000_v47, %v8320_v51  ;;  %v11040_v47 = vld [vmem:[#allocation51_spill] sm:$0xff] }
 0x1ee   : > { %5736 = vmatprep.subr.msk.bf16.mxu1 %vm5735_vm13, %v11024_v45  ;;  %vm1536_vm13 = vcmp.eq.s32.totalorder %v11001_v49, %v8320_v51  ;;  %vm5741_vm11 = vmpackc.low %vm1600_vm7, %vm1598_vm3  ;;  %vm1543_vm3 = vcmp.eq.s32.totalorder %v11040_v47, %v8296_v30 }
 0x1ef   : > { %vm5677_vm0 = vmpackc.low %vm1536_vm13, %vm1534_vm6  ;;  %vm1602_vm6 = vcmp.eq.s32.totalorder %v11035_v40, %v8320_v51  ;;  %vm1604_vm13 = vcmp.eq.s32.totalorder %v11036_v32, %v8320_v51  ;;  %v11043_v40 = vld [vmem:[#allocation79_spill] sm:$0xff] }
 0x1f0   : > { %vm5679_vm2 = vmpackc.low %vm1541_vm14, %vm1539_vm12  ;;  %vm1607_vm14 = vcmp.eq.s32.totalorder %v11042_v14, %v8296_v30 }
 0x1f4   : > { %5674 = vmatpush1.bf16.xpose.msk.msra.mxu0 %vm5673_vm10, %v11024_v45  ;;  %vm1605_vm10 = vcmp.eq.s32.totalorder %v11036_v32, %v8296_v30 }
 0x1f5   : > { %5738 = vmatpush1.bf16.xpose.msk.msra.mxu1 %vm5737_vm1, %v11024_v45  ;;  %5676 = vmatprep.subr.msk.bf16.mxu0 %vm5675_vm4, %v11024_v45  ;;  %vm5743_vm1 = vmpackc.low %vm1605_vm10, %vm1603_vm15  ;;  %vm1538_vm4 = vcmp.eq.s32.totalorder %v11004_v55, %v8320_v51  ;;  %v11041_v55 = vld [vmem:[#allocation52_spill] sm:$0xff] }
 0x1f6   : > { %5740 = vmatprep.subr.msk.bf16.mxu1 %vm5739_vm5, %v11024_v45  ;;  %vm1540_vm5 = vcmp.eq.s32.totalorder %v11005_v23, %v8320_v51  ;;  %vm1545_vm7 = vcmp.eq.s32.totalorder %v11041_v55, %v8296_v30  ;;  %vm5745_vm15 = vmpackc.low %vm1604_vm13, %vm1602_vm6  ;;  %vm1547_vm6 = vcmp.eq.s32.totalorder %v11027_v25, %v8296_v30 }
 0x1f7   : > { %vm5681_vm12 = vmpackc.low %vm1540_vm5, %vm1538_vm4  ;;  %vm1606_vm4 = vcmp.eq.s32.totalorder %v11042_v14, %v8320_v51  ;;  %vm1608_vm5 = vcmp.eq.s32.totalorder %v11043_v40, %v8320_v51 }
 0x1f8   : > { %vm5683_vm10 = vmpackc.low %vm1545_vm7, %vm1543_vm3  ;;  %vm1611_vm7 = vcmp.eq.s32.totalorder %v11029_v26, %v8296_v30 }
 0x1fc   : > { %5678 = vmatpush1.bf16.xpose.msk.msra.mxu0 %vm5677_vm0, %v11024_v45  ;;  %vm1609_vm0 = vcmp.eq.s32.totalorder %v11043_v40, %v8296_v30 }
 0x1fd   : > { %5742 = vmatpush1.bf16.xpose.msk.msra.mxu1 %vm5741_vm11, %v11024_v45  ;;  %5680 = vmatprep.subr.msk.bf16.mxu0 %vm5679_vm2, %v11024_v45  ;;  %vm5747_vm11 = vmpackc.low %vm1609_vm0, %vm1607_vm14  ;;  %vm1542_vm2 = vcmp.eq.s32.totalorder %v11040_v47, %v8320_v51 }
 0x1fe   : > { %v8553_v52 = vpop.f32.mrb[0].mxu0  ;;  %5744 = vmatprep.subr.msk.bf16.mxu1 %vm5743_vm1, %v11024_v45  ;;  %vm1544_vm1 = vcmp.eq.s32.totalorder %v11041_v55, %v8320_v51  ;;  %vm5749_vm14 = vmpackc.low %vm1608_vm5, %vm1606_vm4  ;;  %vm1551_vm4 = vcmp.eq.s32.totalorder %v11031_v39, %v8296_v30 }
 0x1ff   : > { %11037 = vst [vmem:[#allocation89_spill] sm:$0xff] %v8553_v52  ;;  %v8560_v50 = vpop.f32.mrb[0].mxu1  ;;  %v8562_v49 = vpop.f32.mrb[1].mxu0  ;;  %vm5685_vm3 = vmpackc.low %vm1544_vm1, %vm1542_vm2  ;;  %vm1610_vm2 = vcmp.eq.s32.totalorder %v11029_v26, %v8320_v51  ;;  %vm1612_vm1 = vcmp.eq.s32.totalorder %v11030_v29, %v8320_v51 }
 0x200   : > { %11038 = vst [vmem:[#allocation90_spill] sm:$0xff] %v8560_v50  ;;  %11039 = vst [vmem:[#allocation91_spill] sm:$0xff] %v8562_v49  ;;  %v8568_v23 = vpop.f32.mrb[1].mxu1  ;;  %v818_v52 = vpop.f32.mrb[2].mxu0 }
 0x201   : > { %v859_v32 = vpop.f32.mrb[2].mxu1  ;;  %v819_v50 = vpop.f32.mrb[3].mxu0  ;;  %v11046_v52 = vld [vmem:[#allocation82_spill] sm:$0xff] }
 0x202   : > { %v860_v49 = vpop.f32.mrb[3].mxu1  ;;  %v11045_v50 = vld [vmem:[#allocation56_spill] sm:$0xff]  ;;  %v11047_v32 = vld [vmem:[#allocation86_spill] sm:$0xff] }
 0x203   : > { %v11044_v49 = vld [vmem:[#allocation54_spill] sm:$0xff]  ;;  %vm1553_vm5 = vcmp.eq.s32.totalorder %v11045_v50, %v8296_v30 }
 0x204   : > { %5682 = vmatpush1.bf16.xpose.msk.msra.mxu0 %vm5681_vm12, %v11024_v45  ;;  %vm1549_vm13 = vcmp.eq.s32.totalorder %v11044_v49, %v8296_v30  ;;  %vm1613_vm12 = vcmp.eq.s32.totalorder %v11030_v29, %v8296_v30 }
 0x205   : > { %5746 = vmatpush1.bf16.xpose.msk.msra.mxu1 %vm5745_vm15, %v11024_v45  ;;  %5684 = vmatprep.subr.msk.bf16.mxu0 %vm5683_vm10, %v11024_v45  ;;  %vm5687_vm0 = vmpackc.low %vm1549_vm13, %vm1547_vm6  ;;  %vm1546_vm10 = vcmp.eq.s32.totalorder %v11027_v25, %v8320_v51  ;;  %vm1615_vm13 = vcmp.eq.s32.totalorder %v11046_v52, %v8296_v30 }
 0x206   : > { %5748 = vmatprep.subr.msk.bf16.mxu1 %vm5747_vm11, %v11024_v45  ;;  %vm5751_vm15 = vmpackc.low %vm1613_vm12, %vm1611_vm7  ;;  %vm1548_vm11 = vcmp.eq.s32.totalorder %v11044_v49, %v8320_v51 }
 0x207   : > { %vm5689_vm6 = vmpackc.low %vm1548_vm11, %vm1546_vm10  ;;  %vm1614_vm10 = vcmp.eq.s32.totalorder %v11046_v52, %v8320_v51  ;;  %vm1616_vm11 = vcmp.eq.s32.totalorder %v11033_v24, %v8320_v51  ;;  %v8636_v52 = vrot.slane %v7644_v31, %v11047_v32 }
 0x208   : > { %vm5753_vm7 = vmpackc.low %vm1612_vm1, %vm1610_vm2  ;;  %vm1555_vm2 = vcmp.eq.s32.totalorder %v11020_v53, %v8296_v30  ;;  %vm1557_vm1 = vcmp.eq.s32.totalorder %v11021_v46, %v8296_v30 }
 0x209   : > { %vm5691_vm12 = vmpackc.low %vm1553_vm5, %vm1551_vm4  ;;  %vm1619_vm5 = vcmp.eq.s32.totalorder %v11022_v58, %v8296_v30 }
 0x20c   : > { %5686 = vmatpush1.bf16.xpose.msk.msra.mxu0 %vm5685_vm3, %v11024_v45  ;;  %vm1617_vm3 = vcmp.eq.s32.totalorder %v11033_v24, %v8296_v30 }
 0x20d   : > { %5750 = vmatpush1.bf16.xpose.msk.msra.mxu1 %vm5749_vm14, %v11024_v45  ;;  %5688 = vmatprep.subr.msk.bf16.mxu0 %vm5687_vm0, %v11024_v45  ;;  %vm5755_vm14 = vmpackc.low %vm1617_vm3, %vm1615_vm13  ;;  %vm1550_vm0 = vcmp.eq.s32.totalorder %v11031_v39, %v8320_v51 }
 0x20e   : > { %5752 = vmatprep.subr.msk.bf16.mxu1 %vm5751_vm15, %v11024_v45  ;;  %vm1552_vm15 = vcmp.eq.s32.totalorder %v11045_v50, %v8320_v51  ;;  %vm5757_vm13 = vmpackc.low %vm1616_vm11, %vm1614_vm10  ;;  %vm2076_vm10 = vcmp.eq.s32.totalorder %v10946_v2, %v8636_v52  ;;  %vm2078_vm11 = vcmp.eq.s32.totalorder %v10953_v3, %v8636_v52 }
 0x20f   : > { %vm5693_vm4 = vmpackc.low %vm1552_vm15, %vm1550_vm0  ;;  %vm1618_vm0 = vcmp.eq.s32.totalorder %v11022_v58, %v8320_v51  ;;  %vm1620_vm15 = vcmp.eq.s32.totalorder %v11023_v54, %v8320_v51 }
 0x210   : > { %vm5695_vm3 = vmpackc.low %vm1557_vm1, %vm1555_vm2  ;;  %vm2140_vm1 = vcmp.eq.s32.totalorder %v7467_v56, %v8636_v52 }
 0x214   : > { %5690 = vmatpush1.bf16.xpose.msk.msra.mxu0 %vm5689_vm6, %v11024_v45  ;;  %vm1621_vm6 = vcmp.eq.s32.totalorder %v11023_v54, %v8296_v30  ;;  %v8660_v30 = vrot.slane %v7650_v37, %v11047_v32  ;;  %v320_v32 = vstv %s8834_s11 }
 0x215   : > { %5754 = vmatpush1.bf16.xpose.msk.msra.mxu1 %vm5753_vm7, %v11024_v45  ;;  %5692 = vmatprep.subr.msk.bf16.mxu0 %vm5691_vm12, %v11024_v45  ;;  %vm5759_vm7 = vmpackc.low %vm1621_vm6, %vm1619_vm5  ;;  %vm1554_vm12 = vcmp.eq.s32.totalorder %v11020_v53, %v8320_v51 }
 0x216   : > { %5756 = vmatprep.subr.msk.bf16.mxu1 %vm5755_vm14, %v11024_v45  ;;  %vm1556_vm14 = vcmp.eq.s32.totalorder %v11021_v46, %v8320_v51  ;;  %vm5761_vm5 = vmpackc.low %vm1620_vm15, %vm1618_vm0  ;;  %vm2080_vm0 = vcmp.eq.s32.totalorder %v10952_v4, %v8636_v52  ;;  %vm2082_vm15 = vcmp.eq.s32.totalorder %v10951_v5, %v8636_v52  ;;  %v11048_v51 = vld [vmem:[#allocation73_spill] sm:$0xff] }
 0x217   : > { %vm5697_vm2 = vmpackc.low %vm1556_vm14, %vm1554_vm12  ;;  %vm2139_vm12 = vcmp.eq.s32.totalorder %v7467_v56, %v8660_v30  ;;  %vm2141_vm14 = vcmp.eq.s32.totalorder %v7470_v57, %v8660_v30 }
 0x218   : > { %vm5891_vm6 = vmpackc.low %vm2078_vm11, %vm2076_vm10  ;;  %vm2144_vm11 = vcmp.eq.s32.totalorder %v7477_v59, %v8636_v52 }
 0x21c   : > { %5694 = vmatpush1.bf16.xpose.msk.msra.mxu0 %vm5693_vm4, %v11024_v45  ;;  %vm2142_vm4 = vcmp.eq.s32.totalorder %v7470_v57, %v8636_v52 }
 0x21d   : > { %5758 = vmatpush1.bf16.xpose.msk.msra.mxu1 %vm5757_vm13, %v11024_v45  ;;  %5696 = vmatprep.subr.msk.bf16.mxu0 %vm5695_vm3, %v11024_v45  ;;  %vm5955_vm13 = vmpackc.low %vm2142_vm4, %vm2140_vm1  ;;  %vm2075_vm3 = vcmp.eq.s32.totalorder %v10946_v2, %v8660_v30 }
 0x21e   : > { %5760 = vmatprep.subr.msk.bf16.mxu1 %vm5759_vm7, %v11024_v45  ;;  %vm2077_vm7 = vcmp.eq.s32.totalorder %v10953_v3, %v8660_v30  ;;  %vm5957_vm1 = vmpackc.low %vm2141_vm14, %vm2139_vm12  ;;  %vm2084_vm12 = vcmp.eq.s32.totalorder %v10950_v6, %v8636_v52  ;;  %vm2086_vm14 = vcmp.eq.s32.totalorder %v10949_v7, %v8636_v52 }
 0x21f   : > { %vm5893_vm10 = vmpackc.low %vm2077_vm7, %vm2075_vm3  ;;  %vm2143_vm3 = vcmp.eq.s32.totalorder %v7477_v59, %v8660_v30  ;;  %vm2145_vm7 = vcmp.eq.s32.totalorder %v7480_v60, %v8660_v30 }
 0x220   : > { %vm5895_vm4 = vmpackc.low %vm2082_vm15, %vm2080_vm0  ;;  %vm2148_vm15 = vcmp.eq.s32.totalorder %v7483_v61, %v8636_v52 }
 0x224   : > { %5698 = vmatpush1.bf16.xpose.msk.msra.mxu0 %vm5697_vm2, %v11024_v45  ;;  %vm2146_vm2 = vcmp.eq.s32.totalorder %v7480_v60, %v8636_v52 }
 0x225   : > { %5762 = vmatpush1.bf16.xpose.msk.msra.mxu1 %vm5761_vm5, %v11024_v45  ;;  %5892 = vmatprep.subr.msk.bf16.mxu0 %vm5891_vm6, %v11024_v45  ;;  %vm5959_vm5 = vmpackc.low %vm2146_vm2, %vm2144_vm11  ;;  %vm2079_vm6 = vcmp.eq.s32.totalorder %v10952_v4, %v8660_v30 }
 0x226   : > { %5956 = vmatprep.subr.msk.bf16.mxu1 %vm5955_vm13, %v11024_v45  ;;  %vm2081_vm13 = vcmp.eq.s32.totalorder %v10951_v5, %v8660_v30  ;;  %vm5961_vm11 = vmpackc.low %vm2145_vm7, %vm2143_vm3  ;;  %vm2088_vm3 = vcmp.eq.s32.totalorder %v10948_v8, %v8636_v52  ;;  %vm2090_vm7 = vcmp.eq.s32.totalorder %v10947_v9, %v8636_v52 }
 0x227   : > { %vm5897_vm0 = vmpackc.low %vm2081_vm13, %vm2079_vm6  ;;  %vm2147_vm6 = vcmp.eq.s32.totalorder %v7483_v61, %v8660_v30  ;;  %vm2149_vm13 = vcmp.eq.s32.totalorder %v7486_v62, %v8660_v30 }
 0x228   : > { %vm5899_vm2 = vmpackc.low %vm2086_vm14, %vm2084_vm12  ;;  %vm2152_vm14 = vcmp.eq.s32.totalorder %v7493_v63, %v8636_v52 }
 0x22b   : > { %1975 = vmatmul.mubr.bf16.vlgmr.msra.gmra.mrb[8].mxu0 %v11025_v35 }
 0x22c   : > { %2016 = vmatmul.mubr.bf16.vlgmr.msra.gmra.mrb[8].mxu1 %v11025_v35  ;;  %5894 = vmatpush1.bf16.xpose.msk.msra.mxu0 %vm5893_vm10, %v11024_v45  ;;  %vm2150_vm10 = vcmp.eq.s32.totalorder %v7486_v62, %v8636_v52 }
 0x22d   : > { %5958 = vmatpush1.bf16.xpose.msk.msra.mxu1 %vm5957_vm1, %v11024_v45  ;;  %5896 = vmatprep.subr.msk.bf16.mxu0 %vm5895_vm4, %v11024_v45  ;;  %vm5963_vm1 = vmpackc.low %vm2150_vm10, %vm2148_vm15  ;;  %vm2083_vm4 = vcmp.eq.s32.totalorder %v10950_v6, %v8660_v30 }
 0x22e   : > { %5960 = vmatprep.subr.msk.bf16.mxu1 %vm5959_vm5, %v11024_v45  ;;  %2555 = vmatprep.mubr.bf16.mxu0 %v11026_v38  ;;  %vm2085_vm5 = vcmp.eq.s32.totalorder %v10949_v7, %v8660_v30  ;;  %vm5965_vm15 = vmpackc.low %vm2149_vm13, %vm2147_vm6  ;;  %vm2092_vm6 = vcmp.eq.s32.totalorder %v10955_v10, %v8636_v52  ;;  %vm2094_vm13 = vcmp.eq.s32.totalorder %v10956_v11, %v8636_v52 }
 0x22f   : > { %2596 = vmatprep.mubr.bf16.mxu1 %v11026_v38  ;;  %vm5901_vm12 = vmpackc.low %vm2085_vm5, %vm2083_vm4  ;;  %vm2151_vm4 = vcmp.eq.s32.totalorder %v7493_v63, %v8660_v30  ;;  %vm2153_vm5 = vcmp.eq.s32.totalorder %v10954_v0, %v8660_v30 }
 0x230   : > { %vm5903_vm10 = vmpackc.low %vm2090_vm7, %vm2088_vm3  ;;  %vm2156_vm7 = vcmp.eq.s32.totalorder %v10957_v1, %v8636_v52 }
 0x234   : > { %5898 = vmatpush1.bf16.xpose.msk.msra.mxu0 %vm5897_vm0, %v11024_v45  ;;  %vm2154_vm0 = vcmp.eq.s32.totalorder %v10954_v0, %v8636_v52 }
 0x235   : > { %5962 = vmatpush1.bf16.xpose.msk.msra.mxu1 %vm5961_vm11, %v11024_v45  ;;  %5900 = vmatprep.subr.msk.bf16.mxu0 %vm5899_vm2, %v11024_v45  ;;  %vm5967_vm11 = vmpackc.low %vm2154_vm0, %vm2152_vm14  ;;  %vm2087_vm2 = vcmp.eq.s32.totalorder %v10948_v8, %v8660_v30 }
 0x236   : > { %5964 = vmatprep.subr.msk.bf16.mxu1 %vm5963_vm1, %v11024_v45  ;;  %vm2089_vm1 = vcmp.eq.s32.totalorder %v10947_v9, %v8660_v30  ;;  %vm5969_vm14 = vmpackc.low %vm2153_vm5, %vm2151_vm4  ;;  %vm2096_vm4 = vcmp.eq.s32.totalorder %v10959_v12, %v8636_v52  ;;  %vm2098_vm5 = vcmp.eq.s32.totalorder %v10960_v13, %v8636_v52 }
 0x237   : > { %vm5905_vm3 = vmpackc.low %vm2089_vm1, %vm2087_vm2  ;;  %vm2155_vm2 = vcmp.eq.s32.totalorder %v10957_v1, %v8660_v30  ;;  %vm2157_vm1 = vcmp.eq.s32.totalorder %v10958_v17, %v8660_v30 }
 0x238   : > { %vm5907_vm0 = vmpackc.low %vm2094_vm13, %vm2092_vm6  ;;  %vm2160_vm13 = vcmp.eq.s32.totalorder %v10961_v21, %v8636_v52 }
 0x23c   : > { %5902 = vmatpush1.bf16.xpose.msk.msra.mxu0 %vm5901_vm12, %v11024_v45  ;;  %vm2158_vm12 = vcmp.eq.s32.totalorder %v10958_v17, %v8636_v52  ;;  %v865_v17 = vld [vmem:[#allocation13 + $0x18] sm:$0xff] }
 0x23d   : > { %5966 = vmatpush1.bf16.xpose.msk.msra.mxu1 %vm5965_vm15, %v11024_v45  ;;  %5904 = vmatprep.subr.msk.bf16.mxu0 %vm5903_vm10, %v11024_v45  ;;  %vm5971_vm15 = vmpackc.low %vm2158_vm12, %vm2156_vm7  ;;  %vm2091_vm10 = vcmp.eq.s32.totalorder %v10955_v10, %v8660_v30 }
 0x23e   : > { %5968 = vmatprep.subr.msk.bf16.mxu1 %vm5967_vm11, %v11024_v45  ;;  %vm2093_vm11 = vcmp.eq.s32.totalorder %v10956_v11, %v8660_v30  ;;  %vm5973_vm7 = vmpackc.low %vm2157_vm1, %vm2155_vm2  ;;  %vm2100_vm2 = vcmp.eq.s32.totalorder %v10984_v27, %v8636_v52  ;;  %vm2102_vm1 = vcmp.eq.s32.totalorder %v10985_v28, %v8636_v52 }
 0x23f   : > { %vm5909_vm6 = vmpackc.low %vm2093_vm11, %vm2091_vm10  ;;  %vm2159_vm10 = vcmp.eq.s32.totalorder %v10961_v21, %v8660_v30  ;;  %vm2161_vm11 = vcmp.eq.s32.totalorder %v10962_v22, %v8660_v30 }
 0x240   : > { %vm5911_vm12 = vmpackc.low %vm2098_vm5, %vm2096_vm4  ;;  %vm2164_vm5 = vcmp.eq.s32.totalorder %v10986_v34, %v8636_v52 }
 0x244   : > { %5906 = vmatpush1.bf16.xpose.msk.msra.mxu0 %vm5905_vm3, %v11024_v45  ;;  %vm2162_vm3 = vcmp.eq.s32.totalorder %v10962_v22, %v8636_v52 }
 0x245   : > { %5970 = vmatpush1.bf16.xpose.msk.msra.mxu1 %vm5969_vm14, %v11024_v45  ;;  %5908 = vmatprep.subr.msk.bf16.mxu0 %vm5907_vm0, %v11024_v45  ;;  %vm5975_vm14 = vmpackc.low %vm2162_vm3, %vm2160_vm13  ;;  %vm2095_vm0 = vcmp.eq.s32.totalorder %v10959_v12, %v8660_v30  ;;  %v11059_v12 = vld [vmem:[#allocation47_spill] sm:$0xff] }
 0x246   : > { %5972 = vmatprep.subr.msk.bf16.mxu1 %vm5971_vm15, %v11024_v45  ;;  %vm2097_vm15 = vcmp.eq.s32.totalorder %v10960_v13, %v8660_v30  ;;  %vm5977_vm13 = vmpackc.low %vm2161_vm11, %vm2159_vm10  ;;  %vm2104_vm10 = vcmp.eq.s32.totalorder %v10988_v36, %v8636_v52  ;;  %vm2106_vm11 = vcmp.eq.s32.totalorder %v10989_v16, %v8636_v52  ;;  %v863_v13 = vld [vmem:[#allocation13 + $0x8] sm:$0xff] }
 0x247   : > { %vm5913_vm4 = vmpackc.low %vm2097_vm15, %vm2095_vm0  ;;  %vm2163_vm0 = vcmp.eq.s32.totalorder %v10986_v34, %v8660_v30  ;;  %vm2165_vm15 = vcmp.eq.s32.totalorder %v10987_v33, %v8660_v30  ;;  %v11057_v34 = vld [vmem:[#allocation90_spill] sm:$0xff] }
 0x248   : > { %vm5915_vm3 = vmpackc.low %vm2102_vm1, %vm2100_vm2  ;;  %vm2168_vm1 = vcmp.eq.s32.totalorder %v10990_v20, %v8636_v52 }
 0x24c   : > { %5910 = vmatpush1.bf16.xpose.msk.msra.mxu0 %vm5909_vm6, %v11024_v45  ;;  %vm2166_vm6 = vcmp.eq.s32.totalorder %v10987_v33, %v8636_v52  ;;  %v864_v33 = vld [vmem:[#allocation13 + $0x10] sm:$0xff] }
 0x24d   : > { %5974 = vmatpush1.bf16.xpose.msk.msra.mxu1 %vm5973_vm7, %v11024_v45  ;;  %5912 = vmatprep.subr.msk.bf16.mxu0 %vm5911_vm12, %v11024_v45  ;;  %vm5979_vm7 = vmpackc.low %vm2166_vm6, %vm2164_vm5  ;;  %vm2099_vm12 = vcmp.eq.s32.totalorder %v10984_v27, %v8660_v30  ;;  %v868_v21 = vadd.f32 %v864_v33, %v11057_v34 }
 0x24e   : > { %5976 = vmatprep.subr.msk.bf16.mxu1 %vm5975_vm14, %v11024_v45  ;;  %vm2101_vm14 = vcmp.eq.s32.totalorder %v10985_v28, %v8660_v30  ;;  %vm5981_vm5 = vmpackc.low %vm2165_vm15, %vm2163_vm0  ;;  %vm2108_vm0 = vcmp.eq.s32.totalorder %v10992_v41, %v8636_v52  ;;  %vm2110_vm15 = vcmp.eq.s32.totalorder %v10993_v42, %v8636_v52 }
 0x24f   : > { %vm5917_vm2 = vmpackc.low %vm2101_vm14, %vm2099_vm12  ;;  %vm2167_vm12 = vcmp.eq.s32.totalorder %v10990_v20, %v8660_v30  ;;  %vm2169_vm14 = vcmp.eq.s32.totalorder %v10991_v19, %v8660_v30  ;;  %v11056_v20 = vld [vmem:[#allocation89_spill] sm:$0xff] }
 0x250   : > { %vm5919_vm6 = vmpackc.low %vm2106_vm11, %vm2104_vm10  ;;  %vm2172_vm11 = vcmp.eq.s32.totalorder %v10994_v18, %v8636_v52 }
 0x254   : > { %5914 = vmatpush1.bf16.xpose.msk.msra.mxu0 %vm5913_vm4, %v11024_v45  ;;  %vm2170_vm4 = vcmp.eq.s32.totalorder %v10991_v19, %v8636_v52  ;;  %v11055_v19 = vld [vmem:[#allocation88_spill] sm:$0xff] }
 0x255   : > { %5978 = vmatpush1.bf16.xpose.msk.msra.mxu1 %vm5977_vm13, %v11024_v45  ;;  %5916 = vmatprep.subr.msk.bf16.mxu0 %vm5915_vm3, %v11024_v45  ;;  %vm5983_vm13 = vmpackc.low %vm2170_vm4, %vm2168_vm1  ;;  %vm2103_vm3 = vcmp.eq.s32.totalorder %v10988_v36, %v8660_v30  ;;  %v881_v28 = vrot.slane %v11057_v34, %v11055_v19  ;;  %v885_v22 = vrot.slane %v8568_v23, %v11055_v19 }
 0x256   : > { %5980 = vmatprep.subr.msk.bf16.mxu1 %vm5979_vm7, %v11024_v45  ;;  %vm2105_vm7 = vcmp.eq.s32.totalorder %v10989_v16, %v8660_v30  ;;  %vm5985_vm1 = vmpackc.low %vm2169_vm14, %vm2167_vm12  ;;  %vm2112_vm12 = vcmp.eq.s32.totalorder %v10996_v44, %v8636_v52  ;;  %vm2114_vm14 = vcmp.eq.s32.totalorder %v10997_v48, %v8636_v52  ;;  %v873_v16 = vrot.slane %v11056_v20, %v11055_v19 }
 0x257   : > { %vm5921_vm10 = vmpackc.low %vm2105_vm7, %vm2103_vm3  ;;  %vm2171_vm3 = vcmp.eq.s32.totalorder %v10994_v18, %v8660_v30  ;;  %vm2173_vm7 = vcmp.eq.s32.totalorder %v10995_v43, %v8660_v30  ;;  %v11053_v18 = vld [vmem:[#allocation74_spill] sm:$0xff] }
 0x258   : > { %vm5923_vm4 = vmpackc.low %vm2110_vm15, %vm2108_vm0  ;;  %vm2176_vm15 = vcmp.eq.s32.totalorder %v10998_v15, %v8636_v52 }
 0x25c   : > { %5918 = vmatpush1.bf16.xpose.msk.msra.mxu0 %vm5917_vm2, %v11024_v45  ;;  %vm2174_vm2 = vcmp.eq.s32.totalorder %v10995_v43, %v8636_v52  ;;  %v11049_v43 = vld [vmem:[#allocation45_spill] sm:$0xff] }
 0x25d   : > { %5982 = vmatpush1.bf16.xpose.msk.msra.mxu1 %vm5981_vm5, %v11024_v45  ;;  %5920 = vmatprep.subr.msk.bf16.mxu0 %vm5919_vm6, %v11024_v45  ;;  %vm5987_vm5 = vmpackc.low %vm2174_vm2, %vm2172_vm11  ;;  %vm2107_vm6 = vcmp.eq.s32.totalorder %v10992_v41, %v8660_v30  ;;  %v862_v41 = vld [vmem:[#allocation13] sm:$0xff] }
 0x25e   : > { %5984 = vmatprep.subr.msk.bf16.mxu1 %vm5983_vm13, %v11024_v45  ;;  %vm2109_vm13 = vcmp.eq.s32.totalorder %v10993_v42, %v8660_v30  ;;  %vm5989_vm11 = vmpackc.low %vm2173_vm7, %vm2171_vm3  ;;  %vm2177_vm3 = vcmp.eq.s32.totalorder %v11048_v51, %v8660_v30  ;;  %vm2116_vm7 = vcmp.eq.s32.totalorder %v11049_v43, %v8636_v52  ;;  %v322_v42 = vstv %s316_s0 }
 0x25f   : > { %vm5925_vm0 = vmpackc.low %vm2109_vm13, %vm2107_vm6  ;;  %vm319_vm6 = vcmp.eq.s32.totalorder %v10946_v2, 2  ;;  %vm2175_vm13 = vcmp.eq.s32.totalorder %v10998_v15, %v8660_v30  ;;  %v11054_v15 = vld [vmem:[#allocation75_spill] sm:$0xff] }
 0x260   : > { %vm5927_vm2 = vmpackc.low %vm2114_vm14, %vm2112_vm12 }
 0x264   : > { %5922 = vmatpush1.bf16.xpose.msk.msra.mxu0 %vm5921_vm10, %v11024_v45  ;;  %vm2178_vm10 = vcmp.eq.s32.totalorder %v11048_v51, %v8636_v52  ;;  %v321_v51 = vsel %vm319_vm6, %v320_v32, 0.0  ;;  %v11058_v32 = vld [vmem:[#allocation91_spill] sm:$0xff] }
 0x265   : > { %5986 = vmatpush1.bf16.xpose.msk.msra.mxu1 %vm5985_vm1, %v11024_v45  ;;  %5924 = vmatprep.subr.msk.bf16.mxu0 %vm5923_vm4, %v11024_v45  ;;  %vm5991_vm1 = vmpackc.low %vm2178_vm10, %vm2176_vm15  ;;  %vm2111_vm4 = vcmp.eq.s32.totalorder %v10996_v44, %v8660_v30  ;;  %v11050_v44 = vld [vmem:[#allocation46_spill] sm:$0xff]  ;;  %vm2182_vm15 = vcmp.eq.s32.totalorder %v11054_v15, %v8636_v52  ;;  %vm10772_vm10 = vcmp.eq.s32.totalorder %v10946_v2, 1  ;;  %v877_v27 = vrot.slane %v11058_v32, %v11055_v19 }
 0x266   : > { %5988 = vmatprep.subr.msk.bf16.mxu1 %vm5987_vm5, %v11024_v45  ;;  %vm2113_vm5 = vcmp.eq.s32.totalorder %v10997_v48, %v8660_v30  ;;  %vm2118_vm12 = vcmp.eq.s32.totalorder %v11050_v44, %v8636_v52  ;;  %v323_v36 = vsel %vm10772_vm10, %v322_v42, %v321_v51  ;;  %v866_v42 = vadd.f32 %v862_v41, %v11056_v20 }
 0x267   : > { %vm8871_vm14 = vmpackc.low %vm2113_vm5, %vm2111_vm4  ;;  %vm2115_vm4 = vcmp.eq.s32.totalorder %v11049_v43, %v8660_v30  ;;  %vm2117_vm5 = vcmp.eq.s32.totalorder %v11050_v44, %v8660_v30  ;;  %v901_v48 = vstv %s8865_s1  ;;  %v886_v51 = vmul.f32 %v873_v16, %v323_v36  ;;  %v11060_v44 = vld [vmem:[#allocation48_spill] sm:$0xff]  ;;  %v11062_v16 = vld [vmem:[#allocation77_spill] sm:$0xff] }
 0x268   : > { %v888_v20 = vmul.f32 %v881_v28, %v323_v36  ;;  %v887_v41 = vmul.f32 %v877_v27, %v323_v36  ;;  %v889_v34 = vmul.f32 %v885_v22, %v323_v36  ;;  %v902_v28 = vsel %vm319_vm6, %v901_v48, 0.0 }
 0x269   : > { %v903_v27 = vstv %s8882_s14  ;;  %v867_v33 = vadd.f32 %v863_v13, %v11058_v32  ;;  %v869_v43 = vadd.f32 %v865_v17, %v8568_v23  ;;  %v890_v1 = vadd.f32 %v886_v51, %v866_v42 }
 0x26a   : > { %v892_v11 = vadd.f32 %v888_v20, %v868_v21  ;;  %v904_v22 = vsel %vm10772_vm10, %v903_v27, %v902_v28  ;;  %vm2127_vm10 = vcmp.eq.s32.totalorder %v11027_v25, %v8660_v30 }
 0x26b   : > { %v891_v10 = vadd.f32 %v887_v41, %v867_v33  ;;  %v893_v36 = vadd.f32 %v889_v34, %v869_v43 }
 0x26c   : > { %5926 = vmatpush1.bf16.xpose.msk.msra.mxu0 %vm5925_vm0, %v11024_v45  ;;  %vm2180_vm0 = vcmp.eq.s32.totalorder %v11053_v18, %v8636_v52 }
 0x26d   : > { %5990 = vmatpush1.bf16.xpose.msk.msra.mxu1 %vm5989_vm11, %v11024_v45  ;;  %5928 = vmatprep.subr.msk.bf16.mxu0 %vm5927_vm2, %v11024_v45  ;;  %vm5993_vm11 = vmpackc.low %vm2177_vm3, %vm2175_vm13  ;;  %vm2179_vm13 = vcmp.eq.s32.totalorder %v11053_v18, %v8660_v30  ;;  %vm2181_vm3 = vcmp.eq.s32.totalorder %v11054_v15, %v8660_v30  ;;  %v11061_v15 = vld [vmem:[#allocation76_spill] sm:$0xff] }
 0x26e   : > { %5992 = vmatprep.subr.msk.bf16.mxu1 %vm5991_vm1, %v11024_v45  ;;  %vm5931_vm2 = vmpackc.low %vm2118_vm12, %vm2116_vm7  ;;  %vm2120_vm7 = vcmp.eq.s32.totalorder %v11059_v12, %v8636_v52  ;;  %vm2122_vm12 = vcmp.eq.s32.totalorder %v11060_v44, %v8636_v52 }
 0x26f   : > { %vm5995_vm1 = vmpackc.low %vm2182_vm15, %vm2180_vm0  ;;  %vm2184_vm0 = vcmp.eq.s32.totalorder %v11061_v15, %v8636_v52  ;;  %vm2186_vm15 = vcmp.eq.s32.totalorder %v11062_v16, %v8636_v52 }
 0x274   : > { %5930 = vmatpush1.bf16.xpose.msk.msra.mxu0 %vm8871_vm14, %v11024_v45  ;;  %vm5933_vm14 = vmpackc.low %vm2117_vm5, %vm2115_vm4  ;;  %vm2119_vm4 = vcmp.eq.s32.totalorder %v11059_v12, %v8660_v30  ;;  %vm2121_vm5 = vcmp.eq.s32.totalorder %v11060_v44, %v8660_v30 }
 0x275   : > { %5994 = vmatpush1.bf16.xpose.msk.msra.mxu1 %vm5993_vm11, %v11024_v45  ;;  %5932 = vmatprep.subr.msk.bf16.mxu0 %vm5931_vm2, %v11024_v45  ;;  %vm5997_vm11 = vmpackc.low %vm2181_vm3, %vm2179_vm13  ;;  %vm2183_vm13 = vcmp.eq.s32.totalorder %v11061_v15, %v8660_v30  ;;  %vm2185_vm3 = vcmp.eq.s32.totalorder %v11062_v16, %v8660_v30 }
 0x276   : > { %5996 = vmatprep.subr.msk.bf16.mxu1 %vm5995_vm1, %v11024_v45  ;;  %vm5935_vm2 = vmpackc.low %vm2122_vm12, %vm2120_vm7  ;;  %vm2124_vm7 = vcmp.eq.s32.totalorder %v11040_v47, %v8636_v52  ;;  %vm2126_vm12 = vcmp.eq.s32.totalorder %v11041_v55, %v8636_v52 }
 0x277   : > { %vm5999_vm1 = vmpackc.low %vm2186_vm15, %vm2184_vm0  ;;  %vm2190_vm0 = vcmp.eq.s32.totalorder %v11043_v40, %v8636_v52 }
 0x278   : > { %vm8961_vm15 = vmpackc.low %vm2121_vm5, %vm2119_vm4  ;;  %vm2123_vm4 = vcmp.eq.s32.totalorder %v11040_v47, %v8660_v30  ;;  %vm2125_vm5 = vcmp.eq.s32.totalorder %v11041_v55, %v8660_v30 }
 0x27c   : > { %5934 = vmatpush1.bf16.xpose.msk.msra.mxu0 %vm5933_vm14, %v11024_v45  ;;  %vm2188_vm14 = vcmp.eq.s32.totalorder %v11042_v14, %v8636_v52 }
 0x27d   : > { %5998 = vmatpush1.bf16.xpose.msk.msra.mxu1 %vm5997_vm11, %v11024_v45  ;;  %5936 = vmatprep.subr.msk.bf16.mxu0 %vm5935_vm2, %v11024_v45  ;;  %vm6001_vm11 = vmpackc.low %vm2185_vm3, %vm2183_vm13  ;;  %vm2187_vm13 = vcmp.eq.s32.totalorder %v11042_v14, %v8660_v30  ;;  %vm2189_vm3 = vcmp.eq.s32.totalorder %v11043_v40, %v8660_v30 }
 0x27e   : > { %v1395_v13 = vpop.f32.mrb[4].mxu0  ;;  %6000 = vmatprep.subr.msk.bf16.mxu1 %vm5999_vm1, %v11024_v45  ;;  %vm5939_vm2 = vmpackc.low %vm2126_vm12, %vm2124_vm7  ;;  %vm2128_vm7 = vcmp.eq.s32.totalorder %v11027_v25, %v8636_v52  ;;  %vm2130_vm12 = vcmp.eq.s32.totalorder %v11044_v49, %v8636_v52 }
 0x27f   : > { %v1447_v17 = vadd.f32 %v1395_v13, %v890_v1  ;;  %v1454_v21 = vrot.slane %v1395_v13, %v11055_v19  ;;  %v1436_v43 = vpop.f32.mrb[4].mxu1  ;;  %v1397_v23 = vpop.f32.mrb[5].mxu0  ;;  %vm6003_vm1 = vmpackc.low %vm2190_vm0, %vm2188_vm14  ;;  %vm2192_vm0 = vcmp.eq.s32.totalorder %v11029_v26, %v8636_v52  ;;  %v11071_v1 = vld [vmem:[#allocation29_spill] sm:$0xff] }
 0x280   : > { %v1449_v32 = vadd.f32 %v1436_v43, %v892_v11  ;;  %v1462_v42 = vrot.slane %v1436_v43, %v11055_v19  ;;  %v1448_v48 = vadd.f32 %v1397_v23, %v891_v10  ;;  %v1458_v51 = vrot.slane %v1397_v23, %v11055_v19  ;;  %v1438_v20 = vpop.f32.mrb[5].mxu1  ;;  %v1399_v41 = vpop.f32.mrb[6].mxu0  ;;  %vm5941_vm14 = vmpackc.low %vm2125_vm5, %vm2123_vm4 }
 0x281   : > { %v1467_v34 = vmul.f32 %v1454_v21, %v904_v22  ;;  %v1450_v28 = vadd.f32 %v1438_v20, %v893_v36  ;;  %v1466_v11 = vrot.slane %v1438_v20, %v11055_v19  ;;  %v1440_v27 = vpop.f32.mrb[6].mxu1  ;;  %v1400_v10 = vpop.f32.mrb[7].mxu0  ;;  %vm2129_vm4 = vcmp.eq.s32.totalorder %v11044_v49, %v8660_v30  ;;  %v11069_v20 = vld [vmem:[#allocation62_spill] sm:$0xff]  ;;  %v11070_v41 = vld [vmem:[#allocation63_spill] sm:$0xff] }
 0x282   : > { %v1469_v33 = vmul.f32 %v1462_v42, %v904_v22  ;;  %v1468_v13 = vmul.f32 %v1458_v51, %v904_v22  ;;  %v1441_v43 = vpop.f32.mrb[7].mxu1  ;;  %vm2191_vm5 = vcmp.eq.s32.totalorder %v11029_v26, %v8660_v30  ;;  %v11075_v27 = vld [vmem:[#allocation31_spill] sm:$0xff]  ;;  %v11076_v10 = vld [vmem:[#allocation34_spill] sm:$0xff] }
 0x283   : > { %v8978_v36 = vadd.f32 %v1467_v34, %v1447_v17  ;;  %v1470_v21 = vmul.f32 %v1466_v11, %v904_v22  ;;  %v11065_v22 = vld [vmem:[#allocation82_spill] sm:$0xff]  ;;  %v11066_v17 = vld [vmem:[#allocation87_spill] sm:$0xff]  ;;  %v11074_v11 = vld [vmem:[#allocation65_spill] sm:$0xff] }
 0x284   : > { %v8986_v23 = vadd.f32 %v1469_v33, %v1449_v32  ;;  %v8988_v42 = vadd.f32 %v1468_v13, %v1448_v48  ;;  %5938 = vmatpush1.bf16.xpose.msk.msra.mxu0 %vm8961_vm15, %v11024_v45  ;;  %vm2194_vm15 = vcmp.eq.s32.totalorder %v11030_v29, %v8636_v52  ;;  %v9056_v32 = vrot.slane %v7644_v31, %v11066_v17  ;;  %v11068_v48 = vld [vmem:[#allocation28_spill] sm:$0xff]  ;;  %v11072_v34 = vld [vmem:[#allocation30_spill] sm:$0xff]  ;;  %v11078_v13 = vld [vmem:[#allocation67_spill] sm:$0xff] }
 0x285   : > { %v8993_v51 = vadd.f32 %v1470_v21, %v1450_v28  ;;  %6002 = vmatpush1.bf16.xpose.msk.msra.mxu1 %vm6001_vm11, %v11024_v45  ;;  %5940 = vmatprep.subr.msk.bf16.mxu0 %vm5939_vm2, %v11024_v45  ;;  %vm6005_vm11 = vmpackc.low %vm2189_vm3, %vm2187_vm13  ;;  %vm2193_vm13 = vcmp.eq.s32.totalorder %v11030_v29, %v8660_v30  ;;  %vm2132_vm3 = vcmp.eq.s32.totalorder %v11031_v39, %v8636_v52  ;;  %v11073_v28 = vld [vmem:[#allocation64_spill] sm:$0xff]  ;;  %v11077_v33 = vld [vmem:[#allocation66_spill] sm:$0xff] }
 0x286   : > { %6004 = vmatprep.subr.msk.bf16.mxu1 %vm6003_vm1, %v11024_v45  ;;  %vm5943_vm2 = vmpackc.low %vm2130_vm12, %vm2128_vm7  ;;  %vm2134_vm7 = vcmp.eq.s32.totalorder %v11045_v50, %v8636_v52  ;;  %v11079_v43 = vld [vmem:[#allocation35_spill] sm:$0xff]  ;;  %v11080_v21 = vld [vmem:[#allocation36_spill] sm:$0xff] }
 0x287   : > { %vm6007_vm1 = vmpackc.low %vm2194_vm15, %vm2192_vm0  ;;  %vm2198_vm0 = vcmp.eq.s32.totalorder %v11033_v24, %v8636_v52 }
 0x288   : > { %vm5945_vm12 = vmpackc.low %vm2129_vm4, %vm2127_vm10  ;;  %vm2133_vm10 = vcmp.eq.s32.totalorder %v11045_v50, %v8660_v30  ;;  %vm2195_vm4 = vcmp.eq.s32.totalorder %v11065_v22, %v8660_v30 }
 0x289   : > { %vm6009_vm15 = vmpackc.low %vm2193_vm13, %vm2191_vm5  ;;  %vm2197_vm5 = vcmp.eq.s32.totalorder %v11033_v24, %v8660_v30  ;;  %vm2136_vm13 = vcmp.eq.s32.totalorder %v11020_v53, %v8636_v52 }
 0x28c   : > { %5942 = vmatpush1.bf16.xpose.msk.msra.mxu0 %vm5941_vm14, %v11024_v45  ;;  %vm2196_vm14 = vcmp.eq.s32.totalorder %v11065_v22, %v8636_v52 }
 0x28d   : > { %6006 = vmatpush1.bf16.xpose.msk.msra.mxu1 %vm6005_vm11, %v11024_v45  ;;  %5944 = vmatprep.subr.msk.bf16.mxu0 %vm5943_vm2, %v11024_v45  ;;  %vm5947_vm11 = vmpackc.low %vm2134_vm7, %vm2132_vm3  ;;  %vm2138_vm3 = vcmp.eq.s32.totalorder %v11021_v46, %v8636_v52 }
 0x28e   : > { %6008 = vmatprep.subr.msk.bf16.mxu1 %vm6007_vm1, %v11024_v45  ;;  %vm6011_vm2 = vmpackc.low %vm2198_vm0, %vm2196_vm14  ;;  %vm2131_vm1 = vcmp.eq.s32.totalorder %v11031_v39, %v8660_v30  ;;  %vm2202_vm14 = vcmp.eq.s32.totalorder %v11023_v54, %v8636_v52 }
 0x28f   : > { %vm5949_vm7 = vmpackc.low %vm2133_vm10, %vm2131_vm1  ;;  %vm2137_vm1 = vcmp.eq.s32.totalorder %v11021_v46, %v8660_v30  ;;  %vm2199_vm10 = vcmp.eq.s32.totalorder %v11022_v58, %v8660_v30 }
 0x290   : > { %vm6013_vm0 = vmpackc.low %vm2197_vm5, %vm2195_vm4  ;;  %vm2201_vm4 = vcmp.eq.s32.totalorder %v11023_v54, %v8660_v30  ;;  %vm2657_vm5 = vcmp.eq.s32.totalorder %v10946_v2, %v9056_v32 }
 0x294   : > { %5946 = vmatpush1.bf16.xpose.msk.msra.mxu0 %vm5945_vm12, %v11024_v45  ;;  %vm2200_vm12 = vcmp.eq.s32.totalorder %v11022_v58, %v8636_v52  ;;  %v9080_v52 = vrot.slane %v7650_v37, %v11066_v17  ;;  %v11081_v17 = vld [vmem:[#allocation68_spill] sm:$0xff] }
 0x295   : > { %6010 = vmatpush1.bf16.xpose.msk.msra.mxu1 %vm6009_vm15, %v11024_v45  ;;  %5948 = vmatprep.subr.msk.bf16.mxu0 %vm5947_vm11, %v11024_v45  ;;  %vm5951_vm15 = vmpackc.low %vm2138_vm3, %vm2136_vm13  ;;  %vm2659_vm13 = vcmp.eq.s32.totalorder %v10953_v3, %v9056_v32 }
 0x296   : > { %6012 = vmatprep.subr.msk.bf16.mxu1 %vm6011_vm2, %v11024_v45  ;;  %vm6015_vm11 = vmpackc.low %vm2202_vm14, %vm2200_vm12  ;;  %vm2135_vm2 = vcmp.eq.s32.totalorder %v11020_v53, %v8660_v30  ;;  %vm2723_vm12 = vcmp.eq.s32.totalorder %v7470_v57, %v9056_v32  ;;  %v11067_v30 = vld [vmem:[#allocation27_spill] sm:$0xff] }
 0x297   : > { %vm5953_vm3 = vmpackc.low %vm2137_vm1, %vm2135_vm2  ;;  %vm2658_vm2 = vcmp.eq.s32.totalorder %v10953_v3, %v9080_v52  ;;  %vm2720_vm1 = vcmp.eq.s32.totalorder %v7467_v56, %v9080_v52 }
 0x298   : > { %vm6017_vm14 = vmpackc.low %vm2201_vm4, %vm2199_vm10  ;;  %vm2722_vm10 = vcmp.eq.s32.totalorder %v7470_v57, %v9080_v52  ;;  %vm2661_vm4 = vcmp.eq.s32.totalorder %v10952_v4, %v9056_v32 }
 0x29c   : > { %5950 = vmatpush1.bf16.xpose.msk.msra.mxu0 %vm5949_vm7, %v11024_v45  ;;  %vm2721_vm7 = vcmp.eq.s32.totalorder %v7467_v56, %v9056_v32 }
 0x29d   : > { %6014 = vmatpush1.bf16.xpose.msk.msra.mxu1 %vm6013_vm0, %v11024_v45  ;;  %5952 = vmatprep.subr.msk.bf16.mxu0 %vm5951_vm15, %v11024_v45  ;;  %vm6147_vm0 = vmpackc.low %vm2659_vm13, %vm2657_vm5  ;;  %vm2663_vm5 = vcmp.eq.s32.totalorder %v10951_v5, %v9056_v32 }
 0x29e   : > { %6016 = vmatprep.subr.msk.bf16.mxu1 %vm6015_vm11, %v11024_v45  ;;  %vm6211_vm15 = vmpackc.low %vm2723_vm12, %vm2721_vm7  ;;  %vm2656_vm11 = vcmp.eq.s32.totalorder %v10946_v2, %v9080_v52  ;;  %vm2727_vm7 = vcmp.eq.s32.totalorder %v7480_v60, %v9056_v32 }
 0x29f   : > { %vm6149_vm13 = vmpackc.low %vm2658_vm2, %vm2656_vm11  ;;  %vm2662_vm11 = vcmp.eq.s32.totalorder %v10951_v5, %v9080_v52  ;;  %vm2724_vm2 = vcmp.eq.s32.totalorder %v7477_v59, %v9080_v52 }
 0x2a0   : > { %vm6213_vm12 = vmpackc.low %vm2722_vm10, %vm2720_vm1  ;;  %vm2726_vm1 = vcmp.eq.s32.totalorder %v7480_v60, %v9080_v52  ;;  %vm2665_vm10 = vcmp.eq.s32.totalorder %v10950_v6, %v9056_v32 }
 0x2a4   : > { %5954 = vmatpush1.bf16.xpose.msk.msra.mxu0 %vm5953_vm3, %v11024_v45  ;;  %vm2725_vm3 = vcmp.eq.s32.totalorder %v7477_v59, %v9056_v32 }
 0x2a5   : > { %6018 = vmatpush1.bf16.xpose.msk.msra.mxu1 %vm6017_vm14, %v11024_v45  ;;  %6148 = vmatprep.subr.msk.bf16.mxu0 %vm6147_vm0, %v11024_v45  ;;  %vm6151_vm14 = vmpackc.low %vm2663_vm5, %vm2661_vm4  ;;  %vm2667_vm4 = vcmp.eq.s32.totalorder %v10949_v7, %v9056_v32 }
 0x2a6   : > { %6212 = vmatprep.subr.msk.bf16.mxu1 %vm6211_vm15, %v11024_v45  ;;  %vm6215_vm0 = vmpackc.low %vm2727_vm7, %vm2725_vm3  ;;  %vm2660_vm15 = vcmp.eq.s32.totalorder %v10952_v4, %v9080_v52  ;;  %vm2731_vm3 = vcmp.eq.s32.totalorder %v7486_v62, %v9056_v32 }
 0x2a7   : > { %vm6153_vm5 = vmpackc.low %vm2662_vm11, %vm2660_vm15  ;;  %vm2666_vm15 = vcmp.eq.s32.totalorder %v10949_v7, %v9080_v52  ;;  %vm2728_vm11 = vcmp.eq.s32.totalorder %v7483_v61, %v9080_v52 }
 0x2a8   : > { %vm6217_vm7 = vmpackc.low %vm2726_vm1, %vm2724_vm2  ;;  %vm2730_vm2 = vcmp.eq.s32.totalorder %v7486_v62, %v9080_v52  ;;  %vm2669_vm1 = vcmp.eq.s32.totalorder %v10948_v8, %v9056_v32 }
 0x2ab   : > { %2556 = vmatmul.mubr.bf16.vlgmr.msra.gmra.mrb[12].mxu0 %v11025_v35 }
 0x2ac   : > { %2597 = vmatmul.mubr.bf16.vlgmr.msra.gmra.mrb[12].mxu1 %v11025_v35  ;;  %6150 = vmatpush1.bf16.xpose.msk.msra.mxu0 %vm6149_vm13, %v11024_v45  ;;  %vm2729_vm13 = vcmp.eq.s32.totalorder %v7483_v61, %v9056_v32 }
 0x2ad   : > { %6214 = vmatpush1.bf16.xpose.msk.msra.mxu1 %vm6213_vm12, %v11024_v45  ;;  %6152 = vmatprep.subr.msk.bf16.mxu0 %vm6151_vm14, %v11024_v45  ;;  %vm6155_vm12 = vmpackc.low %vm2667_vm4, %vm2665_vm10  ;;  %vm2671_vm10 = vcmp.eq.s32.totalorder %v10947_v9, %v9056_v32 }
 0x2ae   : > { %6216 = vmatprep.subr.msk.bf16.mxu1 %vm6215_vm0, %v11024_v45  ;;  %3136 = vmatprep.mubr.bf16.mxu0 %v11026_v38  ;;  %vm6219_vm14 = vmpackc.low %vm2731_vm3, %vm2729_vm13  ;;  %vm2664_vm0 = vcmp.eq.s32.totalorder %v10950_v6, %v9080_v52  ;;  %vm2735_vm13 = vcmp.eq.s32.totalorder %v10954_v0, %v9056_v32 }
 0x2af   : > { %3177 = vmatprep.mubr.bf16.mxu1 %v11026_v38  ;;  %vm6157_vm4 = vmpackc.low %vm2666_vm15, %vm2664_vm0  ;;  %vm2670_vm0 = vcmp.eq.s32.totalorder %v10947_v9, %v9080_v52  ;;  %vm2732_vm15 = vcmp.eq.s32.totalorder %v7493_v63, %v9080_v52 }
 0x2b0   : > { %vm6221_vm3 = vmpackc.low %vm2730_vm2, %vm2728_vm11  ;;  %vm2734_vm11 = vcmp.eq.s32.totalorder %v10954_v0, %v9080_v52  ;;  %vm2673_vm2 = vcmp.eq.s32.totalorder %v11067_v30, %v9056_v32 }
 0x2b4   : > { %6154 = vmatpush1.bf16.xpose.msk.msra.mxu0 %vm6153_vm5, %v11024_v45  ;;  %vm2733_vm5 = vcmp.eq.s32.totalorder %v7493_v63, %v9056_v32 }
 0x2b5   : > { %6218 = vmatpush1.bf16.xpose.msk.msra.mxu1 %vm6217_vm7, %v11024_v45  ;;  %6156 = vmatprep.subr.msk.bf16.mxu0 %vm6155_vm12, %v11024_v45  ;;  %vm6159_vm7 = vmpackc.low %vm2671_vm10, %vm2669_vm1  ;;  %vm2675_vm1 = vcmp.eq.s32.totalorder %v11068_v48, %v9056_v32 }
 0x2b6   : > { %6220 = vmatprep.subr.msk.bf16.mxu1 %vm6219_vm14, %v11024_v45  ;;  %vm6223_vm12 = vmpackc.low %vm2735_vm13, %vm2733_vm5  ;;  %vm2668_vm14 = vcmp.eq.s32.totalorder %v10948_v8, %v9080_v52  ;;  %vm2739_vm5 = vcmp.eq.s32.totalorder %v11070_v41, %v9056_v32 }
 0x2b7   : > { %vm6161_vm10 = vmpackc.low %vm2670_vm0, %vm2668_vm14  ;;  %vm2674_vm14 = vcmp.eq.s32.totalorder %v11068_v48, %v9080_v52  ;;  %vm2736_vm0 = vcmp.eq.s32.totalorder %v11069_v20, %v9080_v52 }
 0x2b8   : > { %vm6225_vm13 = vmpackc.low %vm2734_vm11, %vm2732_vm15  ;;  %vm2738_vm15 = vcmp.eq.s32.totalorder %v11070_v41, %v9080_v52  ;;  %vm2677_vm11 = vcmp.eq.s32.totalorder %v11071_v1, %v9056_v32 }
 0x2bc   : > { %6158 = vmatpush1.bf16.xpose.msk.msra.mxu0 %vm6157_vm4, %v11024_v45  ;;  %vm2737_vm4 = vcmp.eq.s32.totalorder %v11069_v20, %v9056_v32 }
 0x2bd   : > { %6222 = vmatpush1.bf16.xpose.msk.msra.mxu1 %vm6221_vm3, %v11024_v45  ;;  %6160 = vmatprep.subr.msk.bf16.mxu0 %vm6159_vm7, %v11024_v45  ;;  %vm6163_vm3 = vmpackc.low %vm2675_vm1, %vm2673_vm2  ;;  %vm2679_vm2 = vcmp.eq.s32.totalorder %v11072_v34, %v9056_v32 }
 0x2be   : > { %6224 = vmatprep.subr.msk.bf16.mxu1 %vm6223_vm12, %v11024_v45  ;;  %vm6227_vm7 = vmpackc.low %vm2739_vm5, %vm2737_vm4  ;;  %vm2672_vm12 = vcmp.eq.s32.totalorder %v11067_v30, %v9080_v52  ;;  %vm2743_vm4 = vcmp.eq.s32.totalorder %v11074_v11, %v9056_v32 }
 0x2bf   : > { %vm6165_vm1 = vmpackc.low %vm2674_vm14, %vm2672_vm12  ;;  %vm2678_vm12 = vcmp.eq.s32.totalorder %v11072_v34, %v9080_v52  ;;  %vm2740_vm14 = vcmp.eq.s32.totalorder %v11073_v28, %v9080_v52 }
 0x2c0   : > { %vm6229_vm5 = vmpackc.low %vm2738_vm15, %vm2736_vm0  ;;  %vm2742_vm0 = vcmp.eq.s32.totalorder %v11074_v11, %v9080_v52  ;;  %vm2681_vm15 = vcmp.eq.s32.totalorder %v11075_v27, %v9056_v32 }
 0x2c4   : > { %6162 = vmatpush1.bf16.xpose.msk.msra.mxu0 %vm6161_vm10, %v11024_v45  ;;  %vm2741_vm10 = vcmp.eq.s32.totalorder %v11073_v28, %v9056_v32 }
 0x2c5   : > { %6226 = vmatpush1.bf16.xpose.msk.msra.mxu1 %vm6225_vm13, %v11024_v45  ;;  %6164 = vmatprep.subr.msk.bf16.mxu0 %vm6163_vm3, %v11024_v45  ;;  %vm6167_vm13 = vmpackc.low %vm2679_vm2, %vm2677_vm11  ;;  %vm2683_vm11 = vcmp.eq.s32.totalorder %v11076_v10, %v9056_v32 }
 0x2c6   : > { %6228 = vmatprep.subr.msk.bf16.mxu1 %vm6227_vm7, %v11024_v45  ;;  %vm6231_vm3 = vmpackc.low %vm2743_vm4, %vm2741_vm10  ;;  %vm2676_vm7 = vcmp.eq.s32.totalorder %v11071_v1, %v9080_v52  ;;  %vm2747_vm10 = vcmp.eq.s32.totalorder %v11078_v13, %v9056_v32 }
 0x2c7   : > { %vm6169_vm2 = vmpackc.low %vm2678_vm12, %vm2676_vm7  ;;  %vm2682_vm7 = vcmp.eq.s32.totalorder %v11076_v10, %v9080_v52  ;;  %vm2744_vm12 = vcmp.eq.s32.totalorder %v11077_v33, %v9080_v52  ;;  %v11082_v10 = vld [vmem:[#allocation69_spill] sm:$0xff] }
 0x2c8   : > { %vm6233_vm4 = vmpackc.low %vm2742_vm0, %vm2740_vm14  ;;  %vm2746_vm14 = vcmp.eq.s32.totalorder %v11078_v13, %v9080_v52  ;;  %vm2685_vm0 = vcmp.eq.s32.totalorder %v11079_v43, %v9056_v32  ;;  %v11083_v13 = vld [vmem:[#allocation39_spill] sm:$0xff] }
 0x2cc   : > { %6166 = vmatpush1.bf16.xpose.msk.msra.mxu0 %vm6165_vm1, %v11024_v45  ;;  %vm2745_vm1 = vcmp.eq.s32.totalorder %v11077_v33, %v9056_v32  ;;  %v11084_v33 = vld [vmem:[#allocation40_spill] sm:$0xff] }
 0x2cd   : > { %6230 = vmatpush1.bf16.xpose.msk.msra.mxu1 %vm6229_vm5, %v11024_v45  ;;  %6168 = vmatprep.subr.msk.bf16.mxu0 %vm6167_vm13, %v11024_v45  ;;  %vm6171_vm5 = vmpackc.low %vm2683_vm11, %vm2681_vm15  ;;  %vm2687_vm15 = vcmp.eq.s32.totalorder %v11080_v21, %v9056_v32 }
 0x2ce   : > { %6232 = vmatprep.subr.msk.bf16.mxu1 %vm6231_vm3, %v11024_v45  ;;  %vm6235_vm13 = vmpackc.low %vm2747_vm10, %vm2745_vm1  ;;  %vm2680_vm3 = vcmp.eq.s32.totalorder %v11075_v27, %v9080_v52  ;;  %vm2751_vm1 = vcmp.eq.s32.totalorder %v11082_v10, %v9056_v32 }
 0x2cf   : > { %vm6173_vm11 = vmpackc.low %vm2682_vm7, %vm2680_vm3  ;;  %vm2686_vm3 = vcmp.eq.s32.totalorder %v11080_v21, %v9080_v52  ;;  %vm2748_vm7 = vcmp.eq.s32.totalorder %v11081_v17, %v9080_v52  ;;  %v11086_v21 = vld [vmem:[#allocation71_spill] sm:$0xff] }
 0x2d0   : > { %vm6237_vm10 = vmpackc.low %vm2746_vm14, %vm2744_vm12  ;;  %vm2750_vm12 = vcmp.eq.s32.totalorder %v11082_v10, %v9080_v52  ;;  %vm2689_vm14 = vcmp.eq.s32.totalorder %v11083_v13, %v9056_v32  ;;  %v11087_v10 = vld [vmem:[#allocation41_spill] sm:$0xff] }
 0x2d4   : > { %6170 = vmatpush1.bf16.xpose.msk.msra.mxu0 %vm6169_vm2, %v11024_v45  ;;  %vm2749_vm2 = vcmp.eq.s32.totalorder %v11081_v17, %v9056_v32  ;;  %v11088_v17 = vld [vmem:[#allocation42_spill] sm:$0xff] }
 0x2d5   : > { %6234 = vmatpush1.bf16.xpose.msk.msra.mxu1 %vm6233_vm4, %v11024_v45  ;;  %6172 = vmatprep.subr.msk.bf16.mxu0 %vm6171_vm5, %v11024_v45  ;;  %vm6175_vm4 = vmpackc.low %vm2687_vm15, %vm2685_vm0  ;;  %vm2691_vm0 = vcmp.eq.s32.totalorder %v11084_v33, %v9056_v32 }
 0x2d6   : > { %6236 = vmatprep.subr.msk.bf16.mxu1 %vm6235_vm13, %v11024_v45  ;;  %vm6239_vm5 = vmpackc.low %vm2751_vm1, %vm2749_vm2  ;;  %vm2684_vm13 = vcmp.eq.s32.totalorder %v11079_v43, %v9080_v52  ;;  %v11085_v43 = vld [vmem:[#allocation70_spill] sm:$0xff]  ;;  %vm2755_vm2 = vcmp.eq.s32.totalorder %v11086_v21, %v9056_v32 }
 0x2d7   : > { %vm6177_vm15 = vmpackc.low %vm2686_vm3, %vm2684_vm13  ;;  %vm2690_vm13 = vcmp.eq.s32.totalorder %v11084_v33, %v9080_v52  ;;  %vm2752_vm3 = vcmp.eq.s32.totalorder %v11085_v43, %v9080_v52  ;;  %v11090_v33 = vld [vmem:[#allocation73_spill] sm:$0xff] }
 0x2d8   : > { %vm6241_vm1 = vmpackc.low %vm2750_vm12, %vm2748_vm7  ;;  %vm2754_vm7 = vcmp.eq.s32.totalorder %v11086_v21, %v9080_v52  ;;  %vm2693_vm12 = vcmp.eq.s32.totalorder %v11087_v10, %v9056_v32  ;;  %v11091_v21 = vld [vmem:[#allocation45_spill] sm:$0xff] }
 0x2dc   : > { %6174 = vmatpush1.bf16.xpose.msk.msra.mxu0 %vm6173_vm11, %v11024_v45  ;;  %vm2753_vm11 = vcmp.eq.s32.totalorder %v11085_v43, %v9056_v32  ;;  %v11092_v43 = vld [vmem:[#allocation46_spill] sm:$0xff] }
 0x2dd   : > { %6238 = vmatpush1.bf16.xpose.msk.msra.mxu1 %vm6237_vm10, %v11024_v45  ;;  %6176 = vmatprep.subr.msk.bf16.mxu0 %vm6175_vm4, %v11024_v45  ;;  %vm6179_vm10 = vmpackc.low %vm2691_vm0, %vm2689_vm14  ;;  %vm2695_vm14 = vcmp.eq.s32.totalorder %v11088_v17, %v9056_v32 }
 0x2de   : > { %6240 = vmatprep.subr.msk.bf16.mxu1 %vm6239_vm5, %v11024_v45  ;;  %vm6243_vm4 = vmpackc.low %vm2755_vm2, %vm2753_vm11  ;;  %vm2688_vm5 = vcmp.eq.s32.totalorder %v11083_v13, %v9080_v52  ;;  %v11089_v13 = vld [vmem:[#allocation72_spill] sm:$0xff]  ;;  %vm2759_vm11 = vcmp.eq.s32.totalorder %v11090_v33, %v9056_v32 }
 0x2df   : > { %vm6181_vm0 = vmpackc.low %vm2690_vm13, %vm2688_vm5  ;;  %vm2694_vm5 = vcmp.eq.s32.totalorder %v11088_v17, %v9080_v52  ;;  %vm2756_vm13 = vcmp.eq.s32.totalorder %v11089_v13, %v9080_v52  ;;  %v11093_v17 = vld [vmem:[#allocation75_spill] sm:$0xff] }
 0x2e0   : > { %vm6245_vm2 = vmpackc.low %vm2754_vm7, %vm2752_vm3  ;;  %vm2758_vm3 = vcmp.eq.s32.totalorder %v11090_v33, %v9080_v52  ;;  %vm2697_vm7 = vcmp.eq.s32.totalorder %v11091_v21, %v9056_v32  ;;  %v1482_v33 = vstv %s1481_s16 }
 0x2e4   : > { %6178 = vmatpush1.bf16.xpose.msk.msra.mxu0 %vm6177_vm15, %v11024_v45  ;;  %vm2757_vm15 = vcmp.eq.s32.totalorder %v11089_v13, %v9056_v32 }
 0x2e5   : > { %6242 = vmatpush1.bf16.xpose.msk.msra.mxu1 %vm6241_vm1, %v11024_v45  ;;  %6180 = vmatprep.subr.msk.bf16.mxu0 %vm6179_vm10, %v11024_v45  ;;  %vm6183_vm1 = vmpackc.low %vm2695_vm14, %vm2693_vm12  ;;  %vm2699_vm12 = vcmp.eq.s32.totalorder %v11092_v43, %v9056_v32 }
 0x2e6   : > { %6244 = vmatprep.subr.msk.bf16.mxu1 %vm6243_vm4, %v11024_v45  ;;  %vm6247_vm10 = vmpackc.low %vm2759_vm11, %vm2757_vm15  ;;  %vm2692_vm4 = vcmp.eq.s32.totalorder %v11087_v10, %v9080_v52  ;;  %vm2763_vm15 = vcmp.eq.s32.totalorder %v11093_v17, %v9056_v32 }
 0x2e7   : > { %vm6185_vm14 = vmpackc.low %vm2694_vm5, %vm2692_vm4  ;;  %vm2698_vm4 = vcmp.eq.s32.totalorder %v11092_v43, %v9080_v52  ;;  %vm2760_vm5 = vcmp.eq.s32.totalorder %v11053_v18, %v9080_v52  ;;  %v1484_v43 = vstv %s1480_s17 }
 0x2e8   : > { %vm6249_vm11 = vmpackc.low %vm2758_vm3, %vm2756_vm13  ;;  %vm2762_vm13 = vcmp.eq.s32.totalorder %v11093_v17, %v9080_v52  ;;  %vm2701_vm3 = vcmp.eq.s32.totalorder %v11059_v12, %v9056_v32 }
 0x2ec   : > { %6182 = vmatpush1.bf16.xpose.msk.msra.mxu0 %vm6181_vm0, %v11024_v45  ;;  %vm2761_vm0 = vcmp.eq.s32.totalorder %v11053_v18, %v9056_v32  ;;  %v1483_v18 = vsel %vm319_vm6, %v1482_v33, 0.0 }
 0x2ed   : > { %6246 = vmatpush1.bf16.xpose.msk.msra.mxu1 %vm6245_vm2, %v11024_v45  ;;  %6184 = vmatprep.subr.msk.bf16.mxu0 %vm6183_vm1, %v11024_v45  ;;  %vm6187_vm2 = vmpackc.low %vm2699_vm12, %vm2697_vm7  ;;  %vm2703_vm7 = vcmp.eq.s32.totalorder %v11060_v44, %v9056_v32 }
 0x2ee   : > { %6248 = vmatprep.subr.msk.bf16.mxu1 %vm6247_vm10, %v11024_v45  ;;  %vm6251_vm1 = vmpackc.low %vm2763_vm15, %vm2761_vm0  ;;  %vm2696_vm10 = vcmp.eq.s32.totalorder %v11091_v21, %v9080_v52  ;;  %vm2767_vm0 = vcmp.eq.s32.totalorder %v11062_v16, %v9056_v32 }
 0x2ef   : > { %vm6189_vm12 = vmpackc.low %vm2698_vm4, %vm2696_vm10  ;;  %vm2700_vm10 = vcmp.eq.s32.totalorder %v11059_v12, %v9080_v52  ;;  %vm2702_vm4 = vcmp.eq.s32.totalorder %v11060_v44, %v9080_v52 }
 0x2f0   : > { %vm6253_vm15 = vmpackc.low %vm2762_vm13, %vm2760_vm5  ;;  %vm2764_vm5 = vcmp.eq.s32.totalorder %v11061_v15, %v9080_v52  ;;  %vm2766_vm13 = vcmp.eq.s32.totalorder %v11062_v16, %v9080_v52 }
 0x2f4   : > { %6186 = vmatpush1.bf16.xpose.msk.msra.mxu0 %vm6185_vm14, %v11024_v45  ;;  %vm2765_vm14 = vcmp.eq.s32.totalorder %v11061_v15, %v9056_v32 }
 0x2f5   : > { %6250 = vmatpush1.bf16.xpose.msk.msra.mxu1 %vm6249_vm11, %v11024_v45  ;;  %6188 = vmatprep.subr.msk.bf16.mxu0 %vm6187_vm2, %v11024_v45  ;;  %vm6191_vm11 = vmpackc.low %vm2703_vm7, %vm2701_vm3  ;;  %vm2705_vm3 = vcmp.eq.s32.totalorder %v11040_v47, %v9056_v32  ;;  %vm2707_vm7 = vcmp.eq.s32.totalorder %v11041_v55, %v9056_v32 }
 0x2f6   : > { %6252 = vmatprep.subr.msk.bf16.mxu1 %vm6251_vm1, %v11024_v45  ;;  %vm6255_vm2 = vmpackc.low %vm2767_vm0, %vm2765_vm14  ;;  %vm11094_vm1 = vcmp.eq.s32.totalorder %v10946_v2, 1  ;;  %vm2771_vm14 = vcmp.eq.s32.totalorder %v11043_v40, %v9056_v32 }
 0x2f7   : > { %v1485_v17 = vsel %vm11094_vm1, %v1484_v43, %v1483_v18  ;;  %vm9343_vm0 = vmpackc.low %vm2702_vm4, %vm2700_vm10  ;;  %vm2704_vm1 = vcmp.eq.s32.totalorder %v11040_v47, %v9080_v52  ;;  %vm2706_vm10 = vcmp.eq.s32.totalorder %v11041_v55, %v9080_v52  ;;  %vm2768_vm4 = vcmp.eq.s32.totalorder %v11042_v14, %v9080_v52 }
 0x2fc   : > { %6190 = vmatpush1.bf16.xpose.msk.msra.mxu0 %vm6189_vm12, %v11024_v45  ;;  %vm2769_vm12 = vcmp.eq.s32.totalorder %v11042_v14, %v9056_v32 }
 0x2fd   : > { %6254 = vmatpush1.bf16.xpose.msk.msra.mxu1 %vm6253_vm15, %v11024_v45  ;;  %6192 = vmatprep.subr.msk.bf16.mxu0 %vm6191_vm11, %v11024_v45  ;;  %vm6257_vm15 = vmpackc.low %vm2766_vm13, %vm2764_vm5  ;;  %vm2770_vm5 = vcmp.eq.s32.totalorder %v11043_v40, %v9080_v52  ;;  %vm2709_vm13 = vcmp.eq.s32.totalorder %v11027_v25, %v9056_v32 }
 0x2fe   : > { %v1976_v21 = vpop.f32.mrb[8].mxu0  ;;  %6256 = vmatprep.subr.msk.bf16.mxu1 %vm6255_vm2, %v11024_v45  ;;  %vm6195_vm11 = vmpackc.low %vm2707_vm7, %vm2705_vm3  ;;  %vm2711_vm3 = vcmp.eq.s32.totalorder %v11044_v49, %v9056_v32 }
 0x2ff   : > { %v2028_v18 = vadd.f32 %v1976_v21, %v8978_v36  ;;  %v2035_v33 = vrot.slane %v1976_v21, %v11055_v19  ;;  %v2017_v43 = vpop.f32.mrb[8].mxu1  ;;  %v1978_v13 = vpop.f32.mrb[9].mxu0  ;;  %vm6259_vm2 = vmpackc.low %vm2771_vm14, %vm2769_vm12  ;;  %vm2773_vm12 = vcmp.eq.s32.totalorder %v11029_v26, %v9056_v32  ;;  %vm2775_vm14 = vcmp.eq.s32.totalorder %v11030_v29, %v9056_v32  ;;  %v11103_v21 = vld [vmem:[#allocation34_spill] sm:$0xff] }
 0x300   : > { %v2030_v10 = vadd.f32 %v2017_v43, %v8986_v23  ;;  %v2043_v27 = vrot.slane %v2017_v43, %v11055_v19  ;;  %v2029_v11 = vadd.f32 %v1978_v13, %v8988_v42  ;;  %v2039_v28 = vrot.slane %v1978_v13, %v11055_v19  ;;  %v2019_v34 = vpop.f32.mrb[9].mxu1  ;;  %v1980_v36 = vpop.f32.mrb[10].mxu0  ;;  %vm6197_vm7 = vmpackc.low %vm2706_vm10, %vm2704_vm1 }
 0x301   : > { %v2048_v1 = vmul.f32 %v2035_v33, %v1485_v17  ;;  %v2031_v23 = vadd.f32 %v2019_v34, %v8993_v51  ;;  %v2047_v43 = vrot.slane %v2019_v34, %v11055_v19  ;;  %v2021_v42 = vpop.f32.mrb[10].mxu1  ;;  %v1981_v41 = vpop.f32.mrb[11].mxu0  ;;  %vm2710_vm1 = vcmp.eq.s32.totalorder %v11044_v49, %v9080_v52  ;;  %v11102_v33 = vld [vmem:[#allocation31_spill] sm:$0xff] }
 0x302   : > { %v2050_v13 = vmul.f32 %v2043_v27, %v1485_v17  ;;  %v2049_v36 = vmul.f32 %v2039_v28, %v1485_v17  ;;  %v2022_v44 = vpop.f32.mrb[11].mxu1  ;;  %vm2772_vm10 = vcmp.eq.s32.totalorder %v11029_v26, %v9080_v52  ;;  %v11098_v27 = vld [vmem:[#allocation29_spill] sm:$0xff]  ;;  %v11106_v42 = vld [vmem:[#allocation35_spill] sm:$0xff] }
 0x303   : > { %v9361_v51 = vadd.f32 %v2048_v1, %v2028_v18  ;;  %v2051_v41 = vmul.f32 %v2047_v43, %v1485_v17  ;;  %v3231_v1 = vsub.s32 5, %v10946_v2  ;;  %v11100_v17 = vld [vmem:[#allocation64_spill] sm:$0xff]  ;;  %v11101_v18 = vld [vmem:[#allocation65_spill] sm:$0xff]  ;;  %v11105_v43 = vld [vmem:[#allocation67_spill] sm:$0xff] }
 0x304   : > { %v9369_v34 = vadd.f32 %v2050_v13, %v2030_v10  ;;  %v9371_v44 = vadd.f32 %v2049_v36, %v2029_v11  ;;  %6194 = vmatpush1.bf16.xpose.msk.msra.mxu0 %vm9343_vm0, %v11024_v45  ;;  %vm6261_vm0 = vmpackc.low %vm2770_vm5, %vm2768_vm4  ;;  %vm2774_vm4 = vcmp.eq.s32.totalorder %v11030_v29, %v9080_v52  ;;  %vm2713_vm5 = vcmp.eq.s32.totalorder %v11031_v39, %v9056_v32  ;;  %v11099_v10 = vld [vmem:[#allocation30_spill] sm:$0xff]  ;;  %v11107_v13 = vld [vmem:[#allocation36_spill] sm:$0xff] }
 0x305   : > { %v9376_v28 = vadd.f32 %v2051_v41, %v2031_v23  ;;  %6258 = vmatpush1.bf16.xpose.msk.msra.mxu1 %vm6257_vm15, %v11024_v45  ;;  %6196 = vmatprep.subr.msk.bf16.mxu0 %vm6195_vm11, %v11024_v45  ;;  %vm6199_vm15 = vmpackc.low %vm2711_vm3, %vm2709_vm13  ;;  %vm2715_vm13 = vcmp.eq.s32.totalorder %v11045_v50, %v9056_v32  ;;  %v9439_v11 = vrot.slane %v7644_v31, %v3231_v1  ;;  %v11104_v23 = vld [vmem:[#allocation66_spill] sm:$0xff]  ;;  %v11108_v36 = vld [vmem:[#allocation68_spill] sm:$0xff] }
 0x306   : > { %6260 = vmatprep.subr.msk.bf16.mxu1 %vm6259_vm2, %v11024_v45  ;;  %vm6263_vm11 = vmpackc.low %vm2775_vm14, %vm2773_vm12  ;;  %vm2708_vm2 = vcmp.eq.s32.totalorder %v11027_v25, %v9080_v52  ;;  %vm2779_vm12 = vcmp.eq.s32.totalorder %v11033_v24, %v9056_v32  ;;  %v11109_v41 = vld [vmem:[#allocation69_spill] sm:$0xff] }
 0x307   : > { %vm6201_vm3 = vmpackc.low %vm2710_vm1, %vm2708_vm2  ;;  %vm2714_vm2 = vcmp.eq.s32.totalorder %v11045_v50, %v9080_v52  ;;  %vm2776_vm1 = vcmp.eq.s32.totalorder %v11065_v22, %v9080_v52 }
 0x308   : > { %vm6265_vm14 = vmpackc.low %vm2774_vm4, %vm2772_vm10  ;;  %vm2778_vm10 = vcmp.eq.s32.totalorder %v11033_v24, %v9080_v52  ;;  %vm2717_vm4 = vcmp.eq.s32.totalorder %v11020_v53, %v9056_v32 }
 0x30c   : > { %6198 = vmatpush1.bf16.xpose.msk.msra.mxu0 %vm6197_vm7, %v11024_v45  ;;  %vm2777_vm7 = vcmp.eq.s32.totalorder %v11065_v22, %v9056_v32 }
 0x30d   : > { %6262 = vmatpush1.bf16.xpose.msk.msra.mxu1 %vm6261_vm0, %v11024_v45  ;;  %6200 = vmatprep.subr.msk.bf16.mxu0 %vm6199_vm15, %v11024_v45  ;;  %vm6203_vm0 = vmpackc.low %vm2715_vm13, %vm2713_vm5  ;;  %vm2719_vm5 = vcmp.eq.s32.totalorder %v11021_v46, %v9056_v32 }
 0x30e   : > { %6264 = vmatprep.subr.msk.bf16.mxu1 %vm6263_vm11, %v11024_v45  ;;  %vm6267_vm15 = vmpackc.low %vm2779_vm12, %vm2777_vm7  ;;  %vm2712_vm11 = vcmp.eq.s32.totalorder %v11031_v39, %v9080_v52  ;;  %vm2783_vm7 = vcmp.eq.s32.totalorder %v11023_v54, %v9056_v32 }
 0x30f   : > { %vm6205_vm13 = vmpackc.low %vm2714_vm2, %vm2712_vm11  ;;  %vm2718_vm11 = vcmp.eq.s32.totalorder %v11021_v46, %v9080_v52  ;;  %vm2780_vm2 = vcmp.eq.s32.totalorder %v11022_v58, %v9080_v52 }
 0x310   : > { %vm6269_vm12 = vmpackc.low %vm2778_vm10, %vm2776_vm1  ;;  %vm2782_vm1 = vcmp.eq.s32.totalorder %v11023_v54, %v9080_v52  ;;  %vm3238_vm10 = vcmp.eq.s32.totalorder %v10946_v2, %v9439_v11 }
 0x314   : > { %6202 = vmatpush1.bf16.xpose.msk.msra.mxu0 %vm6201_vm3, %v11024_v45  ;;  %vm2781_vm3 = vcmp.eq.s32.totalorder %v11022_v58, %v9056_v32  ;;  %v9462_v32 = vrot.slane %v7650_v37, %v3231_v1  ;;  %v11110_v1 = vld [vmem:[#allocation39_spill] sm:$0xff] }
 0x315   : > { %6266 = vmatpush1.bf16.xpose.msk.msra.mxu1 %vm6265_vm14, %v11024_v45  ;;  %6204 = vmatprep.subr.msk.bf16.mxu0 %vm6203_vm0, %v11024_v45  ;;  %vm6207_vm14 = vmpackc.low %vm2719_vm5, %vm2717_vm4  ;;  %vm3240_vm4 = vcmp.eq.s32.totalorder %v10953_v3, %v9439_v11 }
 0x316   : > { %6268 = vmatprep.subr.msk.bf16.mxu1 %vm6267_vm15, %v11024_v45  ;;  %vm6271_vm0 = vmpackc.low %vm2783_vm7, %vm2781_vm3  ;;  %vm2716_vm15 = vcmp.eq.s32.totalorder %v11020_v53, %v9080_v52  ;;  %vm3304_vm3 = vcmp.eq.s32.totalorder %v7470_v57, %v9439_v11  ;;  %v11097_v52 = vld [vmem:[#allocation63_spill] sm:$0xff] }
 0x317   : > { %vm6209_vm5 = vmpackc.low %vm2718_vm11, %vm2716_vm15  ;;  %vm3239_vm15 = vcmp.eq.s32.totalorder %v10953_v3, %v9462_v32  ;;  %vm3301_vm11 = vcmp.eq.s32.totalorder %v7467_v56, %v9462_v32 }
 0x318   : > { %vm6273_vm7 = vmpackc.low %vm2782_vm1, %vm2780_vm2  ;;  %vm3303_vm2 = vcmp.eq.s32.totalorder %v7470_v57, %v9462_v32  ;;  %vm3242_vm1 = vcmp.eq.s32.totalorder %v10952_v4, %v9439_v11 }
 0x31c   : > { %6206 = vmatpush1.bf16.xpose.msk.msra.mxu0 %vm6205_vm13, %v11024_v45  ;;  %vm3302_vm13 = vcmp.eq.s32.totalorder %v7467_v56, %v9439_v11 }
 0x31d   : > { %6270 = vmatpush1.bf16.xpose.msk.msra.mxu1 %vm6269_vm12, %v11024_v45  ;;  %6208 = vmatprep.subr.msk.bf16.mxu0 %vm6207_vm14, %v11024_v45  ;;  %vm6403_vm12 = vmpackc.low %vm3240_vm4, %vm3238_vm10  ;;  %vm3244_vm10 = vcmp.eq.s32.totalorder %v10951_v5, %v9439_v11 }
 0x31e   : > { %6272 = vmatprep.subr.msk.bf16.mxu1 %vm6271_vm0, %v11024_v45  ;;  %vm6467_vm14 = vmpackc.low %vm3304_vm3, %vm3302_vm13  ;;  %vm3237_vm0 = vcmp.eq.s32.totalorder %v10946_v2, %v9462_v32  ;;  %vm3308_vm13 = vcmp.eq.s32.totalorder %v7480_v60, %v9439_v11 }
 0x31f   : > { %vm6405_vm4 = vmpackc.low %vm3239_vm15, %vm3237_vm0  ;;  %vm3243_vm0 = vcmp.eq.s32.totalorder %v10951_v5, %v9462_v32  ;;  %vm3305_vm15 = vcmp.eq.s32.totalorder %v7477_v59, %v9462_v32 }
 0x320   : > { %vm6469_vm3 = vmpackc.low %vm3303_vm2, %vm3301_vm11  ;;  %vm3307_vm11 = vcmp.eq.s32.totalorder %v7480_v60, %v9462_v32  ;;  %vm3246_vm2 = vcmp.eq.s32.totalorder %v10950_v6, %v9439_v11 }
 0x324   : > { %6210 = vmatpush1.bf16.xpose.msk.msra.mxu0 %vm6209_vm5, %v11024_v45  ;;  %vm3306_vm5 = vcmp.eq.s32.totalorder %v7477_v59, %v9439_v11 }
 0x325   : > { %6274 = vmatpush1.bf16.xpose.msk.msra.mxu1 %vm6273_vm7, %v11024_v45  ;;  %6404 = vmatprep.subr.msk.bf16.mxu0 %vm6403_vm12, %v11024_v45  ;;  %vm6407_vm7 = vmpackc.low %vm3244_vm10, %vm3242_vm1  ;;  %vm3248_vm1 = vcmp.eq.s32.totalorder %v10949_v7, %v9439_v11 }
 0x326   : > { %6468 = vmatprep.subr.msk.bf16.mxu1 %vm6467_vm14, %v11024_v45  ;;  %vm6471_vm12 = vmpackc.low %vm3308_vm13, %vm3306_vm5  ;;  %vm3241_vm14 = vcmp.eq.s32.totalorder %v10952_v4, %v9462_v32  ;;  %vm3312_vm5 = vcmp.eq.s32.totalorder %v7486_v62, %v9439_v11 }
 0x327   : > { %vm6409_vm10 = vmpackc.low %vm3243_vm0, %vm3241_vm14  ;;  %vm3247_vm14 = vcmp.eq.s32.totalorder %v10949_v7, %v9462_v32  ;;  %vm3309_vm0 = vcmp.eq.s32.totalorder %v7483_v61, %v9462_v32 }
 0x328   : > { %vm6473_vm13 = vmpackc.low %vm3307_vm11, %vm3305_vm15  ;;  %vm3311_vm15 = vcmp.eq.s32.totalorder %v7486_v62, %v9462_v32  ;;  %vm3250_vm11 = vcmp.eq.s32.totalorder %v10948_v8, %v9439_v11 }
 0x32b   : > { %3137 = vmatmul.mubr.bf16.vlgmr.msra.gmra.mrb[16].mxu0 %v11025_v35 }
 0x32c   : > { %3178 = vmatmul.mubr.bf16.vlgmr.msra.gmra.mrb[16].mxu1 %v11025_v35  ;;  %6406 = vmatpush1.bf16.xpose.msk.msra.mxu0 %vm6405_vm4, %v11024_v45  ;;  %vm3310_vm4 = vcmp.eq.s32.totalorder %v7483_v61, %v9439_v11 }
 0x32d   : > { %6470 = vmatpush1.bf16.xpose.msk.msra.mxu1 %vm6469_vm3, %v11024_v45  ;;  %6408 = vmatprep.subr.msk.bf16.mxu0 %vm6407_vm7, %v11024_v45  ;;  %vm6411_vm3 = vmpackc.low %vm3248_vm1, %vm3246_vm2  ;;  %vm3252_vm2 = vcmp.eq.s32.totalorder %v10947_v9, %v9439_v11 }
 0x32e   : > { %6472 = vmatprep.subr.msk.bf16.mxu1 %vm6471_vm12, %v11024_v45  ;;  %3717 = vmatprep.mubr.bf16.mxu0 %v11026_v38  ;;  %vm6475_vm7 = vmpackc.low %vm3312_vm5, %vm3310_vm4  ;;  %vm3245_vm12 = vcmp.eq.s32.totalorder %v10950_v6, %v9462_v32  ;;  %vm3316_vm4 = vcmp.eq.s32.totalorder %v10954_v0, %v9439_v11 }
 0x32f   : > { %3758 = vmatprep.mubr.bf16.mxu1 %v11026_v38  ;;  %vm6413_vm1 = vmpackc.low %vm3247_vm14, %vm3245_vm12  ;;  %vm3251_vm12 = vcmp.eq.s32.totalorder %v10947_v9, %v9462_v32  ;;  %vm3313_vm14 = vcmp.eq.s32.totalorder %v7493_v63, %v9462_v32 }
 0x330   : > { %vm6477_vm5 = vmpackc.low %vm3311_vm15, %vm3309_vm0  ;;  %vm3315_vm0 = vcmp.eq.s32.totalorder %v10954_v0, %v9462_v32  ;;  %vm3254_vm15 = vcmp.eq.s32.totalorder %v11067_v30, %v9439_v11 }
 0x334   : > { %6410 = vmatpush1.bf16.xpose.msk.msra.mxu0 %vm6409_vm10, %v11024_v45  ;;  %vm3314_vm10 = vcmp.eq.s32.totalorder %v7493_v63, %v9439_v11 }
 0x335   : > { %6474 = vmatpush1.bf16.xpose.msk.msra.mxu1 %vm6473_vm13, %v11024_v45  ;;  %6412 = vmatprep.subr.msk.bf16.mxu0 %vm6411_vm3, %v11024_v45  ;;  %vm6415_vm13 = vmpackc.low %vm3252_vm2, %vm3250_vm11  ;;  %vm3256_vm11 = vcmp.eq.s32.totalorder %v11068_v48, %v9439_v11 }
 0x336   : > { %6476 = vmatprep.subr.msk.bf16.mxu1 %vm6475_vm7, %v11024_v45  ;;  %vm6479_vm3 = vmpackc.low %vm3316_vm4, %vm3314_vm10  ;;  %vm3249_vm7 = vcmp.eq.s32.totalorder %v10948_v8, %v9462_v32  ;;  %vm3320_vm10 = vcmp.eq.s32.totalorder %v11097_v52, %v9439_v11 }
 0x337   : > { %vm6417_vm2 = vmpackc.low %vm3251_vm12, %vm3249_vm7  ;;  %vm3255_vm7 = vcmp.eq.s32.totalorder %v11068_v48, %v9462_v32  ;;  %vm3317_vm12 = vcmp.eq.s32.totalorder %v11069_v20, %v9462_v32 }
 0x338   : > { %vm6481_vm4 = vmpackc.low %vm3315_vm0, %vm3313_vm14  ;;  %vm3319_vm14 = vcmp.eq.s32.totalorder %v11097_v52, %v9462_v32  ;;  %vm3258_vm0 = vcmp.eq.s32.totalorder %v11098_v27, %v9439_v11 }
 0x33c   : > { %6414 = vmatpush1.bf16.xpose.msk.msra.mxu0 %vm6413_vm1, %v11024_v45  ;;  %vm3318_vm1 = vcmp.eq.s32.totalorder %v11069_v20, %v9439_v11 }
 0x33d   : > { %6478 = vmatpush1.bf16.xpose.msk.msra.mxu1 %vm6477_vm5, %v11024_v45  ;;  %6416 = vmatprep.subr.msk.bf16.mxu0 %vm6415_vm13, %v11024_v45  ;;  %vm6419_vm5 = vmpackc.low %vm3256_vm11, %vm3254_vm15  ;;  %vm3260_vm15 = vcmp.eq.s32.totalorder %v11099_v10, %v9439_v11 }
 0x33e   : > { %6480 = vmatprep.subr.msk.bf16.mxu1 %vm6479_vm3, %v11024_v45  ;;  %vm6483_vm13 = vmpackc.low %vm3320_vm10, %vm3318_vm1  ;;  %vm3253_vm3 = vcmp.eq.s32.totalorder %v11067_v30, %v9462_v32  ;;  %vm3324_vm1 = vcmp.eq.s32.totalorder %v11101_v18, %v9439_v11 }
 0x33f   : > { %vm6421_vm11 = vmpackc.low %vm3255_vm7, %vm3253_vm3  ;;  %vm3259_vm3 = vcmp.eq.s32.totalorder %v11099_v10, %v9462_v32  ;;  %vm3321_vm7 = vcmp.eq.s32.totalorder %v11100_v17, %v9462_v32 }
 0x340   : > { %vm6485_vm10 = vmpackc.low %vm3319_vm14, %vm3317_vm12  ;;  %vm3323_vm12 = vcmp.eq.s32.totalorder %v11101_v18, %v9462_v32  ;;  %vm3262_vm14 = vcmp.eq.s32.totalorder %v11102_v33, %v9439_v11 }
 0x344   : > { %6418 = vmatpush1.bf16.xpose.msk.msra.mxu0 %vm6417_vm2, %v11024_v45  ;;  %vm3322_vm2 = vcmp.eq.s32.totalorder %v11100_v17, %v9439_v11 }
 0x345   : > { %6482 = vmatpush1.bf16.xpose.msk.msra.mxu1 %vm6481_vm4, %v11024_v45  ;;  %6420 = vmatprep.subr.msk.bf16.mxu0 %vm6419_vm5, %v11024_v45  ;;  %vm6423_vm4 = vmpackc.low %vm3260_vm15, %vm3258_vm0  ;;  %vm3264_vm0 = vcmp.eq.s32.totalorder %v11103_v21, %v9439_v11 }
 0x346   : > { %6484 = vmatprep.subr.msk.bf16.mxu1 %vm6483_vm13, %v11024_v45  ;;  %vm6487_vm5 = vmpackc.low %vm3324_vm1, %vm3322_vm2  ;;  %vm3257_vm13 = vcmp.eq.s32.totalorder %v11098_v27, %v9462_v32  ;;  %vm3328_vm2 = vcmp.eq.s32.totalorder %v11105_v43, %v9439_v11 }
 0x347   : > { %vm6425_vm15 = vmpackc.low %vm3259_vm3, %vm3257_vm13  ;;  %vm3263_vm13 = vcmp.eq.s32.totalorder %v11103_v21, %v9462_v32  ;;  %vm3325_vm3 = vcmp.eq.s32.totalorder %v11104_v23, %v9462_v32 }
 0x348   : > { %vm6489_vm1 = vmpackc.low %vm3323_vm12, %vm3321_vm7  ;;  %vm3327_vm7 = vcmp.eq.s32.totalorder %v11105_v43, %v9462_v32  ;;  %vm3266_vm12 = vcmp.eq.s32.totalorder %v11106_v42, %v9439_v11  ;;  %v11111_v43 = vld [vmem:[#allocation40_spill] sm:$0xff] }
 0x34c   : > { %6422 = vmatpush1.bf16.xpose.msk.msra.mxu0 %vm6421_vm11, %v11024_v45  ;;  %vm3326_vm11 = vcmp.eq.s32.totalorder %v11104_v23, %v9439_v11 }
 0x34d   : > { %6486 = vmatpush1.bf16.xpose.msk.msra.mxu1 %vm6485_vm10, %v11024_v45  ;;  %6424 = vmatprep.subr.msk.bf16.mxu0 %vm6423_vm4, %v11024_v45  ;;  %vm6427_vm10 = vmpackc.low %vm3264_vm0, %vm3262_vm14  ;;  %vm3268_vm14 = vcmp.eq.s32.totalorder %v11107_v13, %v9439_v11 }
 0x34e   : > { %6488 = vmatprep.subr.msk.bf16.mxu1 %vm6487_vm5, %v11024_v45  ;;  %vm6491_vm4 = vmpackc.low %vm3328_vm2, %vm3326_vm11  ;;  %vm3261_vm5 = vcmp.eq.s32.totalorder %v11102_v33, %v9462_v32  ;;  %vm3332_vm11 = vcmp.eq.s32.totalorder %v11109_v41, %v9439_v11 }
 0x34f   : > { %vm6429_vm0 = vmpackc.low %vm3263_vm13, %vm3261_vm5  ;;  %vm3267_vm5 = vcmp.eq.s32.totalorder %v11107_v13, %v9462_v32  ;;  %vm3329_vm13 = vcmp.eq.s32.totalorder %v11108_v36, %v9462_v32  ;;  %v11113_v13 = vld [vmem:[#allocation71_spill] sm:$0xff] }
 0x350   : > { %vm6493_vm2 = vmpackc.low %vm3327_vm7, %vm3325_vm3  ;;  %vm3331_vm3 = vcmp.eq.s32.totalorder %v11109_v41, %v9462_v32  ;;  %vm3270_vm7 = vcmp.eq.s32.totalorder %v11110_v1, %v9439_v11  ;;  %v11114_v41 = vld [vmem:[#allocation41_spill] sm:$0xff] }
 0x354   : > { %6426 = vmatpush1.bf16.xpose.msk.msra.mxu0 %vm6425_vm15, %v11024_v45  ;;  %vm3330_vm15 = vcmp.eq.s32.totalorder %v11108_v36, %v9439_v11  ;;  %v11115_v36 = vld [vmem:[#allocation42_spill] sm:$0xff] }
 0x355   : > { %6490 = vmatpush1.bf16.xpose.msk.msra.mxu1 %vm6489_vm1, %v11024_v45  ;;  %6428 = vmatprep.subr.msk.bf16.mxu0 %vm6427_vm10, %v11024_v45  ;;  %vm6431_vm1 = vmpackc.low %vm3268_vm14, %vm3266_vm12  ;;  %vm3272_vm12 = vcmp.eq.s32.totalorder %v11111_v43, %v9439_v11 }
 0x356   : > { %6492 = vmatprep.subr.msk.bf16.mxu1 %vm6491_vm4, %v11024_v45  ;;  %vm6495_vm10 = vmpackc.low %vm3332_vm11, %vm3330_vm15  ;;  %vm3265_vm4 = vcmp.eq.s32.totalorder %v11106_v42, %v9462_v32  ;;  %v11112_v42 = vld [vmem:[#allocation70_spill] sm:$0xff]  ;;  %vm3336_vm15 = vcmp.eq.s32.totalorder %v11113_v13, %v9439_v11 }
 0x357   : > { %vm6433_vm14 = vmpackc.low %vm3267_vm5, %vm3265_vm4  ;;  %vm3271_vm4 = vcmp.eq.s32.totalorder %v11111_v43, %v9462_v32  ;;  %vm3333_vm5 = vcmp.eq.s32.totalorder %v11112_v42, %v9462_v32  ;;  %v11117_v43 = vld [vmem:[#allocation73_spill] sm:$0xff] }
 0x358   : > { %vm6497_vm11 = vmpackc.low %vm3331_vm3, %vm3329_vm13  ;;  %vm3335_vm13 = vcmp.eq.s32.totalorder %v11113_v13, %v9462_v32  ;;  %vm3274_vm3 = vcmp.eq.s32.totalorder %v11114_v41, %v9439_v11  ;;  %v11118_v13 = vld [vmem:[#allocation45_spill] sm:$0xff] }
 0x35c   : > { %6430 = vmatpush1.bf16.xpose.msk.msra.mxu0 %vm6429_vm0, %v11024_v45  ;;  %vm3334_vm0 = vcmp.eq.s32.totalorder %v11112_v42, %v9439_v11  ;;  %v11119_v42 = vld [vmem:[#allocation46_spill] sm:$0xff] }
 0x35d   : > { %6494 = vmatpush1.bf16.xpose.msk.msra.mxu1 %vm6493_vm2, %v11024_v45  ;;  %6432 = vmatprep.subr.msk.bf16.mxu0 %vm6431_vm1, %v11024_v45  ;;  %vm6435_vm2 = vmpackc.low %vm3272_vm12, %vm3270_vm7  ;;  %vm3276_vm7 = vcmp.eq.s32.totalorder %v11115_v36, %v9439_v11 }
 0x35e   : > { %6496 = vmatprep.subr.msk.bf16.mxu1 %vm6495_vm10, %v11024_v45  ;;  %vm6499_vm1 = vmpackc.low %vm3336_vm15, %vm3334_vm0  ;;  %vm3269_vm10 = vcmp.eq.s32.totalorder %v11110_v1, %v9462_v32  ;;  %v11116_v1 = vld [vmem:[#allocation72_spill] sm:$0xff]  ;;  %vm3340_vm0 = vcmp.eq.s32.totalorder %v11117_v43, %v9439_v11 }
 0x35f   : > { %vm6437_vm12 = vmpackc.low %vm3271_vm4, %vm3269_vm10  ;;  %vm3275_vm10 = vcmp.eq.s32.totalorder %v11115_v36, %v9462_v32  ;;  %vm3337_vm4 = vcmp.eq.s32.totalorder %v11116_v1, %v9462_v32  ;;  %v11121_v36 = vld [vmem:[#allocation75_spill] sm:$0xff] }
 0x360   : > { %vm6501_vm15 = vmpackc.low %vm3335_vm13, %vm3333_vm5  ;;  %vm3339_vm5 = vcmp.eq.s32.totalorder %v11117_v43, %v9462_v32  ;;  %vm3278_vm13 = vcmp.eq.s32.totalorder %v11118_v13, %v9439_v11  ;;  %v2063_v43 = vstv %s2062_s13 }
 0x364   : > { %6434 = vmatpush1.bf16.xpose.msk.msra.mxu0 %vm6433_vm14, %v11024_v45  ;;  %vm3338_vm14 = vcmp.eq.s32.totalorder %v11116_v1, %v9439_v11  ;;  %v11122_v1 = vld [vmem:[#allocation48_spill] sm:$0xff] }
 0x365   : > { %6498 = vmatpush1.bf16.xpose.msk.msra.mxu1 %vm6497_vm11, %v11024_v45  ;;  %6436 = vmatprep.subr.msk.bf16.mxu0 %vm6435_vm2, %v11024_v45  ;;  %vm6439_vm11 = vmpackc.low %vm3276_vm7, %vm3274_vm3  ;;  %vm3280_vm3 = vcmp.eq.s32.totalorder %v11119_v42, %v9439_v11 }
 0x366   : > { %6500 = vmatprep.subr.msk.bf16.mxu1 %vm6499_vm1, %v11024_v45  ;;  %vm6503_vm2 = vmpackc.low %vm3340_vm0, %vm3338_vm14  ;;  %vm3273_vm1 = vcmp.eq.s32.totalorder %v11114_v41, %v9462_v32  ;;  %v11120_v41 = vld [vmem:[#allocation74_spill] sm:$0xff]  ;;  %vm3344_vm14 = vcmp.eq.s32.totalorder %v11121_v36, %v9439_v11 }
 0x367   : > { %vm6441_vm7 = vmpackc.low %vm3275_vm10, %vm3273_vm1  ;;  %vm3279_vm1 = vcmp.eq.s32.totalorder %v11119_v42, %v9462_v32  ;;  %vm3341_vm10 = vcmp.eq.s32.totalorder %v11120_v41, %v9462_v32  ;;  %v2065_v42 = vstv %s2061_s18 }
 0x368   : > { %vm6505_vm0 = vmpackc.low %vm3339_vm5, %vm3337_vm4  ;;  %vm3343_vm4 = vcmp.eq.s32.totalorder %v11121_v36, %v9462_v32  ;;  %vm3282_vm5 = vcmp.eq.s32.totalorder %v11059_v12, %v9439_v11 }
 0x36c   : > { %6438 = vmatpush1.bf16.xpose.msk.msra.mxu0 %vm6437_vm12, %v11024_v45  ;;  %vm3342_vm12 = vcmp.eq.s32.totalorder %v11120_v41, %v9439_v11  ;;  %v2064_v41 = vsel %vm319_vm6, %v2063_v43, 0.0 }
 0x36d   : > { %6502 = vmatpush1.bf16.xpose.msk.msra.mxu1 %vm6501_vm15, %v11024_v45  ;;  %6440 = vmatprep.subr.msk.bf16.mxu0 %vm6439_vm11, %v11024_v45  ;;  %vm6443_vm15 = vmpackc.low %vm3280_vm3, %vm3278_vm13  ;;  %vm3284_vm13 = vcmp.eq.s32.totalorder %v11122_v1, %v9439_v11 }
 0x36e   : > { %6504 = vmatprep.subr.msk.bf16.mxu1 %vm6503_vm2, %v11024_v45  ;;  %vm6507_vm11 = vmpackc.low %vm3344_vm14, %vm3342_vm12  ;;  %vm3277_vm2 = vcmp.eq.s32.totalorder %v11118_v13, %v9462_v32  ;;  %vm3348_vm12 = vcmp.eq.s32.totalorder %v11062_v16, %v9439_v11 }
 0x36f   : > { %vm6445_vm3 = vmpackc.low %vm3279_vm1, %vm3277_vm2  ;;  %vm3281_vm2 = vcmp.eq.s32.totalorder %v11059_v12, %v9462_v32  ;;  %vm3283_vm1 = vcmp.eq.s32.totalorder %v11122_v1, %v9462_v32 }
 0x370   : > { %vm6509_vm14 = vmpackc.low %vm3343_vm4, %vm3341_vm10  ;;  %vm3345_vm10 = vcmp.eq.s32.totalorder %v11061_v15, %v9462_v32  ;;  %vm3347_vm4 = vcmp.eq.s32.totalorder %v11062_v16, %v9462_v32 }
 0x374   : > { %6442 = vmatpush1.bf16.xpose.msk.msra.mxu0 %vm6441_vm7, %v11024_v45  ;;  %vm3346_vm7 = vcmp.eq.s32.totalorder %v11061_v15, %v9439_v11 }
 0x375   : > { %6506 = vmatpush1.bf16.xpose.msk.msra.mxu1 %vm6505_vm0, %v11024_v45  ;;  %6444 = vmatprep.subr.msk.bf16.mxu0 %vm6443_vm15, %v11024_v45  ;;  %vm6447_vm0 = vmpackc.low %vm3284_vm13, %vm3282_vm5  ;;  %vm3286_vm5 = vcmp.eq.s32.totalorder %v11040_v47, %v9439_v11  ;;  %vm3288_vm13 = vcmp.eq.s32.totalorder %v11041_v55, %v9439_v11 }
 0x376   : > { %6508 = vmatprep.subr.msk.bf16.mxu1 %vm6507_vm11, %v11024_v45  ;;  %vm6511_vm15 = vmpackc.low %vm3348_vm12, %vm3346_vm7  ;;  %vm11123_vm11 = vcmp.eq.s32.totalorder %v10946_v2, 1  ;;  %vm3352_vm7 = vcmp.eq.s32.totalorder %v11043_v40, %v9439_v11 }
 0x377   : > { %v2066_v36 = vsel %vm11123_vm11, %v2065_v42, %v2064_v41  ;;  %vm9725_vm12 = vmpackc.low %vm3283_vm1, %vm3281_vm2  ;;  %vm3285_vm11 = vcmp.eq.s32.totalorder %v11040_v47, %v9462_v32  ;;  %vm3287_vm2 = vcmp.eq.s32.totalorder %v11041_v55, %v9462_v32  ;;  %vm3349_vm1 = vcmp.eq.s32.totalorder %v11042_v14, %v9462_v32 }
 0x37c   : > { %6446 = vmatpush1.bf16.xpose.msk.msra.mxu0 %vm6445_vm3, %v11024_v45  ;;  %vm3350_vm3 = vcmp.eq.s32.totalorder %v11042_v14, %v9439_v11 }
 0x37d   : > { %6510 = vmatpush1.bf16.xpose.msk.msra.mxu1 %vm6509_vm14, %v11024_v45  ;;  %6448 = vmatprep.subr.msk.bf16.mxu0 %vm6447_vm0, %v11024_v45  ;;  %vm6513_vm14 = vmpackc.low %vm3347_vm4, %vm3345_vm10  ;;  %vm3351_vm10 = vcmp.eq.s32.totalorder %v11043_v40, %v9462_v32  ;;  %vm3290_vm4 = vcmp.eq.s32.totalorder %v11027_v25, %v9439_v11 }
 0x37e   : > { %v2557_v13 = vpop.f32.mrb[12].mxu0  ;;  %6512 = vmatprep.subr.msk.bf16.mxu1 %vm6511_vm15, %v11024_v45  ;;  %vm6451_vm0 = vmpackc.low %vm3288_vm13, %vm3286_vm5  ;;  %vm3292_vm5 = vcmp.eq.s32.totalorder %v11044_v49, %v9439_v11 }
 0x37f   : > { %v2609_v43 = vadd.f32 %v2557_v13, %v9361_v51  ;;  %v2616_v42 = vrot.slane %v2557_v13, %v11055_v19  ;;  %v2598_v41 = vpop.f32.mrb[12].mxu1  ;;  %v2559_v23 = vpop.f32.mrb[13].mxu0  ;;  %vm6515_vm15 = vmpackc.low %vm3352_vm7, %vm3350_vm3  ;;  %vm3354_vm3 = vcmp.eq.s32.totalorder %v11029_v26, %v9439_v11  ;;  %vm3356_vm7 = vcmp.eq.s32.totalorder %v11030_v29, %v9439_v11  ;;  %v11132_v13 = vld [vmem:[#allocation34_spill] sm:$0xff] }
 0x380   : > { %v2611_v21 = vadd.f32 %v2598_v41, %v9369_v34  ;;  %v2624_v33 = vrot.slane %v2598_v41, %v11055_v19  ;;  %v2610_v18 = vadd.f32 %v2559_v23, %v9371_v44  ;;  %v2620_v17 = vrot.slane %v2559_v23, %v11055_v19  ;;  %v2600_v10 = vpop.f32.mrb[13].mxu1  ;;  %v2561_v51 = vpop.f32.mrb[14].mxu0  ;;  %vm6453_vm13 = vmpackc.low %vm3287_vm2, %vm3285_vm11 }
 0x381   : > { %v2629_v27 = vmul.f32 %v2616_v42, %v2066_v36  ;;  %v2612_v34 = vadd.f32 %v2600_v10, %v9376_v28  ;;  %v2628_v41 = vrot.slane %v2600_v10, %v11055_v19  ;;  %v2602_v44 = vpop.f32.mrb[14].mxu1  ;;  %v2562_v52 = vpop.f32.mrb[15].mxu0  ;;  %vm3291_vm11 = vcmp.eq.s32.totalorder %v11044_v49, %v9462_v32  ;;  %v11131_v42 = vld [vmem:[#allocation31_spill] sm:$0xff] }
 0x382   : > { %v2631_v23 = vmul.f32 %v2624_v33, %v2066_v36  ;;  %v2630_v51 = vmul.f32 %v2620_v17, %v2066_v36  ;;  %v2603_v1 = vpop.f32.mrb[15].mxu1  ;;  %vm3353_vm2 = vcmp.eq.s32.totalorder %v11029_v26, %v9462_v32  ;;  %v11135_v44 = vld [vmem:[#allocation35_spill] sm:$0xff] }
 0x383   : > { %v9743_v28 = vadd.f32 %v2629_v27, %v2609_v43  ;;  %v2632_v52 = vmul.f32 %v2628_v41, %v2066_v36  ;;  %v3812_v27 = vsub.s32 6, %v10946_v2  ;;  %v11128_v36 = vld [vmem:[#allocation30_spill] sm:$0xff]  ;;  %v11129_v1 = vld [vmem:[#allocation64_spill] sm:$0xff]  ;;  %v11130_v43 = vld [vmem:[#allocation65_spill] sm:$0xff] }
 0x384   : > { %v9751_v10 = vadd.f32 %v2631_v23, %v2611_v21  ;;  %v9753_v17 = vadd.f32 %v2630_v51, %v2610_v18  ;;  %6450 = vmatpush1.bf16.xpose.msk.msra.mxu0 %vm9725_vm12, %v11024_v45  ;;  %vm6517_vm12 = vmpackc.low %vm3351_vm10, %vm3349_vm1  ;;  %vm3355_vm1 = vcmp.eq.s32.totalorder %v11030_v29, %v9462_v32  ;;  %vm3294_vm10 = vcmp.eq.s32.totalorder %v11031_v39, %v9439_v11  ;;  %v11127_v21 = vld [vmem:[#allocation29_spill] sm:$0xff]  ;;  %v11134_v41 = vld [vmem:[#allocation67_spill] sm:$0xff] }
 0x385   : > { %v9758_v33 = vadd.f32 %v2632_v52, %v2612_v34  ;;  %6514 = vmatpush1.bf16.xpose.msk.msra.mxu1 %vm6513_vm14, %v11024_v45  ;;  %6452 = vmatprep.subr.msk.bf16.mxu0 %vm6451_vm0, %v11024_v45  ;;  %vm6455_vm14 = vmpackc.low %vm3292_vm5, %vm3290_vm4  ;;  %vm3296_vm4 = vcmp.eq.s32.totalorder %v11045_v50, %v9439_v11  ;;  %v9821_v18 = vrot.slane %v7644_v31, %v3812_v27  ;;  %v11133_v34 = vld [vmem:[#allocation66_spill] sm:$0xff]  ;;  %v11136_v23 = vld [vmem:[#allocation36_spill] sm:$0xff] }
 0x386   : > { %6516 = vmatprep.subr.msk.bf16.mxu1 %vm6515_vm15, %v11024_v45  ;;  %vm6519_vm0 = vmpackc.low %vm3356_vm7, %vm3354_vm3  ;;  %vm3289_vm15 = vcmp.eq.s32.totalorder %v11027_v25, %v9462_v32  ;;  %vm3360_vm3 = vcmp.eq.s32.totalorder %v11033_v24, %v9439_v11  ;;  %v11137_v51 = vld [vmem:[#allocation68_spill] sm:$0xff]  ;;  %v11138_v52 = vld [vmem:[#allocation69_spill] sm:$0xff] }
 0x387   : > { %vm6457_vm5 = vmpackc.low %vm3291_vm11, %vm3289_vm15  ;;  %vm3295_vm15 = vcmp.eq.s32.totalorder %v11045_v50, %v9462_v32  ;;  %vm3357_vm11 = vcmp.eq.s32.totalorder %v11065_v22, %v9462_v32 }
 0x388   : > { %vm6521_vm7 = vmpackc.low %vm3355_vm1, %vm3353_vm2  ;;  %vm3359_vm2 = vcmp.eq.s32.totalorder %v11033_v24, %v9462_v32  ;;  %vm3298_vm1 = vcmp.eq.s32.totalorder %v11020_v53, %v9439_v11 }
 0x38c   : > { %6454 = vmatpush1.bf16.xpose.msk.msra.mxu0 %vm6453_vm13, %v11024_v45  ;;  %vm3358_vm13 = vcmp.eq.s32.totalorder %v11065_v22, %v9439_v11 }
 0x38d   : > { %6518 = vmatpush1.bf16.xpose.msk.msra.mxu1 %vm6517_vm12, %v11024_v45  ;;  %6456 = vmatprep.subr.msk.bf16.mxu0 %vm6455_vm14, %v11024_v45  ;;  %vm6459_vm12 = vmpackc.low %vm3296_vm4, %vm3294_vm10  ;;  %vm3300_vm10 = vcmp.eq.s32.totalorder %v11021_v46, %v9439_v11 }
 0x38e   : > { %6520 = vmatprep.subr.msk.bf16.mxu1 %vm6519_vm0, %v11024_v45  ;;  %vm6523_vm14 = vmpackc.low %vm3360_vm3, %vm3358_vm13  ;;  %vm3293_vm0 = vcmp.eq.s32.totalorder %v11031_v39, %v9462_v32  ;;  %vm3364_vm13 = vcmp.eq.s32.totalorder %v11023_v54, %v9439_v11 }
 0x38f   : > { %vm6461_vm4 = vmpackc.low %vm3295_vm15, %vm3293_vm0  ;;  %vm3299_vm0 = vcmp.eq.s32.totalorder %v11021_v46, %v9462_v32  ;;  %vm3361_vm15 = vcmp.eq.s32.totalorder %v11022_v58, %v9462_v32 }
 0x390   : > { %vm6525_vm3 = vmpackc.low %vm3359_vm2, %vm3357_vm11  ;;  %vm3363_vm11 = vcmp.eq.s32.totalorder %v11023_v54, %v9462_v32  ;;  %vm3819_vm2 = vcmp.eq.s32.totalorder %v10946_v2, %v9821_v18 }
 0x394   : > { %6458 = vmatpush1.bf16.xpose.msk.msra.mxu0 %vm6457_vm5, %v11024_v45  ;;  %vm3362_vm5 = vcmp.eq.s32.totalorder %v11022_v58, %v9439_v11  ;;  %v9844_v11 = vrot.slane %v7650_v37, %v3812_v27  ;;  %v11139_v27 = vld [vmem:[#allocation39_spill] sm:$0xff] }
 0x395   : > { %6522 = vmatpush1.bf16.xpose.msk.msra.mxu1 %vm6521_vm7, %v11024_v45  ;;  %6460 = vmatprep.subr.msk.bf16.mxu0 %vm6459_vm12, %v11024_v45  ;;  %vm6463_vm7 = vmpackc.low %vm3300_vm10, %vm3298_vm1  ;;  %vm3821_vm1 = vcmp.eq.s32.totalorder %v10953_v3, %v9821_v18 }
 0x396   : > { %6524 = vmatprep.subr.msk.bf16.mxu1 %vm6523_vm14, %v11024_v45  ;;  %vm6527_vm12 = vmpackc.low %vm3364_vm13, %vm3362_vm5  ;;  %vm3297_vm14 = vcmp.eq.s32.totalorder %v11020_v53, %v9462_v32  ;;  %vm3885_vm5 = vcmp.eq.s32.totalorder %v7470_v57, %v9821_v18  ;;  %v11126_v32 = vld [vmem:[#allocation63_spill] sm:$0xff] }
 0x397   : > { %vm6465_vm10 = vmpackc.low %vm3299_vm0, %vm3297_vm14  ;;  %vm3820_vm14 = vcmp.eq.s32.totalorder %v10953_v3, %v9844_v11  ;;  %vm3882_vm0 = vcmp.eq.s32.totalorder %v7467_v56, %v9844_v11 }
 0x398   : > { %vm6529_vm13 = vmpackc.low %vm3363_vm11, %vm3361_vm15  ;;  %vm3884_vm15 = vcmp.eq.s32.totalorder %v7470_v57, %v9844_v11  ;;  %vm3823_vm11 = vcmp.eq.s32.totalorder %v10952_v4, %v9821_v18 }
 0x39c   : > { %6462 = vmatpush1.bf16.xpose.msk.msra.mxu0 %vm6461_vm4, %v11024_v45  ;;  %vm3883_vm4 = vcmp.eq.s32.totalorder %v7467_v56, %v9821_v18 }
 0x39d   : > { %6526 = vmatpush1.bf16.xpose.msk.msra.mxu1 %vm6525_vm3, %v11024_v45  ;;  %6464 = vmatprep.subr.msk.bf16.mxu0 %vm6463_vm7, %v11024_v45  ;;  %vm6659_vm3 = vmpackc.low %vm3821_vm1, %vm3819_vm2  ;;  %vm3825_vm2 = vcmp.eq.s32.totalorder %v10951_v5, %v9821_v18 }
 0x39e   : > { %6528 = vmatprep.subr.msk.bf16.mxu1 %vm6527_vm12, %v11024_v45  ;;  %vm6723_vm7 = vmpackc.low %vm3885_vm5, %vm3883_vm4  ;;  %vm3818_vm12 = vcmp.eq.s32.totalorder %v10946_v2, %v9844_v11  ;;  %vm3889_vm4 = vcmp.eq.s32.totalorder %v7480_v60, %v9821_v18 }
 0x39f   : > { %vm6661_vm1 = vmpackc.low %vm3820_vm14, %vm3818_vm12  ;;  %vm3824_vm12 = vcmp.eq.s32.totalorder %v10951_v5, %v9844_v11  ;;  %vm3886_vm14 = vcmp.eq.s32.totalorder %v7477_v59, %v9844_v11 }
 0x3a0   : > { %vm6725_vm5 = vmpackc.low %vm3884_vm15, %vm3882_vm0  ;;  %vm3888_vm0 = vcmp.eq.s32.totalorder %v7480_v60, %v9844_v11  ;;  %vm3827_vm15 = vcmp.eq.s32.totalorder %v10950_v6, %v9821_v18 }
 0x3a4   : > { %6466 = vmatpush1.bf16.xpose.msk.msra.mxu0 %vm6465_vm10, %v11024_v45  ;;  %vm3887_vm10 = vcmp.eq.s32.totalorder %v7477_v59, %v9821_v18 }
 0x3a5   : > { %6530 = vmatpush1.bf16.xpose.msk.msra.mxu1 %vm6529_vm13, %v11024_v45  ;;  %6660 = vmatprep.subr.msk.bf16.mxu0 %vm6659_vm3, %v11024_v45  ;;  %vm6663_vm13 = vmpackc.low %vm3825_vm2, %vm3823_vm11  ;;  %vm3829_vm11 = vcmp.eq.s32.totalorder %v10949_v7, %v9821_v18 }
 0x3a6   : > { %6724 = vmatprep.subr.msk.bf16.mxu1 %vm6723_vm7, %v11024_v45  ;;  %vm6727_vm3 = vmpackc.low %vm3889_vm4, %vm3887_vm10  ;;  %vm3822_vm7 = vcmp.eq.s32.totalorder %v10952_v4, %v9844_v11  ;;  %vm3893_vm10 = vcmp.eq.s32.totalorder %v7486_v62, %v9821_v18 }
 0x3a7   : > { %vm6665_vm2 = vmpackc.low %vm3824_vm12, %vm3822_vm7  ;;  %vm3828_vm7 = vcmp.eq.s32.totalorder %v10949_v7, %v9844_v11  ;;  %vm3890_vm12 = vcmp.eq.s32.totalorder %v7483_v61, %v9844_v11 }
 0x3a8   : > { %vm6729_vm4 = vmpackc.low %vm3888_vm0, %vm3886_vm14  ;;  %vm3892_vm14 = vcmp.eq.s32.totalorder %v7486_v62, %v9844_v11  ;;  %vm3831_vm0 = vcmp.eq.s32.totalorder %v10948_v8, %v9821_v18 }
 0x3ab   : > { %3718 = vmatmul.mubr.bf16.vlgmr.msra.gmra.mrb[20].mxu0 %v11025_v35 }
 0x3ac   : > { %3759 = vmatmul.mubr.bf16.vlgmr.msra.gmra.mrb[20].mxu1 %v11025_v35  ;;  %6662 = vmatpush1.bf16.xpose.msk.msra.mxu0 %vm6661_vm1, %v11024_v45  ;;  %vm3891_vm1 = vcmp.eq.s32.totalorder %v7483_v61, %v9821_v18 }
 0x3ad   : > { %6726 = vmatpush1.bf16.xpose.msk.msra.mxu1 %vm6725_vm5, %v11024_v45  ;;  %6664 = vmatprep.subr.msk.bf16.mxu0 %vm6663_vm13, %v11024_v45  ;;  %vm6667_vm5 = vmpackc.low %vm3829_vm11, %vm3827_vm15  ;;  %vm3833_vm15 = vcmp.eq.s32.totalorder %v10947_v9, %v9821_v18 }
 0x3ae   : > { %6728 = vmatprep.subr.msk.bf16.mxu1 %vm6727_vm3, %v11024_v45  ;;  %4298 = vmatprep.mubr.bf16.mxu0 %v11026_v38  ;;  %vm6731_vm13 = vmpackc.low %vm3893_vm10, %vm3891_vm1  ;;  %vm3826_vm3 = vcmp.eq.s32.totalorder %v10950_v6, %v9844_v11  ;;  %vm3897_vm1 = vcmp.eq.s32.totalorder %v10954_v0, %v9821_v18 }
 0x3af   : > { %4339 = vmatprep.mubr.bf16.mxu1 %v11026_v38  ;;  %vm6669_vm11 = vmpackc.low %vm3828_vm7, %vm3826_vm3  ;;  %vm3832_vm3 = vcmp.eq.s32.totalorder %v10947_v9, %v9844_v11  ;;  %vm3894_vm7 = vcmp.eq.s32.totalorder %v7493_v63, %v9844_v11 }
 0x3b0   : > { %vm6733_vm10 = vmpackc.low %vm3892_vm14, %vm3890_vm12  ;;  %vm3896_vm12 = vcmp.eq.s32.totalorder %v10954_v0, %v9844_v11  ;;  %vm3835_vm14 = vcmp.eq.s32.totalorder %v11067_v30, %v9821_v18 }
 0x3b4   : > { %6666 = vmatpush1.bf16.xpose.msk.msra.mxu0 %vm6665_vm2, %v11024_v45  ;;  %vm3895_vm2 = vcmp.eq.s32.totalorder %v7493_v63, %v9821_v18 }
 0x3b5   : > { %6730 = vmatpush1.bf16.xpose.msk.msra.mxu1 %vm6729_vm4, %v11024_v45  ;;  %6668 = vmatprep.subr.msk.bf16.mxu0 %vm6667_vm5, %v11024_v45  ;;  %vm6671_vm4 = vmpackc.low %vm3833_vm15, %vm3831_vm0  ;;  %vm3837_vm0 = vcmp.eq.s32.totalorder %v11068_v48, %v9821_v18 }
 0x3b6   : > { %6732 = vmatprep.subr.msk.bf16.mxu1 %vm6731_vm13, %v11024_v45  ;;  %vm6735_vm5 = vmpackc.low %vm3897_vm1, %vm3895_vm2  ;;  %vm3830_vm13 = vcmp.eq.s32.totalorder %v10948_v8, %v9844_v11  ;;  %vm3901_vm2 = vcmp.eq.s32.totalorder %v11126_v32, %v9821_v18 }
 0x3b7   : > { %vm6673_vm15 = vmpackc.low %vm3832_vm3, %vm3830_vm13  ;;  %vm3836_vm13 = vcmp.eq.s32.totalorder %v11068_v48, %v9844_v11  ;;  %vm3898_vm3 = vcmp.eq.s32.totalorder %v11069_v20, %v9844_v11 }
 0x3b8   : > { %vm6737_vm1 = vmpackc.low %vm3896_vm12, %vm3894_vm7  ;;  %vm3900_vm7 = vcmp.eq.s32.totalorder %v11126_v32, %v9844_v11  ;;  %vm3839_vm12 = vcmp.eq.s32.totalorder %v11127_v21, %v9821_v18 }
 0x3bc   : > { %6670 = vmatpush1.bf16.xpose.msk.msra.mxu0 %vm6669_vm11, %v11024_v45  ;;  %vm3899_vm11 = vcmp.eq.s32.totalorder %v11069_v20, %v9821_v18 }
 0x3bd   : > { %6734 = vmatpush1.bf16.xpose.msk.msra.mxu1 %vm6733_vm10, %v11024_v45  ;;  %6672 = vmatprep.subr.msk.bf16.mxu0 %vm6671_vm4, %v11024_v45  ;;  %vm6675_vm10 = vmpackc.low %vm3837_vm0, %vm3835_vm14  ;;  %vm3841_vm14 = vcmp.eq.s32.totalorder %v11128_v36, %v9821_v18 }
 0x3be   : > { %6736 = vmatprep.subr.msk.bf16.mxu1 %vm6735_vm5, %v11024_v45  ;;  %vm6739_vm4 = vmpackc.low %vm3901_vm2, %vm3899_vm11  ;;  %vm3834_vm5 = vcmp.eq.s32.totalorder %v11067_v30, %v9844_v11  ;;  %vm3905_vm11 = vcmp.eq.s32.totalorder %v11130_v43, %v9821_v18 }
 0x3bf   : > { %vm6677_vm0 = vmpackc.low %vm3836_vm13, %vm3834_vm5  ;;  %vm3840_vm5 = vcmp.eq.s32.totalorder %v11128_v36, %v9844_v11  ;;  %vm3902_vm13 = vcmp.eq.s32.totalorder %v11129_v1, %v9844_v11 }
 0x3c0   : > { %vm6741_vm2 = vmpackc.low %vm3900_vm7, %vm3898_vm3  ;;  %vm3904_vm3 = vcmp.eq.s32.totalorder %v11130_v43, %v9844_v11  ;;  %vm3843_vm7 = vcmp.eq.s32.totalorder %v11131_v42, %v9821_v18 }
 0x3c4   : > { %6674 = vmatpush1.bf16.xpose.msk.msra.mxu0 %vm6673_vm15, %v11024_v45  ;;  %vm3903_vm15 = vcmp.eq.s32.totalorder %v11129_v1, %v9821_v18 }
 0x3c5   : > { %6738 = vmatpush1.bf16.xpose.msk.msra.mxu1 %vm6737_vm1, %v11024_v45  ;;  %6676 = vmatprep.subr.msk.bf16.mxu0 %vm6675_vm10, %v11024_v45  ;;  %vm6679_vm1 = vmpackc.low %vm3841_vm14, %vm3839_vm12  ;;  %vm3845_vm12 = vcmp.eq.s32.totalorder %v11132_v13, %v9821_v18 }
 0x3c6   : > { %6740 = vmatprep.subr.msk.bf16.mxu1 %vm6739_vm4, %v11024_v45  ;;  %vm6743_vm10 = vmpackc.low %vm3905_vm11, %vm3903_vm15  ;;  %vm3838_vm4 = vcmp.eq.s32.totalorder %v11127_v21, %v9844_v11  ;;  %vm3909_vm15 = vcmp.eq.s32.totalorder %v11134_v41, %v9821_v18 }
 0x3c7   : > { %vm6681_vm14 = vmpackc.low %vm3840_vm5, %vm3838_vm4  ;;  %vm3844_vm4 = vcmp.eq.s32.totalorder %v11132_v13, %v9844_v11  ;;  %vm3906_vm5 = vcmp.eq.s32.totalorder %v11133_v34, %v9844_v11 }
 0x3c8   : > { %vm6745_vm11 = vmpackc.low %vm3904_vm3, %vm3902_vm13  ;;  %vm3908_vm13 = vcmp.eq.s32.totalorder %v11134_v41, %v9844_v11  ;;  %vm3847_vm3 = vcmp.eq.s32.totalorder %v11135_v44, %v9821_v18  ;;  %v11140_v41 = vld [vmem:[#allocation40_spill] sm:$0xff] }
 0x3cc   : > { %6678 = vmatpush1.bf16.xpose.msk.msra.mxu0 %vm6677_vm0, %v11024_v45  ;;  %vm3907_vm0 = vcmp.eq.s32.totalorder %v11133_v34, %v9821_v18 }
 0x3cd   : > { %6742 = vmatpush1.bf16.xpose.msk.msra.mxu1 %vm6741_vm2, %v11024_v45  ;;  %6680 = vmatprep.subr.msk.bf16.mxu0 %vm6679_vm1, %v11024_v45  ;;  %vm6683_vm2 = vmpackc.low %vm3845_vm12, %vm3843_vm7  ;;  %vm3849_vm7 = vcmp.eq.s32.totalorder %v11136_v23, %v9821_v18 }
 0x3ce   : > { %6744 = vmatprep.subr.msk.bf16.mxu1 %vm6743_vm10, %v11024_v45  ;;  %vm6747_vm1 = vmpackc.low %vm3909_vm15, %vm3907_vm0  ;;  %vm3842_vm10 = vcmp.eq.s32.totalorder %v11131_v42, %v9844_v11  ;;  %vm3913_vm0 = vcmp.eq.s32.totalorder %v11138_v52, %v9821_v18 }
 0x3cf   : > { %vm6685_vm12 = vmpackc.low %vm3844_vm4, %vm3842_vm10  ;;  %vm3848_vm10 = vcmp.eq.s32.totalorder %v11136_v23, %v9844_v11  ;;  %vm3910_vm4 = vcmp.eq.s32.totalorder %v11137_v51, %v9844_v11  ;;  %v11142_v23 = vld [vmem:[#allocation71_spill] sm:$0xff] }
 0x3d0   : > { %vm6749_vm15 = vmpackc.low %vm3908_vm13, %vm3906_vm5  ;;  %vm3912_vm5 = vcmp.eq.s32.totalorder %v11138_v52, %v9844_v11  ;;  %vm3851_vm13 = vcmp.eq.s32.totalorder %v11139_v27, %v9821_v18  ;;  %v11143_v52 = vld [vmem:[#allocation41_spill] sm:$0xff] }
 0x3d4   : > { %6682 = vmatpush1.bf16.xpose.msk.msra.mxu0 %vm6681_vm14, %v11024_v45  ;;  %vm3911_vm14 = vcmp.eq.s32.totalorder %v11137_v51, %v9821_v18  ;;  %v11144_v51 = vld [vmem:[#allocation42_spill] sm:$0xff] }
 0x3d5   : > { %6746 = vmatpush1.bf16.xpose.msk.msra.mxu1 %vm6745_vm11, %v11024_v45  ;;  %6684 = vmatprep.subr.msk.bf16.mxu0 %vm6683_vm2, %v11024_v45  ;;  %vm6687_vm11 = vmpackc.low %vm3849_vm7, %vm3847_vm3  ;;  %vm3853_vm3 = vcmp.eq.s32.totalorder %v11140_v41, %v9821_v18 }
 0x3d6   : > { %6748 = vmatprep.subr.msk.bf16.mxu1 %vm6747_vm1, %v11024_v45  ;;  %vm6751_vm2 = vmpackc.low %vm3913_vm0, %vm3911_vm14  ;;  %vm3846_vm1 = vcmp.eq.s32.totalorder %v11135_v44, %v9844_v11  ;;  %v11141_v44 = vld [vmem:[#allocation70_spill] sm:$0xff]  ;;  %vm3917_vm14 = vcmp.eq.s32.totalorder %v11142_v23, %v9821_v18 }
 0x3d7   : > { %vm6689_vm7 = vmpackc.low %vm3848_vm10, %vm3846_vm1  ;;  %vm3852_vm1 = vcmp.eq.s32.totalorder %v11140_v41, %v9844_v11  ;;  %vm3914_vm10 = vcmp.eq.s32.totalorder %v11141_v44, %v9844_v11  ;;  %v11146_v41 = vld [vmem:[#allocation73_spill] sm:$0xff] }
 0x3d8   : > { %vm6753_vm0 = vmpackc.low %vm3912_vm5, %vm3910_vm4  ;;  %vm3916_vm4 = vcmp.eq.s32.totalorder %v11142_v23, %v9844_v11  ;;  %vm3855_vm5 = vcmp.eq.s32.totalorder %v11143_v52, %v9821_v18  ;;  %v11147_v23 = vld [vmem:[#allocation45_spill] sm:$0xff] }
 0x3dc   : > { %6686 = vmatpush1.bf16.xpose.msk.msra.mxu0 %vm6685_vm12, %v11024_v45  ;;  %vm3915_vm12 = vcmp.eq.s32.totalorder %v11141_v44, %v9821_v18  ;;  %v11148_v44 = vld [vmem:[#allocation46_spill] sm:$0xff] }
 0x3dd   : > { %6750 = vmatpush1.bf16.xpose.msk.msra.mxu1 %vm6749_vm15, %v11024_v45  ;;  %6688 = vmatprep.subr.msk.bf16.mxu0 %vm6687_vm11, %v11024_v45  ;;  %vm6691_vm15 = vmpackc.low %vm3853_vm3, %vm3851_vm13  ;;  %vm3857_vm13 = vcmp.eq.s32.totalorder %v11144_v51, %v9821_v18 }
 0x3de   : > { %6752 = vmatprep.subr.msk.bf16.mxu1 %vm6751_vm2, %v11024_v45  ;;  %vm6755_vm11 = vmpackc.low %vm3917_vm14, %vm3915_vm12  ;;  %vm3850_vm2 = vcmp.eq.s32.totalorder %v11139_v27, %v9844_v11  ;;  %v11145_v27 = vld [vmem:[#allocation72_spill] sm:$0xff]  ;;  %vm3921_vm12 = vcmp.eq.s32.totalorder %v11146_v41, %v9821_v18 }
 0x3df   : > { %vm6693_vm3 = vmpackc.low %vm3852_vm1, %vm3850_vm2  ;;  %vm3856_vm2 = vcmp.eq.s32.totalorder %v11144_v51, %v9844_v11  ;;  %vm3918_vm1 = vcmp.eq.s32.totalorder %v11145_v27, %v9844_v11  ;;  %v11150_v51 = vld [vmem:[#allocation75_spill] sm:$0xff] }
 0x3e0   : > { %vm6757_vm14 = vmpackc.low %vm3916_vm4, %vm3914_vm10  ;;  %vm3920_vm10 = vcmp.eq.s32.totalorder %v11146_v41, %v9844_v11  ;;  %vm3859_vm4 = vcmp.eq.s32.totalorder %v11147_v23, %v9821_v18  ;;  %v2644_v41 = vstv %s2643_s20 }
 0x3e4   : > { %6690 = vmatpush1.bf16.xpose.msk.msra.mxu0 %vm6689_vm7, %v11024_v45  ;;  %vm3919_vm7 = vcmp.eq.s32.totalorder %v11145_v27, %v9821_v18  ;;  %v11151_v27 = vld [vmem:[#allocation48_spill] sm:$0xff] }
 0x3e5   : > { %6754 = vmatpush1.bf16.xpose.msk.msra.mxu1 %vm6753_vm0, %v11024_v45  ;;  %6692 = vmatprep.subr.msk.bf16.mxu0 %vm6691_vm15, %v11024_v45  ;;  %vm6695_vm0 = vmpackc.low %vm3857_vm13, %vm3855_vm5  ;;  %vm3861_vm5 = vcmp.eq.s32.totalorder %v11148_v44, %v9821_v18 }
 0x3e6   : > { %6756 = vmatprep.subr.msk.bf16.mxu1 %vm6755_vm11, %v11024_v45  ;;  %vm6759_vm15 = vmpackc.low %vm3921_vm12, %vm3919_vm7  ;;  %vm3854_vm11 = vcmp.eq.s32.totalorder %v11143_v52, %v9844_v11  ;;  %v11149_v52 = vld [vmem:[#allocation74_spill] sm:$0xff]  ;;  %vm3925_vm7 = vcmp.eq.s32.totalorder %v11150_v51, %v9821_v18 }
 0x3e7   : > { %vm6697_vm13 = vmpackc.low %vm3856_vm2, %vm3854_vm11  ;;  %vm3860_vm11 = vcmp.eq.s32.totalorder %v11148_v44, %v9844_v11  ;;  %vm3922_vm2 = vcmp.eq.s32.totalorder %v11149_v52, %v9844_v11  ;;  %v2646_v44 = vstv %s2642_s21 }
 0x3e8   : > { %vm6761_vm12 = vmpackc.low %vm3920_vm10, %vm3918_vm1  ;;  %vm3924_vm1 = vcmp.eq.s32.totalorder %v11150_v51, %v9844_v11  ;;  %vm3863_vm10 = vcmp.eq.s32.totalorder %v11059_v12, %v9821_v18 }
 0x3ec   : > { %6694 = vmatpush1.bf16.xpose.msk.msra.mxu0 %vm6693_vm3, %v11024_v45  ;;  %vm3923_vm3 = vcmp.eq.s32.totalorder %v11149_v52, %v9821_v18  ;;  %v2645_v52 = vsel %vm319_vm6, %v2644_v41, 0.0 }
 0x3ed   : > { %6758 = vmatpush1.bf16.xpose.msk.msra.mxu1 %vm6757_vm14, %v11024_v45  ;;  %6696 = vmatprep.subr.msk.bf16.mxu0 %vm6695_vm0, %v11024_v45  ;;  %vm6699_vm14 = vmpackc.low %vm3861_vm5, %vm3859_vm4  ;;  %vm3865_vm4 = vcmp.eq.s32.totalorder %v11151_v27, %v9821_v18 }
 0x3ee   : > { %6760 = vmatprep.subr.msk.bf16.mxu1 %vm6759_vm15, %v11024_v45  ;;  %vm6763_vm0 = vmpackc.low %vm3925_vm7, %vm3923_vm3  ;;  %vm3858_vm15 = vcmp.eq.s32.totalorder %v11147_v23, %v9844_v11  ;;  %vm3929_vm3 = vcmp.eq.s32.totalorder %v11062_v16, %v9821_v18 }
 0x3ef   : > { %vm6701_vm5 = vmpackc.low %vm3860_vm11, %vm3858_vm15  ;;  %vm3862_vm15 = vcmp.eq.s32.totalorder %v11059_v12, %v9844_v11  ;;  %vm3864_vm11 = vcmp.eq.s32.totalorder %v11151_v27, %v9844_v11 }
 0x3f0   : > { %vm6765_vm7 = vmpackc.low %vm3924_vm1, %vm3922_vm2  ;;  %vm3926_vm2 = vcmp.eq.s32.totalorder %v11061_v15, %v9844_v11  ;;  %vm3928_vm1 = vcmp.eq.s32.totalorder %v11062_v16, %v9844_v11 }
 0x3f4   : > { %6698 = vmatpush1.bf16.xpose.msk.msra.mxu0 %vm6697_vm13, %v11024_v45  ;;  %vm3927_vm13 = vcmp.eq.s32.totalorder %v11061_v15, %v9821_v18 }
 0x3f5   : > { %6762 = vmatpush1.bf16.xpose.msk.msra.mxu1 %vm6761_vm12, %v11024_v45  ;;  %6700 = vmatprep.subr.msk.bf16.mxu0 %vm6699_vm14, %v11024_v45  ;;  %vm6703_vm12 = vmpackc.low %vm3865_vm4, %vm3863_vm10  ;;  %vm3867_vm10 = vcmp.eq.s32.totalorder %v11040_v47, %v9821_v18  ;;  %vm3869_vm4 = vcmp.eq.s32.totalorder %v11041_v55, %v9821_v18 }
 0x3f6   : > { %6764 = vmatprep.subr.msk.bf16.mxu1 %vm6763_vm0, %v11024_v45  ;;  %vm6767_vm14 = vmpackc.low %vm3929_vm3, %vm3927_vm13  ;;  %vm11152_vm0 = vcmp.eq.s32.totalorder %v10946_v2, 1  ;;  %vm3933_vm13 = vcmp.eq.s32.totalorder %v11043_v40, %v9821_v18 }
 0x3f7   : > { %v2647_v51 = vsel %vm11152_vm0, %v2646_v44, %v2645_v52  ;;  %vm10107_vm3 = vmpackc.low %vm3864_vm11, %vm3862_vm15  ;;  %vm3866_vm0 = vcmp.eq.s32.totalorder %v11040_v47, %v9844_v11  ;;  %vm3868_vm15 = vcmp.eq.s32.totalorder %v11041_v55, %v9844_v11  ;;  %vm3930_vm11 = vcmp.eq.s32.totalorder %v11042_v14, %v9844_v11 }
 0x3fc   : > { %6702 = vmatpush1.bf16.xpose.msk.msra.mxu0 %vm6701_vm5, %v11024_v45  ;;  %vm3931_vm5 = vcmp.eq.s32.totalorder %v11042_v14, %v9821_v18 }
 0x3fd   : > { %6766 = vmatpush1.bf16.xpose.msk.msra.mxu1 %vm6765_vm7, %v11024_v45  ;;  %6704 = vmatprep.subr.msk.bf16.mxu0 %vm6703_vm12, %v11024_v45  ;;  %vm6769_vm7 = vmpackc.low %vm3928_vm1, %vm3926_vm2  ;;  %vm3932_vm2 = vcmp.eq.s32.totalorder %v11043_v40, %v9844_v11  ;;  %vm3871_vm1 = vcmp.eq.s32.totalorder %v11027_v25, %v9821_v18 }
 0x3fe   : > { %v3138_v23 = vpop.f32.mrb[16].mxu0  ;;  %6768 = vmatprep.subr.msk.bf16.mxu1 %vm6767_vm14, %v11024_v45  ;;  %vm6707_vm12 = vmpackc.low %vm3869_vm4, %vm3867_vm10  ;;  %vm3873_vm10 = vcmp.eq.s32.totalorder %v11044_v49, %v9821_v18 }
 0x3ff   : > { %v3190_v41 = vadd.f32 %v3138_v23, %v9743_v28  ;;  %v3197_v44 = vrot.slane %v3138_v23, %v11055_v19  ;;  %v3179_v52 = vpop.f32.mrb[16].mxu1  ;;  %v3140_v34 = vpop.f32.mrb[17].mxu0  ;;  %vm6771_vm14 = vmpackc.low %vm3933_vm13, %vm3931_vm5  ;;  %vm3935_vm5 = vcmp.eq.s32.totalorder %v11029_v26, %v9821_v18  ;;  %vm3937_vm13 = vcmp.eq.s32.totalorder %v11030_v29, %v9821_v18  ;;  %v11167_v23 = vld [vmem:[#allocation69_spill] sm:$0xff] }
 0x400   : > { %v3192_v13 = vadd.f32 %v3179_v52, %v9751_v10  ;;  %v3205_v42 = vrot.slane %v3179_v52, %v11055_v19  ;;  %v3191_v43 = vadd.f32 %v3140_v34, %v9753_v17  ;;  %v3201_v1 = vrot.slane %v3140_v34, %v11055_v19  ;;  %v3181_v36 = vpop.f32.mrb[17].mxu1  ;;  %v3142_v28 = vpop.f32.mrb[18].mxu0  ;;  %vm6709_vm4 = vmpackc.low %vm3868_vm15, %vm3866_vm0 }
 0x401   : > { %v3210_v21 = vmul.f32 %v3197_v44, %v2647_v51  ;;  %v3193_v10 = vadd.f32 %v3181_v36, %v9758_v33  ;;  %v3209_v52 = vrot.slane %v3181_v36, %v11055_v19  ;;  %v3183_v17 = vpop.f32.mrb[18].mxu1  ;;  %v3143_v32 = vpop.f32.mrb[19].mxu0  ;;  %vm3872_vm0 = vcmp.eq.s32.totalorder %v11044_v49, %v9844_v11  ;;  %v11166_v44 = vld [vmem:[#allocation68_spill] sm:$0xff] }
 0x402   : > { %v3212_v34 = vmul.f32 %v3205_v42, %v2647_v51  ;;  %v3211_v28 = vmul.f32 %v3201_v1, %v2647_v51  ;;  %v3184_v27 = vpop.f32.mrb[19].mxu1  ;;  %vm3934_vm15 = vcmp.eq.s32.totalorder %v11029_v26, %v9844_v11  ;;  %v11170_v17 = vld [vmem:[#allocation70_spill] sm:$0xff] }
 0x403   : > { %v10125_v33 = vadd.f32 %v3210_v21, %v3190_v41  ;;  %v3213_v32 = vmul.f32 %v3209_v52, %v2647_v51  ;;  %v4393_v21 = vsub.s32 7, %v10946_v2  ;;  %v11163_v51 = vld [vmem:[#allocation67_spill] sm:$0xff]  ;;  %v11165_v41 = vld [vmem:[#allocation36_spill] sm:$0xff] }
 0x404   : > { %v10133_v36 = vadd.f32 %v3212_v34, %v3192_v13  ;;  %v10135_v1 = vadd.f32 %v3211_v28, %v3191_v43  ;;  %6706 = vmatpush1.bf16.xpose.msk.msra.mxu0 %vm10107_vm3, %v11024_v45  ;;  %vm6773_vm3 = vmpackc.low %vm3932_vm2, %vm3930_vm11  ;;  %vm3936_vm11 = vcmp.eq.s32.totalorder %v11030_v29, %v9844_v11  ;;  %vm3875_vm2 = vcmp.eq.s32.totalorder %v11031_v39, %v9821_v18  ;;  %v11162_v13 = vld [vmem:[#allocation66_spill] sm:$0xff]  ;;  %v11164_v27 = vld [vmem:[#allocation35_spill] sm:$0xff] }
 0x405   : > { %v10140_v42 = vadd.f32 %v3213_v32, %v3193_v10  ;;  %6770 = vmatpush1.bf16.xpose.msk.msra.mxu1 %vm6769_vm7, %v11024_v45  ;;  %6708 = vmatprep.subr.msk.bf16.mxu0 %vm6707_vm12, %v11024_v45  ;;  %vm6711_vm7 = vmpackc.low %vm3873_vm10, %vm3871_vm1  ;;  %vm3877_vm1 = vcmp.eq.s32.totalorder %v11045_v50, %v9821_v18  ;;  %v10203_v43 = vrot.slane %v7644_v31, %v4393_v21  ;;  %v11168_v10 = vld [vmem:[#allocation39_spill] sm:$0xff]  ;;  %v11169_v52 = vld [vmem:[#allocation40_spill] sm:$0xff] }
 0x406   : > { %6772 = vmatprep.subr.msk.bf16.mxu1 %vm6771_vm14, %v11024_v45  ;;  %vm6775_vm12 = vmpackc.low %vm3937_vm13, %vm3935_vm5  ;;  %vm3870_vm14 = vcmp.eq.s32.totalorder %v11027_v25, %v9844_v11  ;;  %vm3941_vm5 = vcmp.eq.s32.totalorder %v11033_v24, %v9821_v18  ;;  %v10226_v31 = vrot.slane %v7650_v37, %v4393_v21  ;;  %v11155_v37 = vld [vmem:[#allocation63_spill] sm:$0xff]  ;;  %v11172_v28 = vld [vmem:[#allocation41_spill] sm:$0xff] }
 0x407   : > { %vm6713_vm10 = vmpackc.low %vm3872_vm0, %vm3870_vm14  ;;  %vm3876_vm14 = vcmp.eq.s32.totalorder %v11045_v50, %v9844_v11  ;;  %vm3938_vm0 = vcmp.eq.s32.totalorder %v11065_v22, %v9844_v11  ;;  %v11171_v34 = vld [vmem:[#allocation71_spill] sm:$0xff]  ;;  %v11173_v32 = vld [vmem:[#allocation42_spill] sm:$0xff] }
 0x408   : > { %vm6777_vm13 = vmpackc.low %vm3936_vm11, %vm3934_vm15  ;;  %vm3940_vm15 = vcmp.eq.s32.totalorder %v11033_v24, %v9844_v11  ;;  %vm3879_vm11 = vcmp.eq.s32.totalorder %v11020_v53, %v9821_v18  ;;  %v11174_v21 = vld [vmem:[#allocation72_spill] sm:$0xff] }
 0x40c   : > { %6710 = vmatpush1.bf16.xpose.msk.msra.mxu0 %vm6709_vm4, %v11024_v45  ;;  %vm3939_vm4 = vcmp.eq.s32.totalorder %v11065_v22, %v9821_v18 }
 0x40d   : > { %6774 = vmatpush1.bf16.xpose.msk.msra.mxu1 %vm6773_vm3, %v11024_v45  ;;  %6712 = vmatprep.subr.msk.bf16.mxu0 %vm6711_vm7, %v11024_v45  ;;  %vm6715_vm3 = vmpackc.low %vm3877_vm1, %vm3875_vm2  ;;  %vm3881_vm2 = vcmp.eq.s32.totalorder %v11021_v46, %v9821_v18 }
 0x40e   : > { %6776 = vmatprep.subr.msk.bf16.mxu1 %vm6775_vm12, %v11024_v45  ;;  %vm6779_vm7 = vmpackc.low %vm3941_vm5, %vm3939_vm4  ;;  %vm3874_vm12 = vcmp.eq.s32.totalorder %v11031_v39, %v9844_v11  ;;  %vm3945_vm4 = vcmp.eq.s32.totalorder %v11023_v54, %v9821_v18 }
 0x40f   : > { %vm6717_vm1 = vmpackc.low %vm3876_vm14, %vm3874_vm12  ;;  %vm3880_vm12 = vcmp.eq.s32.totalorder %v11021_v46, %v9844_v11  ;;  %vm3942_vm14 = vcmp.eq.s32.totalorder %v11022_v58, %v9844_v11 }
 0x410   : > { %vm6781_vm5 = vmpackc.low %vm3940_vm15, %vm3938_vm0  ;;  %vm3944_vm0 = vcmp.eq.s32.totalorder %v11023_v54, %v9844_v11  ;;  %vm4400_vm15 = vcmp.eq.s32.totalorder %v10946_v2, %v10203_v43 }
 0x414   : > { %6714 = vmatpush1.bf16.xpose.msk.msra.mxu0 %vm6713_vm10, %v11024_v45  ;;  %vm3943_vm10 = vcmp.eq.s32.totalorder %v11022_v58, %v9821_v18  ;;  %v11157_v18 = vld [vmem:[#allocation30_spill] sm:$0xff] }
 0x415   : > { %6778 = vmatpush1.bf16.xpose.msk.msra.mxu1 %vm6777_vm13, %v11024_v45  ;;  %6716 = vmatprep.subr.msk.bf16.mxu0 %vm6715_vm3, %v11024_v45  ;;  %vm6719_vm13 = vmpackc.low %vm3881_vm2, %vm3879_vm11  ;;  %vm4402_vm11 = vcmp.eq.s32.totalorder %v10953_v3, %v10203_v43 }
 0x416   : > { %6780 = vmatprep.subr.msk.bf16.mxu1 %vm6779_vm7, %v11024_v45  ;;  %vm6783_vm3 = vmpackc.low %vm3945_vm4, %vm3943_vm10  ;;  %vm3878_vm7 = vcmp.eq.s32.totalorder %v11020_v53, %v9844_v11  ;;  %vm4466_vm10 = vcmp.eq.s32.totalorder %v7470_v57, %v10203_v43  ;;  %v11161_v11 = vld [vmem:[#allocation34_spill] sm:$0xff] }
 0x417   : > { %vm6721_vm2 = vmpackc.low %vm3880_vm12, %vm3878_vm7  ;;  %vm4401_vm7 = vcmp.eq.s32.totalorder %v10953_v3, %v10226_v31  ;;  %vm4463_vm12 = vcmp.eq.s32.totalorder %v7467_v56, %v10226_v31  ;;  %v11180_v3 = vld [vmem:[#allocation48_spill] sm:$0xff] }
 0x418   : > { %vm6785_vm4 = vmpackc.low %vm3944_vm0, %vm3942_vm14  ;;  %vm4465_vm14 = vcmp.eq.s32.totalorder %v7470_v57, %v10226_v31  ;;  %vm4404_vm0 = vcmp.eq.s32.totalorder %v10952_v4, %v10203_v43 }
 0x41c   : > { %6718 = vmatpush1.bf16.xpose.msk.msra.mxu0 %vm6717_vm1, %v11024_v45  ;;  %vm4464_vm1 = vcmp.eq.s32.totalorder %v7467_v56, %v10203_v43 }
 0x41d   : > { %6782 = vmatpush1.bf16.xpose.msk.msra.mxu1 %vm6781_vm5, %v11024_v45  ;;  %6720 = vmatprep.subr.msk.bf16.mxu0 %vm6719_vm13, %v11024_v45  ;;  %vm6915_vm5 = vmpackc.low %vm4402_vm11, %vm4400_vm15  ;;  %vm4406_vm15 = vcmp.eq.s32.totalorder %v10951_v5, %v10203_v43 }
 0x41e   : > { %6784 = vmatprep.subr.msk.bf16.mxu1 %vm6783_vm3, %v11024_v45  ;;  %vm6979_vm13 = vmpackc.low %vm4466_vm10, %vm4464_vm1  ;;  %vm4399_vm3 = vcmp.eq.s32.totalorder %v10946_v2, %v10226_v31  ;;  %vm4470_vm1 = vcmp.eq.s32.totalorder %v7480_v60, %v10203_v43 }
 0x41f   : > { %vm6917_vm11 = vmpackc.low %vm4401_vm7, %vm4399_vm3  ;;  %vm4405_vm3 = vcmp.eq.s32.totalorder %v10951_v5, %v10226_v31  ;;  %vm4467_vm7 = vcmp.eq.s32.totalorder %v7477_v59, %v10226_v31  ;;  %v3227_v5 = vstv %s3223_s24 }
 0x420   : > { %vm6981_vm10 = vmpackc.low %vm4465_vm14, %vm4463_vm12  ;;  %vm4469_vm12 = vcmp.eq.s32.totalorder %v7480_v60, %v10226_v31  ;;  %vm4408_vm14 = vcmp.eq.s32.totalorder %v10950_v6, %v10203_v43 }
 0x424   : > { %6722 = vmatpush1.bf16.xpose.msk.msra.mxu0 %vm6721_vm2, %v11024_v45  ;;  %vm4468_vm2 = vcmp.eq.s32.totalorder %v7477_v59, %v10203_v43 }
 0x425   : > { %6786 = vmatpush1.bf16.xpose.msk.msra.mxu1 %vm6785_vm4, %v11024_v45  ;;  %6916 = vmatprep.subr.msk.bf16.mxu0 %vm6915_vm5, %v11024_v45  ;;  %vm6919_vm4 = vmpackc.low %vm4406_vm15, %vm4404_vm0  ;;  %vm4410_vm0 = vcmp.eq.s32.totalorder %v10949_v7, %v10203_v43 }
 0x426   : > { %6980 = vmatprep.subr.msk.bf16.mxu1 %vm6979_vm13, %v11024_v45  ;;  %vm6983_vm5 = vmpackc.low %vm4470_vm1, %vm4468_vm2  ;;  %vm4403_vm13 = vcmp.eq.s32.totalorder %v10952_v4, %v10226_v31  ;;  %vm4474_vm2 = vcmp.eq.s32.totalorder %v7486_v62, %v10203_v43 }
 0x427   : > { %vm6921_vm15 = vmpackc.low %vm4405_vm3, %vm4403_vm13  ;;  %vm4409_vm13 = vcmp.eq.s32.totalorder %v10949_v7, %v10226_v31  ;;  %vm4471_vm3 = vcmp.eq.s32.totalorder %v7483_v61, %v10226_v31 }
 0x428   : > { %vm6985_vm1 = vmpackc.low %vm4469_vm12, %vm4467_vm7  ;;  %vm4473_vm7 = vcmp.eq.s32.totalorder %v7486_v62, %v10226_v31  ;;  %vm4412_vm12 = vcmp.eq.s32.totalorder %v10948_v8, %v10203_v43 }
 0x42b   : > { %4299 = vmatmul.mubr.bf16.vlgmr.msra.gmra.mrb[24].mxu0 %v11025_v35 }
 0x42c   : > { %4340 = vmatmul.mubr.bf16.vlgmr.msra.gmra.mrb[24].mxu1 %v11025_v35  ;;  %6918 = vmatpush1.bf16.xpose.msk.msra.mxu0 %vm6917_vm11, %v11024_v45  ;;  %vm4472_vm11 = vcmp.eq.s32.totalorder %v7483_v61, %v10203_v43 }
 0x42d   : > { %6982 = vmatpush1.bf16.xpose.msk.msra.mxu1 %vm6981_vm10, %v11024_v45  ;;  %6920 = vmatprep.subr.msk.bf16.mxu0 %vm6919_vm4, %v11024_v45  ;;  %vm6923_vm10 = vmpackc.low %vm4410_vm0, %vm4408_vm14  ;;  %vm4414_vm14 = vcmp.eq.s32.totalorder %v10947_v9, %v10203_v43 }
 0x42e   : > { %6984 = vmatprep.subr.msk.bf16.mxu1 %vm6983_vm5, %v11024_v45  ;;  %4879 = vmatprep.mubr.bf16.mxu0 %v11026_v38  ;;  %vm6987_vm4 = vmpackc.low %vm4474_vm2, %vm4472_vm11  ;;  %vm4407_vm5 = vcmp.eq.s32.totalorder %v10950_v6, %v10226_v31  ;;  %vm4478_vm11 = vcmp.eq.s32.totalorder %v10954_v0, %v10203_v43 }
 0x42f   : > { %4920 = vmatprep.mubr.bf16.mxu1 %v11026_v38  ;;  %vm6925_vm0 = vmpackc.low %vm4409_vm13, %vm4407_vm5  ;;  %vm4413_vm5 = vcmp.eq.s32.totalorder %v10947_v9, %v10226_v31  ;;  %vm4475_vm13 = vcmp.eq.s32.totalorder %v7493_v63, %v10226_v31  ;;  %v11156_v38 = vld [vmem:[#allocation29_spill] sm:$0xff] }
 0x430   : > { %vm6989_vm2 = vmpackc.low %vm4473_vm7, %vm4471_vm3  ;;  %vm4477_vm3 = vcmp.eq.s32.totalorder %v10954_v0, %v10226_v31  ;;  %vm4416_vm7 = vcmp.eq.s32.totalorder %v11067_v30, %v10203_v43  ;;  %v3225_v0 = vstv %s3224_s23 }
 0x431   : > { %v3226_v4 = vsel %vm319_vm6, %v3225_v0, 0.0 }
 0x434   : > { %6922 = vmatpush1.bf16.xpose.msk.msra.mxu0 %vm6921_vm15, %v11024_v45  ;;  %vm4476_vm15 = vcmp.eq.s32.totalorder %v7493_v63, %v10203_v43 }
 0x435   : > { %6986 = vmatpush1.bf16.xpose.msk.msra.mxu1 %vm6985_vm1, %v11024_v45  ;;  %6924 = vmatprep.subr.msk.bf16.mxu0 %vm6923_vm10, %v11024_v45  ;;  %vm6927_vm1 = vmpackc.low %vm4414_vm14, %vm4412_vm12  ;;  %vm4418_vm12 = vcmp.eq.s32.totalorder %v11068_v48, %v10203_v43 }
 0x436   : > { %6988 = vmatprep.subr.msk.bf16.mxu1 %vm6987_vm4, %v11024_v45  ;;  %vm6991_vm10 = vmpackc.low %vm4478_vm11, %vm4476_vm15  ;;  %vm4411_vm4 = vcmp.eq.s32.totalorder %v10948_v8, %v10226_v31  ;;  %vm4482_vm15 = vcmp.eq.s32.totalorder %v11155_v37, %v10203_v43 }
 0x437   : > { %vm6929_vm14 = vmpackc.low %vm4413_vm5, %vm4411_vm4  ;;  %vm4417_vm4 = vcmp.eq.s32.totalorder %v11068_v48, %v10226_v31  ;;  %vm4479_vm5 = vcmp.eq.s32.totalorder %v11069_v20, %v10226_v31  ;;  %v11159_v48 = vld [vmem:[#allocation65_spill] sm:$0xff] }
 0x438   : > { %vm6993_vm11 = vmpackc.low %vm4477_vm3, %vm4475_vm13  ;;  %vm4481_vm13 = vcmp.eq.s32.totalorder %v11155_v37, %v10226_v31  ;;  %vm4420_vm3 = vcmp.eq.s32.totalorder %v11156_v38, %v10203_v43  ;;  %v11175_v37 = vld [vmem:[#allocation73_spill] sm:$0xff] }
 0x43c   : > { %6926 = vmatpush1.bf16.xpose.msk.msra.mxu0 %vm6925_vm0, %v11024_v45  ;;  %vm4480_vm0 = vcmp.eq.s32.totalorder %v11069_v20, %v10203_v43  ;;  %v11160_v20 = vld [vmem:[#allocation31_spill] sm:$0xff] }
 0x43d   : > { %6990 = vmatpush1.bf16.xpose.msk.msra.mxu1 %vm6989_vm2, %v11024_v45  ;;  %6928 = vmatprep.subr.msk.bf16.mxu0 %vm6927_vm1, %v11024_v45  ;;  %vm6931_vm2 = vmpackc.low %vm4418_vm12, %vm4416_vm7  ;;  %vm4422_vm7 = vcmp.eq.s32.totalorder %v11157_v18, %v10203_v43 }
 0x43e   : > { %6992 = vmatprep.subr.msk.bf16.mxu1 %vm6991_vm10, %v11024_v45  ;;  %vm6995_vm1 = vmpackc.low %vm4482_vm15, %vm4480_vm0  ;;  %vm4415_vm10 = vcmp.eq.s32.totalorder %v11067_v30, %v10226_v31  ;;  %v11158_v30 = vld [vmem:[#allocation64_spill] sm:$0xff]  ;;  %vm4486_vm0 = vcmp.eq.s32.totalorder %v11159_v48, %v10203_v43 }
 0x43f   : > { %vm6933_vm12 = vmpackc.low %vm4417_vm4, %vm4415_vm10  ;;  %vm4421_vm10 = vcmp.eq.s32.totalorder %v11157_v18, %v10226_v31  ;;  %vm4483_vm4 = vcmp.eq.s32.totalorder %v11158_v30, %v10226_v31  ;;  %v11177_v18 = vld [vmem:[#allocation46_spill] sm:$0xff] }
 0x440   : > { %vm6997_vm15 = vmpackc.low %vm4481_vm13, %vm4479_vm5  ;;  %vm4485_vm5 = vcmp.eq.s32.totalorder %v11159_v48, %v10226_v31  ;;  %vm4424_vm13 = vcmp.eq.s32.totalorder %v11160_v20, %v10203_v43  ;;  %v11179_v48 = vld [vmem:[#allocation75_spill] sm:$0xff] }
 0x444   : > { %6930 = vmatpush1.bf16.xpose.msk.msra.mxu0 %vm6929_vm14, %v11024_v45  ;;  %vm4484_vm14 = vcmp.eq.s32.totalorder %v11158_v30, %v10203_v43  ;;  %v11178_v30 = vld [vmem:[#allocation74_spill] sm:$0xff] }
 0x445   : > { %6994 = vmatpush1.bf16.xpose.msk.msra.mxu1 %vm6993_vm11, %v11024_v45  ;;  %6932 = vmatprep.subr.msk.bf16.mxu0 %vm6931_vm2, %v11024_v45  ;;  %vm6935_vm11 = vmpackc.low %vm4422_vm7, %vm4420_vm3  ;;  %vm4426_vm3 = vcmp.eq.s32.totalorder %v11161_v11, %v10203_v43 }
 0x446   : > { %6996 = vmatprep.subr.msk.bf16.mxu1 %vm6995_vm1, %v11024_v45  ;;  %vm6999_vm2 = vmpackc.low %vm4486_vm0, %vm4484_vm14  ;;  %vm4419_vm1 = vcmp.eq.s32.totalorder %v11156_v38, %v10226_v31  ;;  %vm4490_vm14 = vcmp.eq.s32.totalorder %v11163_v51, %v10203_v43  ;;  %v11176_v38 = vld [vmem:[#allocation45_spill] sm:$0xff] }
 0x447   : > { %vm6937_vm7 = vmpackc.low %vm4421_vm10, %vm4419_vm1  ;;  %vm4425_vm1 = vcmp.eq.s32.totalorder %v11161_v11, %v10226_v31  ;;  %vm4487_vm10 = vcmp.eq.s32.totalorder %v11162_v13, %v10226_v31 }
 0x448   : > { %vm7001_vm0 = vmpackc.low %vm4485_vm5, %vm4483_vm4  ;;  %vm4489_vm4 = vcmp.eq.s32.totalorder %v11163_v51, %v10226_v31  ;;  %vm4428_vm5 = vcmp.eq.s32.totalorder %v11164_v27, %v10203_v43 }
 0x44c   : > { %6934 = vmatpush1.bf16.xpose.msk.msra.mxu0 %vm6933_vm12, %v11024_v45  ;;  %vm4488_vm12 = vcmp.eq.s32.totalorder %v11162_v13, %v10203_v43 }
 0x44d   : > { %6998 = vmatpush1.bf16.xpose.msk.msra.mxu1 %vm6997_vm15, %v11024_v45  ;;  %6936 = vmatprep.subr.msk.bf16.mxu0 %vm6935_vm11, %v11024_v45  ;;  %vm6939_vm15 = vmpackc.low %vm4426_vm3, %vm4424_vm13  ;;  %vm4430_vm13 = vcmp.eq.s32.totalorder %v11165_v41, %v10203_v43 }
 0x44e   : > { %7000 = vmatprep.subr.msk.bf16.mxu1 %vm6999_vm2, %v11024_v45  ;;  %vm7003_vm11 = vmpackc.low %vm4490_vm14, %vm4488_vm12  ;;  %vm4423_vm2 = vcmp.eq.s32.totalorder %v11160_v20, %v10226_v31  ;;  %vm4494_vm12 = vcmp.eq.s32.totalorder %v11167_v23, %v10203_v43 }
 0x44f   : > { %vm6941_vm3 = vmpackc.low %vm4425_vm1, %vm4423_vm2  ;;  %vm4429_vm2 = vcmp.eq.s32.totalorder %v11165_v41, %v10226_v31  ;;  %vm4491_vm1 = vcmp.eq.s32.totalorder %v11166_v44, %v10226_v31 }
 0x450   : > { %vm7005_vm14 = vmpackc.low %vm4489_vm4, %vm4487_vm10  ;;  %vm4493_vm10 = vcmp.eq.s32.totalorder %v11167_v23, %v10226_v31  ;;  %vm4432_vm4 = vcmp.eq.s32.totalorder %v11168_v10, %v10203_v43 }
 0x454   : > { %6938 = vmatpush1.bf16.xpose.msk.msra.mxu0 %vm6937_vm7, %v11024_v45  ;;  %vm4492_vm7 = vcmp.eq.s32.totalorder %v11166_v44, %v10203_v43 }
 0x455   : > { %7002 = vmatpush1.bf16.xpose.msk.msra.mxu1 %vm7001_vm0, %v11024_v45  ;;  %6940 = vmatprep.subr.msk.bf16.mxu0 %vm6939_vm15, %v11024_v45  ;;  %vm6943_vm0 = vmpackc.low %vm4430_vm13, %vm4428_vm5  ;;  %vm4434_vm5 = vcmp.eq.s32.totalorder %v11169_v52, %v10203_v43 }
 0x456   : > { %7004 = vmatprep.subr.msk.bf16.mxu1 %vm7003_vm11, %v11024_v45  ;;  %vm7007_vm15 = vmpackc.low %vm4494_vm12, %vm4492_vm7  ;;  %vm4427_vm11 = vcmp.eq.s32.totalorder %v11164_v27, %v10226_v31  ;;  %vm4498_vm7 = vcmp.eq.s32.totalorder %v11171_v34, %v10203_v43 }
 0x457   : > { %vm6945_vm13 = vmpackc.low %vm4429_vm2, %vm4427_vm11  ;;  %vm4433_vm11 = vcmp.eq.s32.totalorder %v11169_v52, %v10226_v31  ;;  %vm4495_vm2 = vcmp.eq.s32.totalorder %v11170_v17, %v10226_v31 }
 0x458   : > { %vm7009_vm12 = vmpackc.low %vm4493_vm10, %vm4491_vm1  ;;  %vm4497_vm1 = vcmp.eq.s32.totalorder %v11171_v34, %v10226_v31  ;;  %vm4436_vm10 = vcmp.eq.s32.totalorder %v11172_v28, %v10203_v43 }
 0x45c   : > { %6942 = vmatpush1.bf16.xpose.msk.msra.mxu0 %vm6941_vm3, %v11024_v45  ;;  %vm4496_vm3 = vcmp.eq.s32.totalorder %v11170_v17, %v10203_v43 }
 0x45d   : > { %7006 = vmatpush1.bf16.xpose.msk.msra.mxu1 %vm7005_vm14, %v11024_v45  ;;  %6944 = vmatprep.subr.msk.bf16.mxu0 %vm6943_vm0, %v11024_v45  ;;  %vm6947_vm14 = vmpackc.low %vm4434_vm5, %vm4432_vm4  ;;  %vm4438_vm4 = vcmp.eq.s32.totalorder %v11173_v32, %v10203_v43 }
 0x45e   : > { %7008 = vmatprep.subr.msk.bf16.mxu1 %vm7007_vm15, %v11024_v45  ;;  %vm7011_vm0 = vmpackc.low %vm4498_vm7, %vm4496_vm3  ;;  %vm4431_vm15 = vcmp.eq.s32.totalorder %v11168_v10, %v10226_v31  ;;  %vm4502_vm3 = vcmp.eq.s32.totalorder %v11175_v37, %v10203_v43 }
 0x45f   : > { %vm6949_vm5 = vmpackc.low %vm4433_vm11, %vm4431_vm15  ;;  %vm4437_vm15 = vcmp.eq.s32.totalorder %v11173_v32, %v10226_v31  ;;  %vm4499_vm11 = vcmp.eq.s32.totalorder %v11174_v21, %v10226_v31 }
 0x460   : > { %vm7013_vm7 = vmpackc.low %vm4497_vm1, %vm4495_vm2  ;;  %vm4501_vm2 = vcmp.eq.s32.totalorder %v11175_v37, %v10226_v31  ;;  %vm4440_vm1 = vcmp.eq.s32.totalorder %v11176_v38, %v10203_v43 }
 0x464   : > { %6946 = vmatpush1.bf16.xpose.msk.msra.mxu0 %vm6945_vm13, %v11024_v45  ;;  %vm4500_vm13 = vcmp.eq.s32.totalorder %v11174_v21, %v10203_v43 }
 0x465   : > { %7010 = vmatpush1.bf16.xpose.msk.msra.mxu1 %vm7009_vm12, %v11024_v45  ;;  %6948 = vmatprep.subr.msk.bf16.mxu0 %vm6947_vm14, %v11024_v45  ;;  %vm6951_vm12 = vmpackc.low %vm4438_vm4, %vm4436_vm10  ;;  %vm4442_vm10 = vcmp.eq.s32.totalorder %v11177_v18, %v10203_v43 }
 0x466   : > { %7012 = vmatprep.subr.msk.bf16.mxu1 %vm7011_vm0, %v11024_v45  ;;  %vm7015_vm14 = vmpackc.low %vm4502_vm3, %vm4500_vm13  ;;  %vm4435_vm0 = vcmp.eq.s32.totalorder %v11172_v28, %v10226_v31  ;;  %vm4506_vm13 = vcmp.eq.s32.totalorder %v11179_v48, %v10203_v43 }
 0x467   : > { %vm6953_vm4 = vmpackc.low %vm4437_vm15, %vm4435_vm0  ;;  %vm4441_vm0 = vcmp.eq.s32.totalorder %v11177_v18, %v10226_v31  ;;  %vm4503_vm15 = vcmp.eq.s32.totalorder %v11178_v30, %v10226_v31 }
 0x468   : > { %vm7017_vm3 = vmpackc.low %vm4501_vm2, %vm4499_vm11  ;;  %vm4505_vm11 = vcmp.eq.s32.totalorder %v11179_v48, %v10226_v31  ;;  %vm4444_vm2 = vcmp.eq.s32.totalorder %v11059_v12, %v10203_v43 }
 0x46c   : > { %6950 = vmatpush1.bf16.xpose.msk.msra.mxu0 %vm6949_vm5, %v11024_v45  ;;  %vm4504_vm5 = vcmp.eq.s32.totalorder %v11178_v30, %v10203_v43 }
 0x46d   : > { %7014 = vmatpush1.bf16.xpose.msk.msra.mxu1 %vm7013_vm7, %v11024_v45  ;;  %6952 = vmatprep.subr.msk.bf16.mxu0 %vm6951_vm12, %v11024_v45  ;;  %vm6955_vm7 = vmpackc.low %vm4442_vm10, %vm4440_vm1  ;;  %vm4446_vm1 = vcmp.eq.s32.totalorder %v11180_v3, %v10203_v43 }
 0x46e   : > { %7016 = vmatprep.subr.msk.bf16.mxu1 %vm7015_vm14, %v11024_v45  ;;  %vm7019_vm12 = vmpackc.low %vm4506_vm13, %vm4504_vm5  ;;  %vm4439_vm14 = vcmp.eq.s32.totalorder %v11176_v38, %v10226_v31  ;;  %vm4510_vm5 = vcmp.eq.s32.totalorder %v11062_v16, %v10203_v43 }
 0x46f   : > { %vm6957_vm10 = vmpackc.low %vm4441_vm0, %vm4439_vm14  ;;  %vm4443_vm14 = vcmp.eq.s32.totalorder %v11059_v12, %v10226_v31  ;;  %vm4445_vm0 = vcmp.eq.s32.totalorder %v11180_v3, %v10226_v31 }
 0x470   : > { %vm7021_vm13 = vmpackc.low %vm4505_vm11, %vm4503_vm15  ;;  %vm4507_vm15 = vcmp.eq.s32.totalorder %v11061_v15, %v10226_v31  ;;  %vm4509_vm11 = vcmp.eq.s32.totalorder %v11062_v16, %v10226_v31 }
 0x474   : > { %6954 = vmatpush1.bf16.xpose.msk.msra.mxu0 %vm6953_vm4, %v11024_v45  ;;  %vm4508_vm4 = vcmp.eq.s32.totalorder %v11061_v15, %v10203_v43 }
 0x475   : > { %7018 = vmatpush1.bf16.xpose.msk.msra.mxu1 %vm7017_vm3, %v11024_v45  ;;  %6956 = vmatprep.subr.msk.bf16.mxu0 %vm6955_vm7, %v11024_v45  ;;  %vm6959_vm3 = vmpackc.low %vm4446_vm1, %vm4444_vm2  ;;  %vm4448_vm2 = vcmp.eq.s32.totalorder %v11040_v47, %v10203_v43  ;;  %vm4450_vm1 = vcmp.eq.s32.totalorder %v11041_v55, %v10203_v43 }
 0x476   : > { %7020 = vmatprep.subr.msk.bf16.mxu1 %vm7019_vm12, %v11024_v45  ;;  %vm7023_vm7 = vmpackc.low %vm4510_vm5, %vm4508_vm4  ;;  %vm11181_vm12 = vcmp.eq.s32.totalorder %v10946_v2, 1  ;;  %vm4514_vm4 = vcmp.eq.s32.totalorder %v11043_v40, %v10203_v43 }
 0x477   : > { %v3228_v6 = vsel %vm11181_vm12, %v3227_v5, %v3226_v4  ;;  %vm10489_vm5 = vmpackc.low %vm4445_vm0, %vm4443_vm14  ;;  %vm4447_vm12 = vcmp.eq.s32.totalorder %v11040_v47, %v10226_v31  ;;  %vm4449_vm14 = vcmp.eq.s32.totalorder %v11041_v55, %v10226_v31  ;;  %vm4511_vm0 = vcmp.eq.s32.totalorder %v11042_v14, %v10226_v31 }
 0x47c   : > { %6958 = vmatpush1.bf16.xpose.msk.msra.mxu0 %vm6957_vm10, %v11024_v45  ;;  %vm4512_vm10 = vcmp.eq.s32.totalorder %v11042_v14, %v10203_v43 }
 0x47d   : > { %7022 = vmatpush1.bf16.xpose.msk.msra.mxu1 %vm7021_vm13, %v11024_v45  ;;  %6960 = vmatprep.subr.msk.bf16.mxu0 %vm6959_vm3, %v11024_v45  ;;  %vm7025_vm13 = vmpackc.low %vm4509_vm11, %vm4507_vm15  ;;  %vm4513_vm15 = vcmp.eq.s32.totalorder %v11043_v40, %v10226_v31  ;;  %vm4452_vm11 = vcmp.eq.s32.totalorder %v11027_v25, %v10203_v43 }
 0x47e   : > { %v3719_v7 = vpop.f32.mrb[20].mxu0  ;;  %7024 = vmatprep.subr.msk.bf16.mxu1 %vm7023_vm7, %v11024_v45  ;;  %vm6963_vm3 = vmpackc.low %vm4450_vm1, %vm4448_vm2  ;;  %vm4454_vm2 = vcmp.eq.s32.totalorder %v11044_v49, %v10203_v43 }
 0x47f   : > { %v3771_v4 = vadd.f32 %v3719_v7, %v10125_v33  ;;  %v3778_v5 = vrot.slane %v3719_v7, %v11055_v19  ;;  %v3760_v0 = vpop.f32.mrb[20].mxu1  ;;  %v3721_v8 = vpop.f32.mrb[21].mxu0  ;;  %vm7027_vm7 = vmpackc.low %vm4514_vm4, %vm4512_vm10  ;;  %vm4516_vm10 = vcmp.eq.s32.totalorder %v11029_v26, %v10203_v43  ;;  %vm4518_vm4 = vcmp.eq.s32.totalorder %v11030_v29, %v10203_v43 }
 0x480   : > { %v3773_v9 = vadd.f32 %v3760_v0, %v10133_v36  ;;  %v3786_v10 = vrot.slane %v3760_v0, %v11055_v19  ;;  %v3772_v11 = vadd.f32 %v3721_v8, %v10135_v1  ;;  %v3782_v13 = vrot.slane %v3721_v8, %v11055_v19  ;;  %v3762_v17 = vpop.f32.mrb[21].mxu1  ;;  %v3723_v33 = vpop.f32.mrb[22].mxu0  ;;  %vm6965_vm1 = vmpackc.low %vm4449_vm14, %vm4447_vm12 }
 0x481   : > { %v3791_v18 = vmul.f32 %v3778_v5, %v3228_v6  ;;  %v3774_v36 = vadd.f32 %v3762_v17, %v10140_v42  ;;  %v3790_v0 = vrot.slane %v3762_v17, %v11055_v19  ;;  %v3764_v1 = vpop.f32.mrb[22].mxu1  ;;  %v3724_v20 = vpop.f32.mrb[23].mxu0  ;;  %vm4453_vm12 = vcmp.eq.s32.totalorder %v11044_v49, %v10226_v31 }
 0x482   : > { %v3793_v8 = vmul.f32 %v3786_v10, %v3228_v6  ;;  %v3792_v33 = vmul.f32 %v3782_v13, %v3228_v6  ;;  %v3765_v3 = vpop.f32.mrb[23].mxu1  ;;  %vm4515_vm14 = vcmp.eq.s32.totalorder %v11029_v26, %v10226_v31 }
 0x483   : > { %v10507_v42 = vadd.f32 %v3791_v18, %v3771_v4  ;;  %v3794_v20 = vmul.f32 %v3790_v0, %v3228_v6  ;;  %v3806_v6 = vstv %s3805_s26 }
 0x484   : > { %v10515_v10 = vadd.f32 %v3793_v8, %v3773_v9  ;;  %v10517_v3 = vadd.f32 %v3792_v33, %v3772_v11  ;;  %6962 = vmatpush1.bf16.xpose.msk.msra.mxu0 %vm10489_vm5, %v11024_v45  ;;  %vm7029_vm5 = vmpackc.low %vm4513_vm15, %vm4511_vm0  ;;  %vm4517_vm0 = vcmp.eq.s32.totalorder %v11030_v29, %v10226_v31  ;;  %vm4456_vm15 = vcmp.eq.s32.totalorder %v11031_v39, %v10203_v43 }
 0x485   : > { %v10522_v13 = vadd.f32 %v3794_v20, %v3774_v36  ;;  %7026 = vmatpush1.bf16.xpose.msk.msra.mxu1 %vm7025_vm13, %v11024_v45  ;;  %6964 = vmatprep.subr.msk.bf16.mxu0 %vm6963_vm3, %v11024_v45  ;;  %vm6967_vm13 = vmpackc.low %vm4454_vm2, %vm4452_vm11  ;;  %vm4458_vm11 = vcmp.eq.s32.totalorder %v11045_v50, %v10203_v43  ;;  %v3807_v9 = vsel %vm319_vm6, %v3806_v6, 0.0 }
 0x486   : > { %7028 = vmatprep.subr.msk.bf16.mxu1 %vm7027_vm7, %v11024_v45  ;;  %vm7031_vm3 = vmpackc.low %vm4518_vm4, %vm4516_vm10  ;;  %vm4451_vm7 = vcmp.eq.s32.totalorder %v11027_v25, %v10226_v31  ;;  %vm4522_vm10 = vcmp.eq.s32.totalorder %v11033_v24, %v10203_v43 }
 0x487   : > { %vm6969_vm2 = vmpackc.low %vm4453_vm12, %vm4451_vm7  ;;  %vm4457_vm7 = vcmp.eq.s32.totalorder %v11045_v50, %v10226_v31  ;;  %vm4519_vm12 = vcmp.eq.s32.totalorder %v11065_v22, %v10226_v31 }
 0x488   : > { %vm7033_vm4 = vmpackc.low %vm4517_vm0, %vm4515_vm14  ;;  %vm4521_vm14 = vcmp.eq.s32.totalorder %v11033_v24, %v10226_v31  ;;  %vm4460_vm0 = vcmp.eq.s32.totalorder %v11020_v53, %v10203_v43 }
 0x48c   : > { %6966 = vmatpush1.bf16.xpose.msk.msra.mxu0 %vm6965_vm1, %v11024_v45  ;;  %vm4520_vm1 = vcmp.eq.s32.totalorder %v11065_v22, %v10203_v43 }
 0x48d   : > { %7030 = vmatpush1.bf16.xpose.msk.msra.mxu1 %vm7029_vm5, %v11024_v45  ;;  %6968 = vmatprep.subr.msk.bf16.mxu0 %vm6967_vm13, %v11024_v45  ;;  %vm6971_vm5 = vmpackc.low %vm4458_vm11, %vm4456_vm15  ;;  %vm4462_vm15 = vcmp.eq.s32.totalorder %v11021_v46, %v10203_v43 }
 0x48e   : > { %7032 = vmatprep.subr.msk.bf16.mxu1 %vm7031_vm3, %v11024_v45  ;;  %vm7035_vm13 = vmpackc.low %vm4522_vm10, %vm4520_vm1  ;;  %vm4455_vm3 = vcmp.eq.s32.totalorder %v11031_v39, %v10226_v31  ;;  %vm4526_vm1 = vcmp.eq.s32.totalorder %v11023_v54, %v10203_v43 }
 0x48f   : > { %vm6973_vm11 = vmpackc.low %vm4457_vm7, %vm4455_vm3  ;;  %vm4461_vm3 = vcmp.eq.s32.totalorder %v11021_v46, %v10226_v31  ;;  %vm4523_vm7 = vcmp.eq.s32.totalorder %v11022_v58, %v10226_v31 }
 0x490   : > { %vm7037_vm10 = vmpackc.low %vm4521_vm14, %vm4519_vm12  ;;  %vm4525_vm12 = vcmp.eq.s32.totalorder %v11023_v54, %v10226_v31 }
 0x494   : > { %6970 = vmatpush1.bf16.xpose.msk.msra.mxu0 %vm6969_vm2, %v11024_v45  ;;  %vm4524_vm2 = vcmp.eq.s32.totalorder %v11022_v58, %v10203_v43  ;;  %v3808_v43 = vstv %s3804_s27 }
 0x495   : > { %7034 = vmatpush1.bf16.xpose.msk.msra.mxu1 %vm7033_vm4, %v11024_v45  ;;  %6972 = vmatprep.subr.msk.bf16.mxu0 %vm6971_vm5, %v11024_v45  ;;  %vm6975_vm4 = vmpackc.low %vm4462_vm15, %vm4460_vm0  ;;  %vm11184_vm15 = vcmp.eq.s32.totalorder %v10946_v2, 1 }
 0x496   : > { %7036 = vmatprep.subr.msk.bf16.mxu1 %vm7035_vm13, %v11024_v45  ;;  %vm7039_vm5 = vmpackc.low %vm4526_vm1, %vm4524_vm2  ;;  %vm4459_vm13 = vcmp.eq.s32.totalorder %v11020_v53, %v10226_v31  ;;  %v3809_v31 = vsel %vm11184_vm15, %v3808_v43, %v3807_v9 }
 0x497   : > { %vm6977_vm14 = vmpackc.low %vm4461_vm3, %vm4459_vm13 }
 0x498   : > { %vm7041_vm0 = vmpackc.low %vm4525_vm12, %vm4523_vm7 }
 0x49c   : > { %6974 = vmatpush1.bf16.xpose.msk.msra.mxu0 %vm6973_vm11, %v11024_v45  ;;  %vm11185_vm11 = vmmov %vm11184_vm15 }
 0x49d   : > { %7038 = vmatpush1.bf16.xpose.msk.msra.mxu1 %vm7037_vm10, %v11024_v45  ;;  %6976 = vmatprep.subr.msk.bf16.mxu0 %vm6975_vm4, %v11024_v45 }
 0x49e   : > { %7040 = vmatprep.subr.msk.bf16.mxu1 %vm7039_vm5, %v11024_v45 }
 0x4a4   : > { %6978 = vmatpush1.bf16.xpose.msk.msra.mxu0 %vm6977_vm14, %v11024_v45 }
 0x4a5   : > { %7042 = vmatpush1.bf16.xpose.msk.msra.mxu1 %vm7041_vm0, %v11024_v45 }
 0x4ab   : > { %4880 = vmatmul.mubr.bf16.vlgmr.msra.gmra.mrb[28].mxu0 %v11025_v35 }
 0x4ac   : > { %4921 = vmatmul.mubr.bf16.vlgmr.msra.gmra.mrb[28].mxu1 %v11025_v35 }
 0x4fe   : > { %v4300_v11 = vpop.f32.mrb[24].mxu0 }
 0x4ff   : > { %v4352_v17 = vadd.f32 %v4300_v11, %v10507_v42  ;;  %v4359_v45 = vrot.slane %v4300_v11, %v11055_v19  ;;  %v4341_v18 = vpop.f32.mrb[24].mxu1  ;;  %v4302_v4 = vpop.f32.mrb[25].mxu0 }
 0x500   : > { %v4354_v5 = vadd.f32 %v4341_v18, %v10515_v10  ;;  %v4367_v7 = vrot.slane %v4341_v18, %v11055_v19  ;;  %v4353_v36 = vadd.f32 %v4302_v4, %v10517_v3  ;;  %v4363_v0 = vrot.slane %v4302_v4, %v11055_v19  ;;  %v4343_v1 = vpop.f32.mrb[25].mxu1  ;;  %v4304_v8 = vpop.f32.mrb[26].mxu0 }
 0x501   : > { %v4372_v33 = vmul.f32 %v4359_v45, %v3809_v31  ;;  %v4355_v20 = vadd.f32 %v4343_v1, %v10522_v13  ;;  %v4371_v42 = vrot.slane %v4343_v1, %v11055_v19  ;;  %v4345_v6 = vpop.f32.mrb[26].mxu1  ;;  %v4305_v9 = vpop.f32.mrb[27].mxu0  ;;  %v4387_v4 = vstv %s4386_s29 }
 0x502   : > { %v4374_v43 = vmul.f32 %v4367_v7, %v3809_v31  ;;  %v4373_v11 = vmul.f32 %v4363_v0, %v3809_v31  ;;  %v4346_v12 = vpop.f32.mrb[27].mxu1  ;;  %v4388_v45 = vsel %vm319_vm6, %v4387_v4, 0.0  ;;  %v4389_v13 = vstv %s4385_s4 }
 0x503   : > { %v4376_v10 = vadd.f32 %v4372_v33, %v4352_v17  ;;  %v4375_v14 = vmul.f32 %v4371_v42, %v3809_v31  ;;  %v4390_v1 = vsel %vm11185_vm11, %v4389_v13, %v4388_v45 }
 0x504   : > { %v4378_v18 = vadd.f32 %v4374_v43, %v4354_v5  ;;  %v4377_v15 = vadd.f32 %v4373_v11, %v4353_v36 }
 0x505   : > { %v4379_v3 = vadd.f32 %v4375_v14, %v4355_v20 }
 0x57e   : > { %v4881_v8 = vpop.f32.mrb[28].mxu0 }
 0x57f   : > { %v4933_v7 = vadd.f32 %v4881_v8, %v4376_v10  ;;  %v4940_v12 = vrot.slane %v4881_v8, %v11055_v19  ;;  %v4922_v17 = vpop.f32.mrb[28].mxu1  ;;  %v4883_v31 = vpop.f32.mrb[29].mxu0 }
 0x580   : > { %v4935_v5 = vadd.f32 %v4922_v17, %v4378_v18  ;;  %v4948_v14 = vrot.slane %v4922_v17, %v11055_v19  ;;  %v4934_v36 = vadd.f32 %v4883_v31, %v4377_v15  ;;  %v4944_v0 = vrot.slane %v4883_v31, %v11055_v19  ;;  %v4924_v33 = vpop.f32.mrb[29].mxu1  ;;  %v4885_v20 = vpop.f32.mrb[30].mxu0 }
 0x581   : > { %v4953_v42 = vmul.f32 %v4940_v12, %v4390_v1  ;;  %v4936_v6 = vadd.f32 %v4924_v33, %v4379_v3  ;;  %v4952_v9 = vrot.slane %v4924_v33, %v11055_v19  ;;  %v4926_v43 = vpop.f32.mrb[30].mxu1  ;;  %v4886_v11 = vpop.f32.mrb[31].mxu0  ;;  %196 = sbr.rel (!%p194_p12) target bundleno = 133 (0x85), region = 67 }
 0x582   : > { %v4955_v4 = vmul.f32 %v4948_v14, %v4390_v1  ;;  %v4954_v10 = vmul.f32 %v4944_v0, %v4390_v1  ;;  %v4927_v45 = vpop.f32.mrb[31].mxu1 }
 0x583   : > { %v4957_v13 = vadd.f32 %v4953_v42, %v4933_v7  ;;  %v4956_v8 = vmul.f32 %v4952_v9, %v4390_v1 }
 0x584   : > { %v4959_v2 = vadd.f32 %v4955_v4, %v4935_v5  ;;  %v4958_v18 = vadd.f32 %v4954_v10, %v4934_v36 }
 0x585   : > { %4961 = vst [vmem:[#allocation13] sm:$0xff] %v4957_v13  ;;  %v4960_v17 = vadd.f32 %v4956_v8, %v4936_v6 }
 0x586   : > { %4963 = vst [vmem:[#allocation13 + $0x10] sm:$0xff] %v4959_v2  ;;  %4962 = vst [vmem:[#allocation13 + $0x8] sm:$0xff] %v4958_v18 }
 0x587   : > { %4964 = vst [vmem:[#allocation13 + $0x18] sm:$0xff] %v4960_v17 }
 0x588   :  { %7199 = shalt.err (!%p7196_p3)
}
 0x589   :  { %s7200_s10 = scalar_lea.hbm %s10641_s6, 512 }
 0x58a   :  { %p7201_p4 = scmp.ne.s32.totalorder %s10641_s6, %s7200_s10  ;;  %p7204_p5 = scmp.lt.u32.totalorder %s7200_s10, %s10641_s6 }
 0x58c   :  { %p7206_p6 = pnand %p7204_p5, %p7201_p4 }
 0x58e   :  { %7209 = shalt.err (!%p7206_p6)
}
 0x58f   :  { %4974 = dma.vmem_to_hbm [thread:$0]  %s4972_s7, 512, %s10641_s6, [#allocation7]  }
 0x590   :  { %7222 = dma.done.wait [#allocation7], 512  }
 0x591   :  { %7223 = vsyncadd [#allocation7], 4294966784 }
 0x592   :  { %4978 = vsyncpa [#allocation6], 1 }
 0x593   :  { %4979 = vsyncpa [#allocation9], 1 }
 0x594   :  { %4980 = vsyncpa [#allocation12], 1 }
 0x595   :  { %4981 = vsyncpa [#allocation7], 1 }

</bundles_post_ra>
